<compile_context>
chip_gen: v6e
topology: v6e:2x2x1
jax: 0.10.0
libtpu: 0.0.40
codegen_flags: <defaults>
</compile_context>

<pallas_src>
import functools

import jax
import jax.numpy as jnp
import numpy as np
from jax import lax
from jax.experimental import pallas as pl
from jax.experimental.pallas import tpu as pltpu


def _resize_conv2d_kernel(x_ref, rh3_ref, g_ref, b_ref, o_ref, u3_ref):
    # x_ref  : (NPB, H, W*Cin)          original images, channels folded into lanes
    # rh3_ref: (K, Hout, H)             0/1 row (upsample + pad + kh-shift) selection mats
    # g_ref  : (K*W*Cin, TCOL)          lowered conv weights (col upsample+pad+conv folded)
    # b_ref  : (1, TCOL)                bias tiled over output columns
    # o_ref  : (NPB, Hout, TCOL)        lane-dense output block
    # u3_ref : VMEM (NPB*Hout, K*W*Cin) im2row scratch (batch folded into M)
    npb = x_ref.shape[0]
    wcin = x_ref.shape[2]
    k, hout, _ = rh3_ref.shape

    # Build U3 only on the first output-column tile of each batch block; the scratch
    # persists across the inner "arbitrary" grid axis.
    @pl.when(pl.program_id(1) == 0)
    def _():
        for img in range(npb):                       # static, tiny
            r0 = img * hout                          # multiples of Hout (% 8 == 0): aligned
            for kh in range(k):                      # static, tiny; Rh3[kh] is pre-shifted
                c0 = kh * wcin
                u3_ref[r0:r0 + hout, c0:c0 + wcin] = jnp.dot(
                    rh3_ref[kh], x_ref[img],
                    preferred_element_type=jnp.float32,
                    precision=lax.Precision.HIGHEST)

    # Single deep contraction over (kh, w, cin): (NPB*Hout, K*W*Cin) x (K*W*Cin, TCOL).
    acc = jnp.dot(u3_ref[...], g_ref[...],
                  preferred_element_type=jnp.float32,
                  precision=lax.Precision.HIGHEST)
    acc = acc + b_ref[...]                           # bias broadcast over all folded rows

    for img in range(npb):                           # aligned sublane slices, no reshape
        o_ref[img] = acc[img * hout:(img + 1) * hout, :].astype(o_ref.dtype)


def _num_parallel_blocks(n):
    """Generation-aware batch->grid split.

    2 parallel grid blocks where two TensorCores share one Pallas grid via a 'parallel'
    axis (v7x, and v4/v5p megacore); 1 bigger-M block on single-TC chips (v5e/v6e) so the
    whole batch is one grid step.  Wrong detection only changes the grid shape, never
    correctness.
    """
    try:
        kind = jax.devices()[0].device_kind.lower()
    except Exception:
        kind = ""
    two_tc = ("v4" in kind or "v5p" in kind or "v7" in kind or "tpu7" in kind
              or kind.strip().endswith("v5"))
    nb = min(n, 2 if two_tc else 1)
    while nb > 1 and n % nb:
        nb -= 1
    return max(nb, 1)


def _pick_col_tile(total, max_tile=2048):
    """Output-column (Wout*Cout) tile: whole thing if small, else a lane-dense divisor."""
    if total <= max_tile:
        return total
    t = (max_tile // 128) * 128
    while t >= 128:
        if total % t == 0:
            return t
        t -= 128
    return total


def make_resize_conv2d_params(weight_oihw, bias, in_hw, scale_factor, pad=1):
    """One-time, host-side (numpy) lowering of the conv weights.

    Hoisted out of the per-call path: reuse the returned params across calls that share
    the same weights and input spatial size.
    """
    H, W = in_hw
    weight_np = np.asarray(weight_oihw, dtype=np.float32)
    bias_np = np.asarray(bias, dtype=np.float32)
    Cout, Cin, K, Kw = weight_np.shape
    assert K == Kw
    s = scale_factor
    Ho, Wo = H * s, W * s
    Hp = Ho + 2 * pad
    Hout = Ho + 2 * pad - K + 1
    Wout = Wo + 2 * pad - K + 1

    # Rh: (Hp, H) 0/1 matrix = row-wise nearest upsample + vertical zero pad.
    p = np.arange(Hp)
    r = p - pad
    row_valid = (r >= 0) & (r < Ho)
    row_src = np.where(row_valid, r, 0) // s
    Rh = ((row_src[:, None] == np.arange(H)[None, :]) & row_valid[:, None]).astype(np.float32)
    # Rh3[kh] = Rh[kh:kh+Hout]: per-tap pre-shifted selections -> aligned in-kernel LHS.
    Rh3 = np.stack([Rh[kh:kh + Hout] for kh in range(K)], axis=0)        # (K, Hout, H)

    # G: (K*W*Cin, Wout*Cout) — column upsample + pad + conv-over-kw folded, all K kh
    # taps fused; row order (kh, w, cin) matches the kernel's U3 column layout.
    ow = np.arange(Wout)
    kw = np.arange(K)
    q = ow[None, :] + kw[:, None] - pad                                   # (K, Wout)
    col_valid = (q >= 0) & (q < Wo)
    col_src = np.where(col_valid, q, 0) // s
    ind = ((col_src[None, :, :] == np.arange(W)[:, None, None])
           & col_valid[None, :, :]).astype(np.float32)                    # (W, K(kw), Wout)
    G5 = np.einsum('wkq,ocek->ewcqo', ind, weight_np)                     # (kh, w, c, ow, co)
    G = np.ascontiguousarray(G5.reshape(K * W * Cin, Wout * Cout))

    bias_row = np.tile(bias_np, Wout).reshape(1, Wout * Cout)

    params = dict(rh3=jnp.asarray(Rh3), g=jnp.asarray(G), bias_row=jnp.asarray(bias_row))
    meta = dict(H=H, W=W, Cin=Cin, Cout=Cout, K=K, Hout=Hout, Wout=Wout)
    return params, meta


@functools.partial(jax.jit, static_argnames=("cout", "out_layout"))
def resize_conv2d_apply(x_nchw, rh3, g, bias_row, *, cout, out_layout="NCHW"):
    """ResizeConv2d.forward with precomputed lowered params."""
    N, Cin, H, W = x_nchw.shape
    K, Hout, _ = rh3.shape
    WCin = W * Cin
    KWCin = g.shape[0]
    WoutCout = g.shape[1]
    assert KWCin == K * WCin
    Wout = WoutCout // cout

    nb = _num_parallel_blocks(N)      # batch grid blocks (generation-aware)
    npb = N // nb                     # images per block (folded into the matmul M dim)
    tcol = _pick_col_tile(WoutCout)   # output-column tile (degenerate = full width here)
    nct = WoutCout // tcol

    # NCHW -> (N, H, W*Cin): one small relayout of the ORIGINAL (not upsampled) tensor;
    # the s^2-larger upsampled/padded image is never materialized in HBM.
    x2d = jnp.transpose(x_nchw, (0, 2, 3, 1)).reshape(N, H, WCin)

    # NOTE: rh3/g/bias_row are grid-invariant. At much larger W/Cout, additionally
    # single-buffer them (pipeline_mode=pl.Buffered(1)); negligible at these sizes.
    out2d = pl.pallas_call(
        _resize_conv2d_kernel,
        out_shape=jax.ShapeDtypeStruct((N, Hout, WoutCout), x_nchw.dtype),
        grid_spec=pltpu.PrefetchScalarGridSpec(
            num_scalar_prefetch=0,
            grid=(nb, nct),
            in_specs=[
                pl.BlockSpec((npb, H, WCin), lambda b, j: (b, 0, 0)),
                pl.BlockSpec((K, Hout, H), lambda b, j: (0, 0, 0)),
                pl.BlockSpec((KWCin, tcol), lambda b, j: (0, j)),
                pl.BlockSpec((1, tcol), lambda b, j: (0, j)),
            ],
            out_specs=pl.BlockSpec((npb, Hout, tcol), lambda b, j: (b, 0, j)),
            scratch_shapes=[pltpu.VMEM((npb * Hout, KWCin), jnp.float32)],
        ),
        compiler_params=pltpu.CompilerParams(
            dimension_semantics=("parallel", "arbitrary"),
            vmem_limit_bytes=32 * 1024 * 1024,
        ),
    )(x2d, rh3, g, bias_row)

    out = out2d.reshape(N, Hout, Wout, cout)
    if out_layout == "NHWC":
        # Lane-dense layout straight from the kernel; skips the output transpose round trip.
        return out
    # PyTorch-parity NCHW (costs one extra transpose of the output).
    return jnp.transpose(out, (0, 3, 1, 2))


def resize_conv2d(x_nchw, weight_oihw, bias, scale_factor, out_layout="NCHW"):
    """One-shot convenience wrapper (prefer hoisting make_resize_conv2d_params for reuse)."""
    params, meta = make_resize_conv2d_params(
        weight_oihw, bias, x_nchw.shape[2:], scale_factor)
    return resize_conv2d_apply(x_nchw, params["rh3"], params["g"], params["bias_row"],
                               cout=meta["Cout"], out_layout=out_layout)


def _reference(x_nchw, weight_oihw, bias, scale_factor):
    x_up = jnp.repeat(jnp.repeat(x_nchw, scale_factor, axis=2), scale_factor, axis=3)
    out = jax.lax.conv_general_dilated(
        x_up, weight_oihw,
        window_strides=(1, 1),
        padding=((1, 1), (1, 1)),
        dimension_numbers=("NCHW", "OIHW", "NCHW"),
    )
    return out + bias[None, :, None, None]


if __name__ == "__main__":
    # Module config (small, consistent with ResizeConv2d usage in the repo)
    batch, in_channels, out_channels = 2, 4, 8
    kernel_size, scale_factor, spatial = 3, 2, 16

    key = jax.random.PRNGKey(0)
    kx, kw, kb = jax.random.split(key, 3)

    x = jax.random.normal(kx, (batch, in_channels, spatial, spatial), dtype=jnp.float32)
    fan_in = in_channels * kernel_size * kernel_size
    weight = jax.random.normal(
        kw, (out_channels, in_channels, kernel_size, kernel_size), dtype=jnp.float32
    ) / jnp.sqrt(fan_in)
    bias = jax.random.normal(kb, (out_channels,), dtype=jnp.float32) * 0.01

    # Weight-dependent lowering built ONCE (hoisted out of the per-call path).
    params, meta = make_resize_conv2d_params(weight, bias, (spatial, spatial), scale_factor)

    ref = jax.block_until_ready(_reference(x, weight, bias, scale_factor))

    # PyTorch-parity NCHW output.
    out = resize_conv2d_apply(x, params["rh3"], params["g"], params["bias_row"],
                              cout=meta["Cout"], out_layout="NCHW")
    out = jax.block_until_ready(out)
    assert out.shape == ref.shape == (
        batch, out_channels, spatial * scale_factor, spatial * scale_factor)
    np.testing.assert_allclose(np.asarray(out), np.asarray(ref), rtol=1e-4, atol=1e-4)

    # Channels-last fast path (no post-kernel transpose round trip).
    out_nhwc = resize_conv2d_apply(x, params["rh3"], params["g"], params["bias_row"],
                                   cout=meta["Cout"], out_layout="NHWC")
    out_nhwc = jax.block_until_ready(out_nhwc)
    np.testing.assert_allclose(np.asarray(out_nhwc),
                               np.transpose(np.asarray(ref), (0, 2, 3, 1)),
                               rtol=1e-4, atol=1e-4)

    print("KERNEL_OK")
</pallas_src>

<mosaic_0001>
module attributes {stable_mosaic.version = 11 : i64} {
  func.func @_resize_conv2d_kernel(%arg0: i32, %arg1: i32, %arg2: memref<2x16x64xf32, #tpu.memory_space<vmem>>, %arg3: memref<3x32x16xf32, #tpu.memory_space<vmem>>, %arg4: memref<192x256xf32, #tpu.memory_space<vmem>>, %arg5: memref<1x256xf32, #tpu.memory_space<vmem>>, %arg6: memref<2x32x256xf32, #tpu.memory_space<vmem>>, %arg7: memref<64x192xf32, #tpu.memory_space<vmem>>) attributes {dimension_semantics = [#tpu.dimension_semantics<parallel>, #tpu.dimension_semantics<arbitrary>], iteration_bounds = array<i64: 1, 1>, scalar_prefetch = 0 : i64, scratch_operands = 1 : i64, tpu.core_type = #tpu.core_type<tc>, window_params = [{transform_indices = @transform_0, window_bounds = array<i64: 2, 16, 64>}, {pipeline_mode = #tpu.pipeline_mode<synchronous>, transform_indices = @transform_1, window_bounds = array<i64: 3, 32, 16>}, {transform_indices = @transform_2, window_bounds = array<i64: 192, 256>}, {transform_indices = @transform_3, window_bounds = array<i64: 1, 256>}, {transform_indices = @transform_4, window_bounds = array<i64: 2, 32, 256>}]} {
    %c0_i32 = arith.constant 0 : i32
    %0 = arith.cmpi eq, %arg1, %c0_i32 : i32
    %1 = arith.extui %0 : i1 to i32
    %c0_i32_0 = arith.constant 0 : i32
    %2 = arith.cmpi ne, %1, %c0_i32_0 : i32
    scf.if %2 {
      %c0_11 = arith.constant 0 : index
      %c0_12 = arith.constant 0 : index
      %c0_13 = arith.constant 0 : index
      %17 = vector.load %arg3[%c0_11, %c0_12, %c0_13] : memref<3x32x16xf32, #tpu.memory_space<vmem>>, vector<1x32x16xf32>
      %18 = vector.shape_cast %17 : vector<1x32x16xf32> to vector<32x16xf32>
      %c0_14 = arith.constant 0 : index
      %c0_15 = arith.constant 0 : index
      %c0_16 = arith.constant 0 : index
      %19 = vector.load %arg2[%c0_14, %c0_15, %c0_16] : memref<2x16x64xf32, #tpu.memory_space<vmem>>, vector<1x16x64xf32>
      %20 = vector.shape_cast %19 : vector<1x16x64xf32> to vector<16x64xf32>
      %cst_17 = arith.constant dense<0.000000e+00> : vector<32x64xf32>
      %21 = tpu.matmul %18, %20, %cst_17 {dimension_numbers = #tpu.dot_dimension_numbers<[1], [0], [0], [1], [0, 0, 1, 1], [], []>, precision = #tpu.contract_precision<fp32>} : vector<32x16xf32>, vector<16x64xf32>, vector<32x64xf32> -> vector<32x64xf32>
      %c0_18 = arith.constant 0 : index
      %c0_19 = arith.constant 0 : index
      %22 = vector.load %arg7[%c0_18, %c0_19] : memref<64x192xf32, #tpu.memory_space<vmem>>, vector<32x64xf32>
      tpu.vector_store %arg7[%c0_18, %c0_19], %21 {strides = array<i32>} : memref<64x192xf32, #tpu.memory_space<vmem>>, vector<32x64xf32>,
      %c1_20 = arith.constant 1 : index
      %c0_21 = arith.constant 0 : index
      %c0_22 = arith.constant 0 : index
      %23 = vector.load %arg3[%c1_20, %c0_21, %c0_22] : memref<3x32x16xf32, #tpu.memory_space<vmem>>, vector<1x32x16xf32>
      %24 = vector.shape_cast %23 : vector<1x32x16xf32> to vector<32x16xf32>
      %c0_23 = arith.constant 0 : index
      %c0_24 = arith.constant 0 : index
      %c0_25 = arith.constant 0 : index
      %25 = vector.load %arg2[%c0_23, %c0_24, %c0_25] : memref<2x16x64xf32, #tpu.memory_space<vmem>>, vector<1x16x64xf32>
      %26 = vector.shape_cast %25 : vector<1x16x64xf32> to vector<16x64xf32>
      %cst_26 = arith.constant dense<0.000000e+00> : vector<32x64xf32>
      %27 = tpu.matmul %24, %26, %cst_26 {dimension_numbers = #tpu.dot_dimension_numbers<[1], [0], [0], [1], [0, 0, 1, 1], [], []>, precision = #tpu.contract_precision<fp32>} : vector<32x16xf32>, vector<16x64xf32>, vector<32x64xf32> -> vector<32x64xf32>
      %c0_27 = arith.constant 0 : index
      %c64 = arith.constant 64 : index
      %28 = vector.load %arg7[%c0_27, %c64] : memref<64x192xf32, #tpu.memory_space<vmem>>, vector<32x64xf32>
      tpu.vector_store %arg7[%c0_27, %c64], %27 {strides = array<i32>} : memref<64x192xf32, #tpu.memory_space<vmem>>, vector<32x64xf32>,
      %c2 = arith.constant 2 : index
      %c0_28 = arith.constant 0 : index
      %c0_29 = arith.constant 0 : index
      %29 = vector.load %arg3[%c2, %c0_28, %c0_29] : memref<3x32x16xf32, #tpu.memory_space<vmem>>, vector<1x32x16xf32>
      %30 = vector.shape_cast %29 : vector<1x32x16xf32> to vector<32x16xf32>
      %c0_30 = arith.constant 0 : index
      %c0_31 = arith.constant 0 : index
      %c0_32 = arith.constant 0 : index
      %31 = vector.load %arg2[%c0_30, %c0_31, %c0_32] : memref<2x16x64xf32, #tpu.memory_space<vmem>>, vector<1x16x64xf32>
      %32 = vector.shape_cast %31 : vector<1x16x64xf32> to vector<16x64xf32>
      %cst_33 = arith.constant dense<0.000000e+00> : vector<32x64xf32>
      %33 = tpu.matmul %30, %32, %cst_33 {dimension_numbers = #tpu.dot_dimension_numbers<[1], [0], [0], [1], [0, 0, 1, 1], [], []>, precision = #tpu.contract_precision<fp32>} : vector<32x16xf32>, vector<16x64xf32>, vector<32x64xf32> -> vector<32x64xf32>
      %c0_34 = arith.constant 0 : index
      %c128 = arith.constant 128 : index
      %34 = vector.load %arg7[%c0_34, %c128] : memref<64x192xf32, #tpu.memory_space<vmem>>, vector<32x64xf32>
      tpu.vector_store %arg7[%c0_34, %c128], %33 {strides = array<i32>} : memref<64x192xf32, #tpu.memory_space<vmem>>, vector<32x64xf32>,
      %c0_35 = arith.constant 0 : index
      %c0_36 = arith.constant 0 : index
      %c0_37 = arith.constant 0 : index
      %35 = vector.load %arg3[%c0_35, %c0_36, %c0_37] : memref<3x32x16xf32, #tpu.memory_space<vmem>>, vector<1x32x16xf32>
      %36 = vector.shape_cast %35 : vector<1x32x16xf32> to vector<32x16xf32>
      %c1_38 = arith.constant 1 : index
      %c0_39 = arith.constant 0 : index
      %c0_40 = arith.constant 0 : index
      %37 = vector.load %arg2[%c1_38, %c0_39, %c0_40] : memref<2x16x64xf32, #tpu.memory_space<vmem>>, vector<1x16x64xf32>
      %38 = vector.shape_cast %37 : vector<1x16x64xf32> to vector<16x64xf32>
      %cst_41 = arith.constant dense<0.000000e+00> : vector<32x64xf32>
      %39 = tpu.matmul %36, %38, %cst_41 {dimension_numbers = #tpu.dot_dimension_numbers<[1], [0], [0], [1], [0, 0, 1, 1], [], []>, precision = #tpu.contract_precision<fp32>} : vector<32x16xf32>, vector<16x64xf32>, vector<32x64xf32> -> vector<32x64xf32>
      %c32 = arith.constant 32 : index
      %c0_42 = arith.constant 0 : index
      %40 = vector.load %arg7[%c32, %c0_42] : memref<64x192xf32, #tpu.memory_space<vmem>>, vector<32x64xf32>
      tpu.vector_store %arg7[%c32, %c0_42], %39 {strides = array<i32>} : memref<64x192xf32, #tpu.memory_space<vmem>>, vector<32x64xf32>,
      %c1_43 = arith.constant 1 : index
      %c0_44 = arith.constant 0 : index
      %c0_45 = arith.constant 0 : index
      %41 = vector.load %arg3[%c1_43, %c0_44, %c0_45] : memref<3x32x16xf32, #tpu.memory_space<vmem>>, vector<1x32x16xf32>
      %42 = vector.shape_cast %41 : vector<1x32x16xf32> to vector<32x16xf32>
      %c1_46 = arith.constant 1 : index
      %c0_47 = arith.constant 0 : index
      %c0_48 = arith.constant 0 : index
      %43 = vector.load %arg2[%c1_46, %c0_47, %c0_48] : memref<2x16x64xf32, #tpu.memory_space<vmem>>, vector<1x16x64xf32>
      %44 = vector.shape_cast %43 : vector<1x16x64xf32> to vector<16x64xf32>
      %cst_49 = arith.constant dense<0.000000e+00> : vector<32x64xf32>
      %45 = tpu.matmul %42, %44, %cst_49 {dimension_numbers = #tpu.dot_dimension_numbers<[1], [0], [0], [1], [0, 0, 1, 1], [], []>, precision = #tpu.contract_precision<fp32>} : vector<32x16xf32>, vector<16x64xf32>, vector<32x64xf32> -> vector<32x64xf32>
      %c32_50 = arith.constant 32 : index
      %c64_51 = arith.constant 64 : index
      %46 = vector.load %arg7[%c32_50, %c64_51] : memref<64x192xf32, #tpu.memory_space<vmem>>, vector<32x64xf32>
      tpu.vector_store %arg7[%c32_50, %c64_51], %45 {strides = array<i32>} : memref<64x192xf32, #tpu.memory_space<vmem>>, vector<32x64xf32>,
      %c2_52 = arith.constant 2 : index
      %c0_53 = arith.constant 0 : index
      %c0_54 = arith.constant 0 : index
      %47 = vector.load %arg3[%c2_52, %c0_53, %c0_54] : memref<3x32x16xf32, #tpu.memory_space<vmem>>, vector<1x32x16xf32>
      %48 = vector.shape_cast %47 : vector<1x32x16xf32> to vector<32x16xf32>
      %c1_55 = arith.constant 1 : index
      %c0_56 = arith.constant 0 : index
      %c0_57 = arith.constant 0 : index
      %49 = vector.load %arg2[%c1_55, %c0_56, %c0_57] : memref<2x16x64xf32, #tpu.memory_space<vmem>>, vector<1x16x64xf32>
      %50 = vector.shape_cast %49 : vector<1x16x64xf32> to vector<16x64xf32>
      %cst_58 = arith.constant dense<0.000000e+00> : vector<32x64xf32>
      %51 = tpu.matmul %48, %50, %cst_58 {dimension_numbers = #tpu.dot_dimension_numbers<[1], [0], [0], [1], [0, 0, 1, 1], [], []>, precision = #tpu.contract_precision<fp32>} : vector<32x16xf32>, vector<16x64xf32>, vector<32x64xf32> -> vector<32x64xf32>
      %c32_59 = arith.constant 32 : index
      %c128_60 = arith.constant 128 : index
      %52 = vector.load %arg7[%c32_59, %c128_60] : memref<64x192xf32, #tpu.memory_space<vmem>>, vector<32x64xf32>
      tpu.vector_store %arg7[%c32_59, %c128_60], %51 {strides = array<i32>} : memref<64x192xf32, #tpu.memory_space<vmem>>, vector<32x64xf32>,
    } else {
    }
    %c0 = arith.constant 0 : index
    %c0_1 = arith.constant 0 : index
    %3 = vector.load %arg7[%c0, %c0_1] : memref<64x192xf32, #tpu.memory_space<vmem>>, vector<64x192xf32>
    %c0_2 = arith.constant 0 : index
    %c0_3 = arith.constant 0 : index
    %4 = vector.load %arg4[%c0_2, %c0_3] : memref<192x256xf32, #tpu.memory_space<vmem>>, vector<192x256xf32>
    %cst = arith.constant dense<0.000000e+00> : vector<64x256xf32>
    %5 = tpu.matmul %3, %4, %cst {dimension_numbers = #tpu.dot_dimension_numbers<[1], [0], [0], [1], [0, 0, 1, 1], [], []>, precision = #tpu.contract_precision<fp32>} : vector<64x192xf32>, vector<192x256xf32>, vector<64x256xf32> -> vector<64x256xf32>
    %c0_4 = arith.constant 0 : index
    %c0_5 = arith.constant 0 : index
    %6 = vector.load %arg5[%c0_4, %c0_5] : memref<1x256xf32, #tpu.memory_space<vmem>>, vector<1x256xf32>
    %7 = vector.broadcast %6 : vector<1x256xf32> to vector<64x256xf32>
    %8 = arith.addf %5, %7 : vector<64x256xf32>
    %9 = vector.extract_strided_slice %8 {offsets = [0, 0], sizes = [32, 256], strides = [1, 1]} : vector<64x256xf32> to vector<32x256xf32>
    %c0_6 = arith.constant 0 : index
    %c0_7 = arith.constant 0 : index
    %c0_8 = arith.constant 0 : index
    %10 = vector.load %arg6[%c0_6, %c0_7, %c0_8] : memref<2x32x256xf32, #tpu.memory_space<vmem>>, vector<1x32x256xf32>
    %11 = vector.shape_cast %10 : vector<1x32x256xf32> to vector<32x256xf32>
    %12 = vector.shape_cast %9 : vector<32x256xf32> to vector<1x32x256xf32>
    tpu.vector_store %arg6[%c0_6, %c0_7, %c0_8], %12 {strides = array<i32>} : memref<2x32x256xf32, #tpu.memory_space<vmem>>, vector<1x32x256xf32>,
    %13 = vector.extract_strided_slice %8 {offsets = [32, 0], sizes = [32, 256], strides = [1, 1]} : vector<64x256xf32> to vector<32x256xf32>
    %c1 = arith.constant 1 : index
    %c0_9 = arith.constant 0 : index
    %c0_10 = arith.constant 0 : index
    %14 = vector.load %arg6[%c1, %c0_9, %c0_10] : memref<2x32x256xf32, #tpu.memory_space<vmem>>, vector<1x32x256xf32>
    %15 = vector.shape_cast %14 : vector<1x32x256xf32> to vector<32x256xf32>
    %16 = vector.shape_cast %13 : vector<32x256xf32> to vector<1x32x256xf32>
    tpu.vector_store %arg6[%c1, %c0_9, %c0_10], %16 {strides = array<i32>} : memref<2x32x256xf32, #tpu.memory_space<vmem>>, vector<1x32x256xf32>,
    return
  }
  func.func @transform_0(%arg0: i32, %arg1: i32) -> (i32, i32, i32) {
    %c0_i32 = arith.constant 0 : i32
    %c0_i32_0 = arith.constant 0 : i32
    %c0_i32_1 = arith.constant 0 : i32
    return %arg0, %c0_i32, %c0_i32_0 : i32, i32, i32
  }
  func.func @transform_1(%arg0: i32, %arg1: i32) -> (i32, i32, i32) {
    %c0_i32 = arith.constant 0 : i32
    %c0_i32_0 = arith.constant 0 : i32
    %c0_i32_1 = arith.constant 0 : i32
    %c0_i32_2 = arith.constant 0 : i32
    return %c0_i32, %c0_i32_0, %c0_i32_1 : i32, i32, i32
  }
  func.func @transform_2(%arg0: i32, %arg1: i32) -> (i32, i32) {
    %c0_i32 = arith.constant 0 : i32
    %c0_i32_0 = arith.constant 0 : i32
    return %c0_i32, %arg1 : i32, i32
  }
  func.func @transform_3(%arg0: i32, %arg1: i32) -> (i32, i32) {
    %c0_i32 = arith.constant 0 : i32
    %c0_i32_0 = arith.constant 0 : i32
    return %c0_i32, %arg1 : i32, i32
  }
  func.func @transform_4(%arg0: i32, %arg1: i32) -> (i32, i32, i32) {
    %c0_i32 = arith.constant 0 : i32
    %c0_i32_0 = arith.constant 0 : i32
    return %arg0, %c0_i32, %arg1 : i32, i32, i32
  }
}

</mosaic_0001>

<bundles_post_ra>
// kernel: resize_conv2d_apply.1
= control target key start
LH: loop header
LB: loop body
LE: loop exit
PB: predicated region body
PF: predicated region fallthrough
CT: control target
= control target key end

     0   :  { %vm27_vm0 = vcmask 130048   ;;  %vm628_vm1 = vcmask 523264   ;;  %s5958_s23 = smov 64   ;;  %vm1256_vm2 = vcmask 1048064   ;;  %s7913_s0 = inlined_call_operand.vmem [shape: f32[2,16,64], index: 0, kind: input, shape index: {}]   ;;  %s7914_s1 = inlined_call_operand.vmem [shape: f32[3,32,16], index: 1, kind: input, shape index: {}]   ;;  %s7915_s2 = inlined_call_operand.vmem [shape: f32[192,256], index: 2, kind: input, shape index: {}]   ;;  %s7916_s3 = inlined_call_operand.vmem [shape: f32[1,256], index: 3, kind: input, shape index: {}]   ;;  %s7917_s4 = inlined_call_operand.vmem [shape: f32[2,32,256], index: 4, kind: output, shape index: {}]  }
   0x1   :  { %v26_v0 = vld [vmem:[%s7913_s0 + $0x8] sm:$0xff]  ;;  %v25_v1 = vld [vmem:[%s7913_s0] sm:$0xff]  ;;  %v23_v7 = vld [vmem:[%s7914_s1 + $0x10] sm:$0xff] }
   0x2   :  { %v21_v2 = vld [vmem:[%s7914_s1] sm:$0xff]  ;;  %v5993_v3 = vand.u32 4294901760, %v26_v0  ;;  %v5995_v4 = vand.u32 4294901760, %v25_v1  ;;  %v22_v6 = vld [vmem:[%s7914_s1 + $0x8] sm:$0xff]  ;;  %v24_v8 = vld [vmem:[%s7914_s1 + $0x18] sm:$0xff]  ;;  %v35_v11 = vsel %vm27_vm0, %v23_v7, 0 }
   0x3   :  { %v29_v5 = vsel %vm27_vm0, %v21_v2, 0  ;;  %v32_v10 = vsel %vm27_vm0, %v22_v6, 0  ;;  %v38_v12 = vsel %vm27_vm0, %v24_v8, 0  ;;  %v6021_v16 = vand.u32 4294901760, %v35_v11  ;;  %v5351_v37 = vld [vmem:[%s7914_s1 + $0x20] sm:$0xff]  ;;  %v5352_v39 = vld [vmem:[%s7914_s1 + $0x28] sm:$0xff] }
   0x4   :  { %v6007_v9 = vand.u32 4294901760, %v29_v5  ;;  %5597 = vmatprep.subr.mxu0 %v5993_v3  ;;  %v6014_v13 = vsub.f32 %v26_v0, %v5993_v3  ;;  %v6016_v14 = vand.u32 4294901760, %v32_v10  ;;  %v6019_v15 = vsub.f32 %v25_v1, %v5995_v4  ;;  %v5353_v44 = vld [vmem:[%s7914_s1 + $0x30] sm:$0xff]  ;;  %v5354_v45 = vld [vmem:[%s7914_s1 + $0x38] sm:$0xff]  ;;  %v5355_v2 = vld [vmem:[%s7914_s1 + $0x40] sm:$0xff] }
   0x5   :  { %5598 = vmatpush3.msra.mxu0 %v5993_v3  ;;  %v6028_v18 = vand.u32 4294901760, %v38_v12  ;;  %v6041_v22 = vsub.f32 %v35_v11, %v6021_v16  ;;  %v641_v42 = vsel %vm27_vm0, %v5351_v37, 0  ;;  %v644_v43 = vsel %vm27_vm0, %v5352_v39, 0  ;;  %v5357_v11 = vld [vmem:[%s7914_s1 + $0x50] sm:$0xff] }
   0x6   :  { %v6025_v17 = vsub.f32 %v29_v5, %v6007_v9  ;;  %5611 = vmatprep.mubr.f32.mxu1 %v6007_v9  ;;  %5599 = vmatprep.subr.mxu0 %v5995_v4  ;;  %v6032_v19 = vand.u32 4294901760, %v6014_v13  ;;  %v6035_v20 = vsub.f32 %v32_v10, %v6016_v14  ;;  %v6038_v21 = vand.u32 4294901760, %v6019_v15  ;;  %v5356_v5 = vld [vmem:[%s7914_s1 + $0x48] sm:$0xff] }
   0x7   :  { %5600 = vmatpush3.msra.mxu0 %v5995_v4  ;;  %v6048_v24 = vsub.f32 %v38_v12, %v6028_v18  ;;  %v6059_v28 = vand.u32 4294901760, %v6041_v22  ;;  %v6109_v46 = vand.u32 4294901760, %v641_v42  ;;  %v6113_v47 = vand.u32 4294901760, %v644_v43  ;;  %v5358_v12 = vld [vmem:[%s7914_s1 + $0x58] sm:$0xff] }
   0x8   :  { %v6045_v23 = vand.u32 4294901760, %v6025_v17  ;;  %v179_v25 = vsub.f32 %v6014_v13, %v6032_v19  ;;  %v6053_v26 = vand.u32 4294901760, %v6035_v20  ;;  %v186_v27 = vsub.f32 %v6019_v15, %v6038_v21  ;;  %5617 = vmatprep.subr.mxu0 %v6014_v13 }
   0x9   :  { %v6064_v30 = vand.u32 4294901760, %v6048_v24  ;;  %v130_v34 = vsub.f32 %v6041_v22, %v6059_v28  ;;  %v647_v48 = vsel %vm27_vm0, %v5353_v44, 0  ;;  %v650_v49 = vsel %vm27_vm0, %v5354_v45, 0 }
   0xa   :  { %v110_v29 = vsub.f32 %v6025_v17, %v6045_v23  ;;  %v6066_v31 = vand.u32 4294901760, %v179_v25  ;;  %v120_v32 = vsub.f32 %v6035_v20, %v6053_v26  ;;  %v6070_v33 = vand.u32 4294901760, %v186_v27 }
   0xb   :  { %v140_v36 = vsub.f32 %v6048_v24, %v6064_v30  ;;  %v6089_v40 = vand.u32 4294901760, %v130_v34  ;;  %v6124_v50 = vsub.f32 %v641_v42, %v6109_v46  ;;  %v6126_v51 = vand.u32 4294901760, %v647_v48 }
   0xc   :  { %v6074_v35 = vand.u32 4294901760, %v110_v29  ;;  %5607 = vmatprep.subr.mxu1 %v6066_v31  ;;  %v6082_v38 = vand.u32 4294901760, %v120_v32  ;;  %v6131_v52 = vsub.f32 %v644_v43, %v6113_v47  ;;  %v6133_v53 = vand.u32 4294901760, %v650_v49 }
   0xd   :  { %5608 = vmatpush3.msra.mxu1 %v6066_v31  ;;  %v6093_v41 = vand.u32 4294901760, %v140_v36  ;;  %v6142_v54 = vand.u32 4294901760, %v6124_v50  ;;  %v6145_v55 = vsub.f32 %v647_v48, %v6126_v51  ;;  %v1269_v8 = vsel %vm27_vm0, %v5355_v2, 0  ;;  %v5360_v2 = vld [vmem:[%s7913_s0 + $0x18] sm:$0xff] }
   0xe   :  { %5601 = vmatprep.mubr.f32.mxu0 %v6074_v35  ;;  %5609 = vmatprep.subr.mxu1 %v6070_v33  ;;  %v6150_v56 = vand.u32 4294901760, %v6131_v52  ;;  %v6153_v57 = vsub.f32 %v650_v49, %v6133_v53  ;;  %v1272_v10 = vsel %vm27_vm0, %v5356_v5, 0  ;;  %v6221_v25 = vand.u32 4294901760, %v1269_v8 }
   0xf   :  { %5602 = vmatmul.mubr.f32.vlgmr.msra.gmra.mxu0 %v6082_v38  ;;  %5610 = vmatpush3.msra.mxu1 %v6070_v33  ;;  %v722_v58 = vsub.f32 %v6124_v50, %v6142_v54  ;;  %v6164_v59 = vand.u32 4294901760, %v6145_v55  ;;  %v6225_v27 = vand.u32 4294901760, %v1272_v10  ;;  %v1275_v29 = vsel %vm27_vm0, %v5357_v11, 0  ;;  %v5359_v11 = vld [vmem:[%s7913_s0 + $0x10] sm:$0xff] }
  0x10   :  { %5618 = vmatpush3.msra.mxu0 %v6014_v13  ;;  %5612 = vmatmul.mubr.f32.vlgmr.msra.gmra.mxu1 %v6016_v14  ;;  %v732_v60 = vsub.f32 %v6131_v52, %v6150_v56  ;;  %v6171_v61 = vand.u32 4294901760, %v6153_v57  ;;  %v1278_v32 = vsel %vm27_vm0, %v5358_v12, 0  ;;  %v6236_v34 = vsub.f32 %v1269_v8, %v6221_v25 }
  0x11   :  { %5627 = vmatprep.subr.mxu1 %v5993_v3  ;;  %5604 = vmatprep.mubr.f32.mxu0 %v6089_v40  ;;  %v6179_v62 = vand.u32 4294901760, %v722_v58  ;;  %v742_v63 = vsub.f32 %v6145_v55, %v6164_v59  ;;  %v6238_v36 = vand.u32 4294901760, %v1275_v29  ;;  %v6243_v37 = vsub.f32 %v1272_v10, %v6225_v27 }
  0x12   :  { %5628 = vmatpush3.msra.mxu1 %v5993_v3  ;;  %5619 = vmatprep.subr.mxu0 %v6019_v15  ;;  %v6185_v0 = vand.u32 4294901760, %v732_v60  ;;  %v752_v1 = vsub.f32 %v6153_v57, %v6171_v61  ;;  %v6245_v39 = vand.u32 4294901760, %v1278_v32  ;;  %v6254_v42 = vand.u32 4294901760, %v6236_v34 }
  0x13   :  { %5605 = vmatmul.mubr.f32.gmra.mxu0 %v6093_v41  ;;  %5614 = vmatprep.mubr.f32.mxu1 %v6021_v16  ;;  %v6201_v6 = vand.u32 4294901760, %v742_v63  ;;  %v6257_v43 = vsub.f32 %v1275_v29, %v6238_v36  ;;  %v6262_v44 = vand.u32 4294901760, %v6243_v37  ;;  %v6328_v29 = vand.u32 4294901760, %v5359_v11 }
  0x14   :  { %5620 = vmatpush3.msra.mxu0 %v6019_v15  ;;  %5615 = vmatmul.mubr.f32.gmra.mxu1 %v6028_v18  ;;  %v6205_v7 = vand.u32 4294901760, %v752_v1  ;;  %v6265_v45 = vsub.f32 %v1278_v32, %v6245_v39  ;;  %v1350_v48 = vsub.f32 %v6236_v34, %v6254_v42 }
  0x15   :  { %5629 = vmatprep.subr.mxu1 %v5995_v4  ;;  %5621 = vmatprep.mubr.f32.mxu0 %v6025_v17  ;;  %v6276_v49 = vand.u32 4294901760, %v6257_v43  ;;  %v1360_v58 = vsub.f32 %v6243_v37, %v6262_v44  ;;  %v6342_v32 = vsub.f32 %v5359_v11, %v6328_v29  ;;  %v3753_v11 = vld [vmem:[%s7915_s2 + $0x90] sm:$0xff] }
  0x16   :  { %5630 = vmatpush3.msra.mxu1 %v5995_v4  ;;  %5637 = vmatprep.subr.mxu0 %v6032_v19  ;;  %v6283_v60 = vand.u32 4294901760, %v6265_v45  ;;  %v6291_v63 = vand.u32 4294901760, %v1350_v48 }
  0x17   :  { %5622 = vmatmul.mubr.f32.vlgmr.msra.gmra.mxu0 %v6035_v20  ;;  %5631 = vmatprep.mubr.f32.mxu1 %v6045_v23  ;;  %v1370_v1 = vsub.f32 %v6257_v43, %v6276_v49  ;;  %v6300_v5 = vand.u32 4294901760, %v1360_v58  ;;  %v6355_v48 = vand.u32 4294901760, %v6342_v32 }
  0x18   :  { %5638 = vmatpush3.msra.mxu0 %v6032_v19  ;;  %5632 = vmatmul.mubr.f32.vlgmr.msra.gmra.mxu1 %v6053_v26  ;;  %v1380_v8 = vsub.f32 %v6265_v45, %v6283_v60 }
  0x19   :  { %5647 = vmatprep.subr.mxu1 %v5993_v3  ;;  %5624 = vmatprep.mubr.f32.mxu0 %v6041_v22  ;;  %v6312_v10 = vand.u32 4294901760, %v1370_v1  ;;  %v2037_v58 = vsub.f32 %v6342_v32, %v6355_v48 }
  0x1a   :  { %5648 = vmatpush3.msra.mxu1 %v5993_v3  ;;  %5639 = vmatprep.subr.mxu0 %v6038_v21  ;;  %v6319_v12 = vand.u32 4294901760, %v1380_v8 }
  0x1b   :  { %5625 = vmatmul.mubr.f32.gmra.mxu0 %v6048_v24  ;;  %5634 = vmatprep.mubr.f32.mxu1 %v6059_v28 }
  0x1c   :  { %5640 = vmatpush3.msra.mxu0 %v6038_v21  ;;  %5635 = vmatmul.mubr.f32.gmra.mxu1 %v6064_v30 }
  0x1d   :  { %5649 = vmatprep.subr.mxu1 %v5995_v4  ;;  %5641 = vmatprep.mubr.f32.mxu0 %v6007_v9 }
  0x1e   :  { %5650 = vmatpush3.msra.mxu1 %v5995_v4  ;;  %5657 = vmatprep.subr.mxu0 %v5993_v3 }
  0x1f   :  { %5642 = vmatmul.mubr.f32.vlgmr.msra.gmra.mxu0 %v6016_v14  ;;  %5651 = vmatprep.mubr.f32.mxu1 %v6007_v9 }
  0x20   :  { %5658 = vmatpush3.msra.mxu0 %v5993_v3  ;;  %5652 = vmatmul.mubr.f32.vlgmr.msra.gmra.mxu1 %v6016_v14 }
  0x21   :  { %5667 = vmatprep.subr.mxu1 %v6066_v31  ;;  %5644 = vmatprep.mubr.f32.mxu0 %v6021_v16 }
  0x22   :  { %5668 = vmatpush3.msra.mxu1 %v6066_v31  ;;  %5659 = vmatprep.subr.mxu0 %v5995_v4 }
  0x23   :  { %5645 = vmatmul.mubr.f32.gmra.mxu0 %v6028_v18  ;;  %5654 = vmatprep.mubr.f32.mxu1 %v6021_v16 }
  0x24   :  { %5660 = vmatpush3.msra.mxu0 %v5995_v4  ;;  %5655 = vmatmul.mubr.f32.gmra.mxu1 %v6028_v18 }
  0x25   :  { %5669 = vmatprep.subr.mxu1 %v6070_v33  ;;  %5661 = vmatprep.mubr.f32.mxu0 %v6179_v62 }
  0x26   :  { %5670 = vmatpush3.msra.mxu1 %v6070_v33  ;;  %5677 = vmatprep.subr.mxu0 %v6014_v13 }
  0x27   :  { %5662 = vmatmul.mubr.f32.vlgmr.msra.gmra.mxu0 %v6185_v0  ;;  %5671 = vmatprep.mubr.f32.mxu1 %v6109_v46 }
  0x28   :  { %5678 = vmatpush3.msra.mxu0 %v6014_v13  ;;  %5672 = vmatmul.mubr.f32.vlgmr.msra.gmra.mxu1 %v6113_v47 }
  0x29   :  { %5687 = vmatprep.subr.mxu1 %v5993_v3  ;;  %5664 = vmatprep.mubr.f32.mxu0 %v6201_v6 }
  0x2a   :  { %5688 = vmatpush3.msra.mxu1 %v5993_v3  ;;  %5679 = vmatprep.subr.mxu0 %v6019_v15 }
  0x2b   :  { %5665 = vmatmul.mubr.f32.gmra.mxu0 %v6205_v7  ;;  %5674 = vmatprep.mubr.f32.mxu1 %v6126_v51 }
  0x2c   :  { %5680 = vmatpush3.msra.mxu0 %v6019_v15  ;;  %5675 = vmatmul.mubr.f32.gmra.mxu1 %v6133_v53 }
  0x2d   :  { %5689 = vmatprep.subr.mxu1 %v5995_v4  ;;  %5681 = vmatprep.mubr.f32.mxu0 %v6124_v50 }
  0x2e   :  { %5690 = vmatpush3.msra.mxu1 %v5995_v4  ;;  %5697 = vmatprep.subr.mxu0 %v6032_v19 }
  0x2f   :  { %5682 = vmatmul.mubr.f32.vlgmr.msra.gmra.mxu0 %v6131_v52  ;;  %5691 = vmatprep.mubr.f32.mxu1 %v6142_v54 }
  0x30   :  { %5698 = vmatpush3.msra.mxu0 %v6032_v19  ;;  %5692 = vmatmul.mubr.f32.vlgmr.msra.gmra.mxu1 %v6150_v56 }
  0x31   :  { %5707 = vmatprep.subr.mxu1 %v5993_v3  ;;  %5684 = vmatprep.mubr.f32.mxu0 %v6145_v55 }
  0x32   :  { %5708 = vmatpush3.msra.mxu1 %v5993_v3  ;;  %5699 = vmatprep.subr.mxu0 %v6038_v21 }
  0x33   :  { %5685 = vmatmul.mubr.f32.gmra.mxu0 %v6153_v57  ;;  %5694 = vmatprep.mubr.f32.mxu1 %v6164_v59 }
  0x34   :  { %5700 = vmatpush3.msra.mxu0 %v6038_v21  ;;  %5695 = vmatmul.mubr.f32.gmra.mxu1 %v6171_v61 }
  0x35   :  { %5709 = vmatprep.subr.mxu1 %v5995_v4  ;;  %5701 = vmatprep.mubr.f32.mxu0 %v6109_v46 }
  0x36   :  { %5710 = vmatpush3.msra.mxu1 %v5995_v4  ;;  %5717 = vmatprep.subr.mxu0 %v5993_v3 }
  0x37   :  { %5702 = vmatmul.mubr.f32.vlgmr.msra.gmra.mxu0 %v6113_v47  ;;  %5711 = vmatprep.mubr.f32.mxu1 %v6109_v46 }
  0x38   :  { %5718 = vmatpush3.msra.mxu0 %v5993_v3  ;;  %5712 = vmatmul.mubr.f32.vlgmr.msra.gmra.mxu1 %v6113_v47 }
  0x39   :  { %5727 = vmatprep.subr.mxu1 %v6066_v31  ;;  %5704 = vmatprep.mubr.f32.mxu0 %v6126_v51 }
  0x3a   :  { %5728 = vmatpush3.msra.mxu1 %v6066_v31  ;;  %5719 = vmatprep.subr.mxu0 %v5995_v4  ;;  %v6308_v31 = vand.u32 4294901760, %v5360_v2 }
  0x3b   :  { %5705 = vmatmul.mubr.f32.gmra.mxu0 %v6133_v53  ;;  %5714 = vmatprep.mubr.f32.mxu1 %v6126_v51 }
  0x3c   :  { %5720 = vmatpush3.msra.mxu0 %v5995_v4  ;;  %5715 = vmatmul.mubr.f32.gmra.mxu1 %v6133_v53 }
  0x3d   :  { %5729 = vmatprep.subr.mxu1 %v6070_v33  ;;  %5721 = vmatprep.mubr.f32.mxu0 %v6291_v63 }
  0x3e   :  { %5730 = vmatpush3.msra.mxu1 %v6070_v33  ;;  %5737 = vmatprep.subr.mxu0 %v6014_v13  ;;  %v6326_v33 = vsub.f32 %v5360_v2, %v6308_v31  ;;  %v3754_v2 = vld [vmem:[%s7915_s2 + $0x98] sm:$0xff] }
  0x3f   :  { %5722 = vmatmul.mubr.f32.vlgmr.msra.gmra.mxu0 %v6300_v5  ;;  %5731 = vmatprep.mubr.f32.mxu1 %v6221_v25 }
  0x40   :  { %5738 = vmatpush3.msra.mxu0 %v6014_v13  ;;  %5732 = vmatmul.mubr.f32.vlgmr.msra.gmra.mxu1 %v6225_v27  ;;  %v6339_v13 = vand.u32 4294901760, %v6326_v33 }
  0x41   :  { %5747 = vmatprep.subr.mxu1 %v5993_v3  ;;  %5724 = vmatprep.mubr.f32.mxu0 %v6312_v10 }
  0x42   :  { %5748 = vmatpush3.msra.mxu1 %v5993_v3  ;;  %5739 = vmatprep.subr.mxu0 %v6019_v15 }
  0x43   :  { %5725 = vmatmul.mubr.f32.gmra.mxu0 %v6319_v12  ;;  %5734 = vmatprep.mubr.f32.mxu1 %v6238_v36 }
  0x44   :  { %5740 = vmatpush3.msra.mxu0 %v6019_v15  ;;  %5735 = vmatmul.mubr.f32.gmra.mxu1 %v6245_v39  ;;  %v2030_v15 = vsub.f32 %v6326_v33, %v6339_v13 }
  0x45   :  { %5749 = vmatprep.subr.mxu1 %v5995_v4  ;;  %5741 = vmatprep.mubr.f32.mxu0 %v6236_v34 }
  0x46   :  { %5750 = vmatpush3.msra.mxu1 %v5995_v4  ;;  %5757 = vmatprep.subr.mxu0 %v6032_v19 }
  0x47   :  { %5742 = vmatmul.mubr.f32.vlgmr.msra.gmra.mxu0 %v6243_v37  ;;  %5751 = vmatprep.mubr.f32.mxu1 %v6254_v42 }
  0x48   :  { %5758 = vmatpush3.msra.mxu0 %v6032_v19  ;;  %5752 = vmatmul.mubr.f32.vlgmr.msra.gmra.mxu1 %v6262_v44  ;;  %v6365_v19 = vand.u32 4294901760, %v2030_v15 }
  0x49   :  { %5767 = vmatprep.subr.mxu1 %v5993_v3  ;;  %5744 = vmatprep.mubr.f32.mxu0 %v6257_v43 }
  0x4a   :  { %5768 = vmatpush3.msra.mxu1 %v5993_v3  ;;  %5759 = vmatprep.subr.mxu0 %v6038_v21  ;;  %v6377_v3 = vand.u32 4294901760, %v2037_v58 }
  0x4b   :  { %5745 = vmatmul.mubr.f32.gmra.mxu0 %v6265_v45  ;;  %5754 = vmatprep.mubr.f32.mxu1 %v6276_v49 }
  0x4c   :  { %5760 = vmatpush3.msra.mxu0 %v6038_v21  ;;  %5755 = vmatmul.mubr.f32.gmra.mxu1 %v6283_v60  ;;  %v3763_v21 = vld [vmem:[%s7915_s2 + $0xe0] sm:$0xff] }
  0x4d   :  { %5769 = vmatprep.subr.mxu1 %v5995_v4  ;;  %5761 = vmatprep.mubr.f32.mxu0 %v6221_v25 }
  0x4e   :  { %5770 = vmatpush3.msra.mxu1 %v5995_v4  ;;  %5777 = vmatprep.subr.mxu0 %v6308_v31  ;;  %v3766_v4 = vld [vmem:[%s7915_s2 + $0xf8] sm:$0xff] }
  0x4f   :  { %5762 = vmatmul.mubr.f32.vlgmr.msra.gmra.mxu0 %v6225_v27  ;;  %5771 = vmatprep.mubr.f32.mxu1 %v6221_v25 }
  0x50   :  { %5778 = vmatpush3.msra.mxu0 %v6308_v31  ;;  %5772 = vmatmul.mubr.f32.vlgmr.msra.gmra.mxu1 %v6225_v27 }
  0x51   :  { %5787 = vmatprep.subr.mxu1 %v6365_v19  ;;  %5764 = vmatprep.mubr.f32.mxu0 %v6238_v36 }
  0x52   :  { %5788 = vmatpush3.msra.mxu1 %v6365_v19  ;;  %5779 = vmatprep.subr.mxu0 %v6328_v29 }
  0x53   :  { %5765 = vmatmul.mubr.f32.gmra.mxu0 %v6245_v39  ;;  %5774 = vmatprep.mubr.f32.mxu1 %v6238_v36 }
  0x54   :  { %5780 = vmatpush3.msra.mxu0 %v6328_v29  ;;  %5775 = vmatmul.mubr.f32.gmra.mxu1 %v6245_v39 }
  0x55   :  { %5789 = vmatprep.subr.mxu1 %v6377_v3  ;;  %5781 = vmatprep.mubr.f32.mxu0 %v6074_v35  ;;  %v3761_v35 = vld [vmem:[%s7915_s2 + $0xd0] sm:$0xff] }
  0x56   :  { %5790 = vmatpush3.msra.mxu1 %v6377_v3  ;;  %5797 = vmatprep.subr.mxu0 %v6326_v33 }
  0x57   :  { %5782 = vmatmul.mubr.f32.vlgmr.msra.gmra.mxu0 %v6082_v38  ;;  %5791 = vmatprep.mubr.f32.mxu1 %v6007_v9 }
  0x58   :  { %5798 = vmatpush3.msra.mxu0 %v6326_v33  ;;  %5792 = vmatmul.mubr.f32.vlgmr.msra.gmra.mxu1 %v6016_v14 }
  0x59   :  { %5807 = vmatprep.subr.mxu1 %v6308_v31  ;;  %5784 = vmatprep.mubr.f32.mxu0 %v6089_v40 }
  0x5a   :  { %5808 = vmatpush3.msra.mxu1 %v6308_v31  ;;  %5799 = vmatprep.subr.mxu0 %v6342_v32 }
  0x5b   :  { %5785 = vmatmul.mubr.f32.gmra.mxu0 %v6093_v41  ;;  %5794 = vmatprep.mubr.f32.mxu1 %v6021_v16  ;;  %v6569_v41 = vand.u32 4294901760, %v3761_v35 }
  0x5c   :  { %5800 = vmatpush3.msra.mxu0 %v6342_v32  ;;  %5795 = vmatmul.mubr.f32.gmra.mxu1 %v6028_v18 }
  0x5d   :  { %5809 = vmatprep.subr.mxu1 %v6328_v29  ;;  %5801 = vmatprep.mubr.f32.mxu0 %v6025_v17  ;;  %v3764_v17 = vld [vmem:[%s7915_s2 + $0xe8] sm:$0xff] }
  0x5e   :  { %5810 = vmatpush3.msra.mxu1 %v6328_v29  ;;  %5817 = vmatprep.subr.mxu0 %v6339_v13 }
  0x5f   :  { %5802 = vmatmul.mubr.f32.vlgmr.msra.gmra.mxu0 %v6035_v20  ;;  %5811 = vmatprep.mubr.f32.mxu1 %v6045_v23  ;;  %v6540_v20 = vand.u32 4294901760, %v3764_v17  ;;  %v6549_v23 = vand.u32 4294901760, %v3763_v21 }
  0x60   :  { %5818 = vmatpush3.msra.mxu0 %v6339_v13  ;;  %5812 = vmatmul.mubr.f32.vlgmr.msra.gmra.mxu1 %v6053_v26 }
  0x61   :  { %5827 = vmatprep.subr.mxu1 %v6308_v31  ;;  %5804 = vmatprep.mubr.f32.mxu0 %v6041_v22  ;;  %v6567_v40 = vsub.f32 %v3763_v21, %v6549_v23  ;;  %v6676_v21 = vand.u32 4294901760, %v3753_v11 }
  0x62   :  { %5828 = vmatpush3.msra.mxu1 %v6308_v31  ;;  %5819 = vmatprep.subr.mxu0 %v6355_v48 }
  0x63   :  { %5805 = vmatmul.mubr.f32.gmra.mxu0 %v6048_v24  ;;  %5814 = vmatprep.mubr.f32.mxu1 %v6059_v28  ;;  %v3762_v24 = vld [vmem:[%s7915_s2 + $0xd8] sm:$0xff]  ;;  %v6557_v28 = vsub.f32 %v3764_v17, %v6540_v20 }
  0x64   :  { %5820 = vmatpush3.msra.mxu0 %v6355_v48  ;;  %5815 = vmatmul.mubr.f32.gmra.mxu1 %v6064_v30  ;;  %v6559_v30 = vand.u32 4294901760, %v3762_v24 }
  0x65   :  { %5829 = vmatprep.subr.mxu1 %v6328_v29  ;;  %5821 = vmatprep.mubr.f32.mxu0 %v6007_v9 }
  0x66   :  { %5830 = vmatpush3.msra.mxu1 %v6328_v29  ;;  %5837 = vmatprep.subr.mxu0 %v6308_v31 }
  0x67   :  { %5822 = vmatmul.mubr.f32.vlgmr.msra.gmra.mxu0 %v6016_v14  ;;  %5831 = vmatprep.mubr.f32.mxu1 %v6007_v9  ;;  %v6527_v9 = vand.u32 4294901760, %v3766_v4 }
  0x68   :  { %5838 = vmatpush3.msra.mxu0 %v6308_v31  ;;  %5832 = vmatmul.mubr.f32.vlgmr.msra.gmra.mxu1 %v6016_v14  ;;  %v3765_v14 = vld [vmem:[%s7915_s2 + $0xf0] sm:$0xff] }
  0x69   :  { %5847 = vmatprep.subr.mxu1 %v6365_v19  ;;  %5824 = vmatprep.mubr.f32.mxu0 %v6021_v16  ;;  %8116 = vst [vmem:[#allocation3_spill] sm:$0xff] %v6527_v9 }
  0x6a   :  { %5848 = vmatpush3.msra.mxu1 %v6365_v19  ;;  %5839 = vmatprep.subr.mxu0 %v6328_v29 }
  0x6b   :  { %5825 = vmatmul.mubr.f32.gmra.mxu0 %v6028_v18  ;;  %5834 = vmatprep.mubr.f32.mxu1 %v6021_v16  ;;  %v6532_v16 = vand.u32 4294901760, %v3765_v14 }
  0x6c   :  { %5840 = vmatpush3.msra.mxu0 %v6328_v29  ;;  %5835 = vmatmul.mubr.f32.gmra.mxu1 %v6028_v18  ;;  %v6538_v18 = vsub.f32 %v3766_v4, %v6527_v9 }
  0x6d   :  { %5849 = vmatprep.subr.mxu1 %v6377_v3  ;;  %5841 = vmatprep.mubr.f32.mxu0 %v6179_v62  ;;  %v6547_v22 = vsub.f32 %v3765_v14, %v6532_v16 }
  0x6e   :  { %5850 = vmatpush3.msra.mxu1 %v6377_v3  ;;  %5857 = vmatprep.subr.mxu0 %v6326_v33  ;;  %8117 = vst [vmem:[#allocation4_spill] sm:$0xff] %v6538_v18  ;;  %v7935_v26 = vand.u32 4294901760, %v6538_v18 }
  0x6f   :  { %5842 = vmatmul.mubr.f32.vlgmr.msra.gmra.mxu0 %v6185_v0  ;;  %5851 = vmatprep.mubr.f32.mxu1 %v6109_v46  ;;  %v7934_v38 = vand.u32 4294901760, %v6547_v22 }
  0x70   :  { %5858 = vmatpush3.msra.mxu0 %v6326_v33  ;;  %5852 = vmatmul.mubr.f32.vlgmr.msra.gmra.mxu1 %v6113_v47 }
  0x71   :  { %5867 = vmatprep.subr.mxu1 %v6308_v31  ;;  %5844 = vmatprep.mubr.f32.mxu0 %v6201_v6 }
  0x72   :  { %5868 = vmatpush3.msra.mxu1 %v6308_v31  ;;  %5859 = vmatprep.subr.mxu0 %v6342_v32 }
  0x73   :  { %5845 = vmatmul.mubr.f32.gmra.mxu0 %v6205_v7  ;;  %5854 = vmatprep.mubr.f32.mxu1 %v6126_v51  ;;  %v3757_v7 = vld [vmem:[%s7915_s2 + $0xb0] sm:$0xff] }
  0x74   :  { %5860 = vmatpush3.msra.mxu0 %v6342_v32  ;;  %5855 = vmatmul.mubr.f32.gmra.mxu1 %v6133_v53  ;;  %v6636_v1 = vand.u32 4294901760, %v3757_v7 }
  0x75   :  { %5869 = vmatprep.subr.mxu1 %v6328_v29  ;;  %5861 = vmatprep.mubr.f32.mxu0 %v6124_v50  ;;  %v7933_v50 = vand.u32 4294901760, %v6557_v28 }
  0x76   :  { %5870 = vmatpush3.msra.mxu1 %v6328_v29  ;;  %5877 = vmatprep.subr.mxu0 %v6339_v13 }
  0x77   :  { %5862 = vmatmul.mubr.f32.vlgmr.msra.gmra.mxu0 %v6131_v52  ;;  %5871 = vmatprep.mubr.f32.mxu1 %v6142_v54  ;;  %v4070_v54 = vsub.f32 %v6547_v22, %v7934_v38  ;;  %v4076_v62 = vsub.f32 %v6557_v28, %v7933_v50 }
  0x78   :  { %5878 = vmatpush3.msra.mxu0 %v6339_v13  ;;  %5872 = vmatmul.mubr.f32.vlgmr.msra.gmra.mxu1 %v6150_v56  ;;  %v6593_v56 = vsub.f32 %v3761_v35, %v6569_v41 }
  0x79   :  { %5887 = vmatprep.subr.mxu1 %v6308_v31  ;;  %5864 = vmatprep.mubr.f32.mxu0 %v6145_v55  ;;  %v7932_v55 = vand.u32 4294901760, %v6567_v40 }
  0x7a   :  { %5888 = vmatpush3.msra.mxu1 %v6308_v31  ;;  %5879 = vmatprep.subr.mxu0 %v6355_v48 }
  0x7b   :  { %5865 = vmatmul.mubr.f32.gmra.mxu0 %v6153_v57  ;;  %5874 = vmatprep.mubr.f32.mxu1 %v6164_v59  ;;  %v3758_v59 = vld [vmem:[%s7915_s2 + $0xb8] sm:$0xff] }
  0x7c   :  { %5880 = vmatpush3.msra.mxu0 %v6355_v48  ;;  %5875 = vmatmul.mubr.f32.gmra.mxu1 %v6171_v61 }
  0x7d   :  { %5889 = vmatprep.subr.mxu1 %v6328_v29  ;;  %5881 = vmatprep.mubr.f32.mxu0 %v6109_v46 }
  0x7e   :  { %5890 = vmatpush3.msra.mxu1 %v6328_v29  ;;  %5891 = vmatprep.mubr.f32.mxu1 %v6109_v46  ;;  %v3760_v46 = vld [vmem:[%s7915_s2 + $0xc8] sm:$0xff] }
  0x7f   :  { %5882 = vmatmul.mubr.f32.vlgmr.msra.gmra.mxu0 %v6113_v47  ;;  %5897 = vmatprep.subr.mxu0 %v6308_v31  ;;  %v6582_v52 = vand.u32 4294901760, %v3760_v46 }
  0x80   :  { %5884 = vmatprep.mubr.f32.mxu0 %v6126_v51  ;;  %5892 = vmatmul.mubr.f32.vlgmr.msra.gmra.mxu1 %v6113_v47  ;;  %v4064_v47 = vsub.f32 %v6538_v18, %v7935_v26 }
  0x81   :  { %5898 = vmatpush3.msra.mxu0 %v6308_v31  ;;  %5894 = vmatprep.mubr.f32.mxu1 %v6126_v51  ;;  %v6580_v51 = vsub.f32 %v3762_v24, %v6559_v30  ;;  %v6606_v6 = vsub.f32 %v3760_v46, %v6582_v52 }
  0x82   :  { %5899 = vmatprep.subr.mxu0 %v6328_v29  ;;  %5907 = vmatprep.subr.mxu1 %v6365_v19  ;;  %v4065_v61 = vand.u32 4294901760, %v4064_v47 }
  0x83   :  { %5885 = vmatmul.mubr.f32.gmra.mxu0 %v6133_v53  ;;  %5908 = vmatpush3.msra.mxu1 %v6365_v19  ;;  %v7930_v0 = vand.u32 4294901760, %v6580_v51 }
  0x84   :  { %5900 = vmatpush3.msra.mxu0 %v6328_v29  ;;  %5901 = vmatprep.mubr.f32.mxu0 %v6291_v63 }
  0x85   :  { %5895 = vmatmul.mubr.f32.gmra.mxu1 %v6133_v53  ;;  %5917 = vmatprep.subr.mxu0 %v6326_v33  ;;  %v3759_v53 = vld [vmem:[%s7915_s2 + $0xc0] sm:$0xff] }
  0x86   :  { %5911 = vmatprep.mubr.f32.mxu1 %v6221_v25  ;;  %5909 = vmatprep.subr.mxu1 %v6377_v3  ;;  %v6595_v57 = vand.u32 4294901760, %v3759_v53 }
  0x87   :  { %5902 = vmatmul.mubr.f32.vlgmr.msra.gmra.mxu0 %v6300_v5  ;;  %5910 = vmatpush3.msra.mxu1 %v6377_v3  ;;  %v6669_v3 = vand.u32 4294901760, %v3754_v2 }
  0x88   :  { %5904 = vmatprep.mubr.f32.mxu0 %v6312_v10  ;;  %5918 = vmatpush3.msra.mxu0 %v6326_v33 }
  0x89   :  { %5912 = vmatmul.mubr.f32.vlgmr.msra.gmra.mxu1 %v6225_v27  ;;  %5919 = vmatprep.subr.mxu0 %v6342_v32 }
  0x8a   :  { %5914 = vmatprep.mubr.f32.mxu1 %v6238_v36  ;;  %5927 = vmatprep.subr.mxu1 %v6308_v31 }
  0x8b   :  { %5905 = vmatmul.mubr.f32.gmra.mxu0 %v6319_v12  ;;  %5928 = vmatpush3.msra.mxu1 %v6308_v31 }
  0x8c   :  { %5920 = vmatpush3.msra.mxu0 %v6342_v32  ;;  %5921 = vmatprep.mubr.f32.mxu0 %v6236_v34  ;;  %v7927_v34 = vand.u32 4294901760, %v6593_v56  ;;  %v3752_v32 = vld [vmem:[%s7915_s2 + $0x88] sm:$0xff] }
  0x8d   :  { %5915 = vmatmul.mubr.f32.gmra.mxu1 %v6245_v39  ;;  %5937 = vmatprep.subr.mxu0 %v6339_v13 }
  0x8e   :  { %5931 = vmatprep.mubr.f32.mxu1 %v6254_v42  ;;  %5929 = vmatprep.subr.mxu1 %v6328_v29  ;;  %v4088_v42 = vsub.f32 %v6580_v51, %v7930_v0 }
  0x8f   :  { %5922 = vmatmul.mubr.f32.vlgmr.msra.gmra.mxu0 %v6243_v37  ;;  %5930 = vmatpush3.msra.mxu1 %v6328_v29  ;;  %v3756_v37 = vld [vmem:[%s7915_s2 + $0xa8] sm:$0xff] }
  0x90   :  { %5924 = vmatprep.mubr.f32.mxu0 %v6257_v43  ;;  %5938 = vmatpush3.msra.mxu0 %v6339_v13  ;;  %v7926_v43 = vand.u32 4294901760, %v6606_v6  ;;  %v4089_v5 = vand.u32 4294901760, %v4088_v42  ;;  %v6647_v10 = vand.u32 4294901760, %v3756_v37 }
  0x91   :  { %5932 = vmatmul.mubr.f32.vlgmr.msra.gmra.mxu1 %v6262_v44  ;;  %5939 = vmatprep.subr.mxu0 %v6355_v48  ;;  %v6627_v44 = vand.u32 4294901760, %v3758_v59 }
  0x92   :  { %5934 = vmatprep.mubr.f32.mxu1 %v6276_v49  ;;  %5947 = vmatprep.subr.mxu1 %v6308_v31  ;;  %v4100_v8 = vsub.f32 %v6606_v6, %v7926_v43  ;;  %v6667_v58 = vsub.f32 %v3756_v37, %v6647_v10 }
  0x93   :  { %5925 = vmatmul.mubr.f32.gmra.mxu0 %v6265_v45  ;;  %5948 = vmatpush3.msra.mxu1 %v6308_v31  ;;  %v3755_v45 = vld [vmem:[%s7915_s2 + $0xa0] sm:$0xff]  ;;  %v6645_v31 = vsub.f32 %v3758_v59, %v6627_v44 }
  0x94   :  { %5940 = vmatpush3.msra.mxu0 %v6355_v48  ;;  %5941 = vmatprep.mubr.f32.mxu0 %v6221_v25  ;;  %v6659_v13 = vand.u32 4294901760, %v3755_v45  ;;  %v4101_v48 = vand.u32 4294901760, %v4100_v8  ;;  %v7921_v47 = vand.u32 4294901760, %v6667_v58 }
  0x95   :  { %5935 = vmatmul.mubr.f32.gmra.mxu1 %v6283_v60  ;;  %5949 = vmatprep.subr.mxu1 %v6328_v29  ;;  %v4094_v60 = vsub.f32 %v6593_v56, %v7927_v34  ;;  %v7924_v19 = vand.u32 4294901760, %v6645_v31 }
  0x96   :  { %5951 = vmatprep.mubr.f32.mxu1 %v6221_v25  ;;  %5950 = vmatpush3.msra.mxu1 %v6328_v29  ;;  %v4071_v25 = vand.u32 4294901760, %v4070_v54  ;;  %v6657_v29 = vsub.f32 %v3757_v7, %v6636_v1  ;;  %v6674_v17 = vsub.f32 %v3755_v45, %v6659_v13  ;;  %v6686_v54 = vand.u32 4294901760, %v3752_v32 }
  0x97   :  { %5942 = vmatmul.mubr.f32.vlgmr.msra.gmra.mxu0 %v6225_v27  ;;  %3821 = vmatprep.subr.mxu0 %v6527_v9  ;;  %v4095_v12 = vand.u32 4294901760, %v4094_v60  ;;  %v4112_v46 = vsub.f32 %v6645_v31, %v7924_v19  ;;  %v6694_v7 = vsub.f32 %v3753_v11, %v6676_v21  ;;  %v4124_v42 = vsub.f32 %v6667_v58, %v7921_v47  ;;  %v3750_v60 = vld [vmem:[%s7915_s2 + $0x78] sm:$0xff] }
  0x98   :  { %5944 = vmatprep.mubr.f32.mxu0 %v6238_v36  ;;  %3823 = vmatpush1.msra.mxu0 %v6532_v16  ;;  %v7923_v14 = vand.u32 4294901760, %v6657_v29 }
  0x99   :  { %5952 = vmatmul.mubr.f32.vlgmr.msra.gmra.mxu1 %v6225_v27  ;;  %3825 = vmatprep.subr.mxu0 %v6540_v20  ;;  %v4082_v27 = vsub.f32 %v6567_v40, %v7932_v55  ;;  %v7920_v11 = vand.u32 4294901760, %v6694_v7 }
  0x9a   :  { %5954 = vmatprep.mubr.f32.mxu1 %v6238_v36  ;;  %3827 = vmatpush1.msra.mxu0 %v6549_v23  ;;  %v6617_v36 = vsub.f32 %v3759_v53, %v6595_v57  ;;  %v6684_v53 = vsub.f32 %v3754_v2, %v6669_v3 }
  0x9b   :  { %5945 = vmatmul.mubr.f32.gmra.mxu0 %v6245_v39  ;;  %3829 = vmatprep.subr.mxu0 %v6559_v30  ;;  %v4083_v49 = vand.u32 4294901760, %v4082_v27 }
  0x9c   :  { %3831 = vmatpush1.msra.mxu0 %v6569_v41  ;;  %4066 = vmatprep.subr.mxu1 %v4065_v61  ;;  %v7925_v63 = vand.u32 4294901760, %v6617_v36  ;;  %v4118_v61 = vsub.f32 %v6657_v29, %v7923_v14  ;;  %v7919_v45 = vand.u32 4294901760, %v6684_v53 }
  0x9d   :  { %5955 = vmatmul.mubr.f32.gmra.mxu1 %v6245_v39  ;;  %3833 = vmatprep.subr.mxu0 %v6582_v52  ;;  %v4077_v39 = vand.u32 4294901760, %v4076_v62  ;;  %v7918_v62 = vand.u32 4294901760, %v6674_v17 }
  0x9e   :  { %3835 = vmatpush1.msra.mxu0 %v6595_v57  ;;  %4072 = vmatpush1.msra.mxu1 %v4071_v25  ;;  %v4106_v33 = vsub.f32 %v6617_v36, %v7925_v63  ;;  %v3751_v25 = vld [vmem:[%s7915_s2 + $0x80] sm:$0xff] }
  0x9f   :  { %4078 = vmatprep.subr.mxu1 %v4077_v39  ;;  %3837 = vmatprep.subr.mxu0 %v6627_v44  ;;  %v4113_v39 = vand.u32 4294901760, %v4112_v46  ;;  %v4130_v8 = vsub.f32 %v6674_v17, %v7918_v62 }
  0xa0   :  { %4084 = vmatpush1.msra.mxu1 %v4083_v49  ;;  %3839 = vmatpush1.msra.mxu0 %v6636_v1  ;;  %v4107_v4 = vand.u32 4294901760, %v4106_v33  ;;  %v6705_v49 = vsub.f32 %v3752_v32, %v6686_v54 }
  0xa1   :  { %4090 = vmatprep.subr.mxu1 %v4089_v5  ;;  %3841 = vmatprep.subr.mxu0 %v6647_v10  ;;  %v4119_v5 = vand.u32 4294901760, %v4118_v61  ;;  %v4131_v46 = vand.u32 4294901760, %v4130_v8  ;;  %v4142_v61 = vsub.f32 %v6694_v7, %v7920_v11 }
  0xa2   :  { %4096 = vmatpush1.msra.mxu1 %v4095_v12  ;;  %3843 = vmatpush1.msra.mxu0 %v6659_v13  ;;  %8118 = vst [vmem:[#allocation5_spill] sm:$0xff] %v6705_v49  ;;  %v3749_v12 = vld [vmem:[%s7915_s2 + $0x70] sm:$0xff] }
  0xa3   :  { %4102 = vmatprep.subr.mxu1 %v4101_v48  ;;  %3845 = vmatprep.subr.mxu0 %v6669_v3  ;;  %v4136_v48 = vsub.f32 %v6684_v53, %v7919_v45  ;;  %v6738_v8 = vand.u32 4294901760, %v3749_v12 }
  0xa4   :  { %4108 = vmatpush1.msra.mxu1 %v4107_v4  ;;  %3847 = vmatpush1.msra.mxu0 %v6676_v21  ;;  %v7922_v4 = vand.u32 4294901760, %v6705_v49 }
  0xa5   :  { %3849 = vmatprep.subr.mxu0 %v6686_v54  ;;  %4114 = vmatprep.subr.mxu1 %v4113_v39  ;;  %v3748_v39 = vld [vmem:[%s7915_s2 + $0x68] sm:$0xff]  ;;  %v4137_v45 = vand.u32 4294901760, %v4136_v48 }
  0xa6   :  { %4120 = vmatpush1.msra.mxu1 %v4119_v5 }
  0xcf   :  { %v5603_v15 = vpop.f32.mrf.mxu0 }
  0xd0   :  { %v5613_v35 = vpop.f32.mrf.mxu1 }
  0xd1   :  { %v113_v24 = vpop.f32.mrf.mxu0  ;;  %v231_v59 = vadd.f32 %v5613_v35, %v5603_v15  ;;  %v4125_v15 = vand.u32 4294901760, %v4124_v42 }
  0xd2   :  { %v224_v37 = vpop.f32.mrf.mxu1 }
  0xd3   :  { %v5606_v27 = vpop.f32.mrf.mxu0  ;;  %v225_v2 = vadd.f32 %v224_v37, %v113_v24  ;;  %v6722_v24 = vand.u32 4294901760, %v3751_v25  ;;  %v6727_v37 = vand.u32 4294901760, %v3750_v60  ;;  %4126 = vmatprep.subr.mxu1 %v4125_v15  ;;  %v4143_v15 = vand.u32 4294901760, %v4142_v61 }
  0xd4   :  { %v5616_v32 = vpop.f32.mrf.mxu1  ;;  %4132 = vmatpush1.msra.mxu1 %v4131_v46 }
  0xd5   :  { %v133_v33 = vpop.f32.mrf.mxu0  ;;  %v243_v35 = vadd.f32 %v5616_v32, %v5606_v27  ;;  %v4148_v27 = vsub.f32 %v6705_v49, %v7922_v4  ;;  %v6736_v5 = vsub.f32 %v3751_v25, %v6722_v24  ;;  %v3747_v32 = vld [vmem:[%s7915_s2 + $0x60] sm:$0xff]  ;;  %3851 = vmatpush1.msra.mxu0 %v6722_v24  ;;  %v6745_v48 = vsub.f32 %v3750_v60, %v6727_v37  ;;  %v3746_v25 = vld [vmem:[%s7915_s2 + $0x58] sm:$0xff] }
  0xd6   :  { %v236_v42 = vpop.f32.mrf.mxu1  ;;  %3853 = vmatprep.subr.mxu0 %v6727_v37  ;;  %4138 = vmatprep.subr.mxu1 %v4137_v45  ;;  %v6759_v61 = vand.u32 4294901760, %v3747_v32  ;;  %v6768_v34 = vand.u32 4294901760, %v3746_v25 }
  0xd7   :  { %v5623_v62 = vpop.f32.mrf.mxu0  ;;  %8119 = vst [vmem:[#allocation6_spill] sm:$0xff] %v6736_v5  ;;  %v237_v11 = vadd.f32 %v236_v42, %v133_v33  ;;  %8120 = vst [vmem:[#allocation7_spill] sm:$0xff] %v6745_v48  ;;  %v4149_v19 = vand.u32 4294901760, %v4148_v27  ;;  %v7928_v63 = vand.u32 4294901760, %v6736_v5  ;;  %3855 = vmatpush1.msra.mxu0 %v6738_v8  ;;  %4144 = vmatpush1.msra.mxu1 %v4143_v15  ;;  %v7929_v46 = vand.u32 4294901760, %v6745_v48 }
  0xd8   :  { %v326_v47 = vadd.f32 %v5623_v62, %v231_v59  ;;  %v5633_v14 = vpop.f32.mrf.mxu1  ;;  %v6753_v59 = vsub.f32 %v3749_v12, %v6738_v8  ;;  %v6755_v62 = vand.u32 4294901760, %v3748_v39 }
  0xd9   :  { %v318_v4 = vpop.f32.mrf.mxu0  ;;  %4150 = vmatprep.subr.mxu1 %v4149_v19  ;;  %v4154_v45 = vsub.f32 %v6736_v5, %v7928_v63  ;;  %v6775_v19 = vsub.f32 %v3747_v32, %v6759_v61  ;;  %v3744_v32 = vld [vmem:[%s7915_s2 + $0x48] sm:$0xff] }
  0xda   :  { %8121 = vst [vmem:[#allocation8_spill] sm:$0xff] %v6753_v59  ;;  %v319_v60 = vadd.f32 %v318_v4, %v225_v2  ;;  %v423_v33 = vadd.f32 %v5633_v14, %v326_v47  ;;  %v414_v43 = vpop.f32.mrf.mxu1  ;;  %v7931_v12 = vand.u32 4294901760, %v6753_v59  ;;  %v6766_v27 = vsub.f32 %v3748_v39, %v6755_v62  ;;  %3857 = vmatprep.subr.mxu0 %v6755_v62  ;;  %v3745_v4 = vld [vmem:[%s7915_s2 + $0x50] sm:$0xff] }
  0xdb   :  { %v5626_v42 = vpop.f32.mrf.mxu0  ;;  %v4160_v2 = vsub.f32 %v6745_v48, %v7929_v46  ;;  %8123 = vst [vmem:[#allocation10_spill] sm:$0xff] %v6775_v19  ;;  %3859 = vmatpush1.msra.mxu0 %v6759_v61  ;;  %v4155_v63 = vand.u32 4294901760, %v4154_v45  ;;  %v7939_v45 = vand.u32 4294901760, %v6775_v19 }
  0xdc   :  { %8122 = vst [vmem:[#allocation9_spill] sm:$0xff] %v6766_v27  ;;  %v340_v14 = vadd.f32 %v5626_v42, %v243_v35  ;;  %v415_v47 = vadd.f32 %v414_v43, %v319_v60  ;;  %v5636_v15 = vpop.f32.mrf.mxu1  ;;  %v4166_v43 = vsub.f32 %v6753_v59, %v7931_v12  ;;  %v7938_v35 = vand.u32 4294901760, %v6766_v27  ;;  %3861 = vmatprep.subr.mxu0 %v6768_v34  ;;  %v3743_v12 = vld [vmem:[%s7915_s2 + $0x40] sm:$0xff] }
  0xdd   :  { %v332_v39 = vpop.f32.mrf.mxu0  ;;  %v6786_v60 = vsub.f32 %v3746_v25, %v6768_v34  ;;  %v4161_v0 = vand.u32 4294901760, %v4160_v2  ;;  %4156 = vmatpush1.msra.mxu1 %v4155_v63  ;;  %v6800_v59 = vand.u32 4294901760, %v3745_v4  ;;  %v4178_v2 = vsub.f32 %v6775_v19, %v7939_v45  ;;  %v3742_v63 = vld [vmem:[%s7915_s2 + $0x38] sm:$0xff] }
  0xde   :  { %v333_v42 = vadd.f32 %v332_v39, %v237_v11  ;;  %v439_v46 = vadd.f32 %v5636_v15, %v340_v14  ;;  %v430_v55 = vpop.f32.mrf.mxu1  ;;  %v4167_v25 = vand.u32 4294901760, %v4166_v43  ;;  %v4172_v38 = vsub.f32 %v6766_v27, %v7938_v35 }
  0xdf   :  { %8124 = vst [vmem:[#allocation11_spill] sm:$0xff] %v6786_v60  ;;  %v5643_v50 = vpop.f32.mrf.mxu0  ;;  %v7942_v26 = vand.u32 4294901760, %v6786_v60  ;;  %4162 = vmatprep.subr.mxu1 %v4161_v0  ;;  %v6805_v39 = vand.u32 4294901760, %v3744_v32  ;;  %v6816_v0 = vand.u32 4294901760, %v3743_v12  ;;  %3863 = vmatpush1.msra.mxu0 %v6800_v59  ;;  %v4179_v19 = vand.u32 4294901760, %v4178_v2 }
  0xe0   :  { %v431_v11 = vadd.f32 %v430_v55, %v333_v42  ;;  %v522_v14 = vadd.f32 %v5643_v50, %v423_v33  ;;  %v5653_v43 = vpop.f32.mrf.mxu1  ;;  %4168 = vmatpush1.msra.mxu1 %v4167_v25  ;;  %v4173_v35 = vand.u32 4294901760, %v4172_v38  ;;  %v6814_v50 = vsub.f32 %v3745_v4, %v6800_v59  ;;  %v3741_v33 = vld [vmem:[%s7915_s2 + $0x30] sm:$0xff]  ;;  %v3740_v25 = vld [vmem:[%s7915_s2 + $0x28] sm:$0xff] }
  0xe1   :  { %8125 = vst [vmem:[#allocation12_spill] sm:$0xff] %v6805_v39  ;;  %v515_v15 = vpop.f32.mrf.mxu0  ;;  %v4184_v55 = vsub.f32 %v6786_v60, %v7942_v26  ;;  %8127 = vst [vmem:[#allocation14_spill] sm:$0xff] %v6816_v0  ;;  %v6823_v38 = vsub.f32 %v3744_v32, %v6805_v39  ;;  %3865 = vmatprep.subr.mxu0 %v6805_v39  ;;  %v6831_v48 = vsub.f32 %v3743_v12, %v6816_v0 }
  0xe2   :  { %8126 = vst [vmem:[#allocation13_spill] sm:$0xff] %v6814_v50  ;;  %v516_v42 = vadd.f32 %v515_v15, %v415_v47  ;;  %v613_v45 = vadd.f32 %v5653_v43, %v522_v14  ;;  %v606_v26 = vpop.f32.mrf.mxu1  ;;  %4174 = vmatprep.subr.mxu1 %v4173_v35  ;;  %v7951_v27 = vand.u32 4294901760, %v6814_v50  ;;  %v6833_v47 = vand.u32 4294901760, %v3742_v63  ;;  %3867 = vmatpush1.msra.mxu0 %v6816_v0 }
  0xe3   :  { %8128 = vst [vmem:[#allocation15_spill] sm:$0xff] %v6823_v38  ;;  %v5646_v4 = vpop.f32.mrf.mxu0  ;;  %v4185_v60 = vand.u32 4294901760, %v4184_v55  ;;  %8129 = vst [vmem:[#allocation16_spill] sm:$0xff] %v6831_v48  ;;  %4180 = vmatpush1.msra.mxu1 %v4179_v19  ;;  %v7952_v2 = vand.u32 4294901760, %v6823_v38  ;;  %v6838_v15 = vand.u32 4294901760, %v3741_v33 }
  0xe4   :  { %8130 = vst [vmem:[#allocation17_spill] sm:$0xff] %v6833_v47  ;;  %630 = vst.msk [vmem:[#allocation2 + $0x10] sm:$0xff] %vm628_vm1, %v613_v45  ;;  %v534_v32 = vadd.f32 %v5646_v4, %v439_v46  ;;  %v607_v14 = vadd.f32 %v606_v26, %v516_v42  ;;  %v5656_v43 = vpop.f32.mrf.mxu1  ;;  %v4190_v12 = vsub.f32 %v6814_v50, %v7951_v27  ;;  %v6847_v45 = vand.u32 4294901760, %v3740_v25  ;;  %v3739_v26 = vld [vmem:[%s7915_s2 + $0x20] sm:$0xff] }
  0xe5   :  { %8131 = vst [vmem:[#allocation18_spill] sm:$0xff] %v6838_v15  ;;  %v527_v35 = vpop.f32.mrf.mxu0  ;;  %4186 = vmatprep.subr.mxu1 %v4185_v60  ;;  %v6845_v0 = vsub.f32 %v3742_v63, %v6833_v47  ;;  %3869 = vmatprep.subr.mxu0 %v6833_v47  ;;  %v4196_v60 = vsub.f32 %v6823_v38, %v7952_v2  ;;  %v3738_v63 = vld [vmem:[%s7915_s2 + $0x18] sm:$0xff]  ;;  %v6877_v38 = vand.u32 4294901760, %v3739_v26 }
  0xe6   :  { %8133 = vst [vmem:[#allocation20_spill] sm:$0xff] %v6847_v45  ;;  %629 = vst.msk [vmem:[#allocation2] sm:$0xff] %vm628_vm1, %v607_v14  ;;  %v528_v46 = vadd.f32 %v527_v35, %v431_v11  ;;  %v625_v19 = vadd.f32 %v5656_v43, %v534_v32  ;;  %v6858_v42 = vsub.f32 %v3741_v33, %v6838_v15  ;;  %3871 = vmatpush1.msra.mxu0 %v6838_v15  ;;  %v618_v4 = vpop.f32.mrf.mxu1  ;;  %v3737_v33 = vld [vmem:[%s7915_s2 + $0x10] sm:$0xff] }
  0xe7   :  { %8132 = vst [vmem:[#allocation19_spill] sm:$0xff] %v6845_v0  ;;  %v5663_v27 = vpop.f32.mrf.mxu0  ;;  %v4191_v55 = vand.u32 4294901760, %v4190_v12  ;;  %v8135_v14 = vand.u32 4294901760, %v6831_v48  ;;  %v6869_v35 = vsub.f32 %v3740_v25, %v6847_v45  ;;  %3873 = vmatprep.subr.mxu0 %v6847_v45  ;;  %v4197_v2 = vand.u32 4294901760, %v4196_v60  ;;  %8137 = vst [vmem:[#allocation23_spill] sm:$0xff] %v6877_v38 }
  0xe8   :  { %8134 = vst [vmem:[#allocation21_spill] sm:$0xff] %v6858_v42  ;;  %632 = vst.msk [vmem:[#allocation2 + $0x30] sm:$0xff] %vm628_vm1, %v625_v19  ;;  %v619_v43 = vadd.f32 %v618_v4, %v528_v46  ;;  %v7963_v12 = vand.u32 4294901760, %v6858_v42  ;;  %v5673_v32 = vpop.f32.mrf.mxu1  ;;  %v8138_v50 = vand.u32 4294901760, %v6845_v0  ;;  %v6886_v46 = vand.u32 4294901760, %v3738_v63  ;;  %3875 = vmatpush1.msra.mxu0 %v6877_v38 }
  0xe9   :  { %v4202_v11 = vsub.f32 %v6831_v48, %v8135_v14  ;;  %8136 = vst [vmem:[#allocation22_spill] sm:$0xff] %v6869_v35  ;;  %v3736_v14 = vld [vmem:[%s7915_s2 + $0x8] sm:$0xff]  ;;  %v725_v25 = vpop.f32.mrf.mxu0  ;;  %4192 = vmatpush1.msra.mxu1 %v4191_v55  ;;  %v6893_v4 = vsub.f32 %v3739_v26, %v6877_v38  ;;  %v6895_v55 = vand.u32 4294901760, %v3737_v33 }
  0xea   :  { %v4208_v45 = vsub.f32 %v6845_v0, %v8138_v50  ;;  %8139 = vst [vmem:[#allocation24_spill] sm:$0xff] %v6886_v46  ;;  %631 = vst.msk [vmem:[#allocation2 + $0x20] sm:$0xff] %vm628_vm1, %v619_v43  ;;  %4198 = vmatprep.subr.mxu1 %v4197_v2  ;;  %v4214_v60 = vsub.f32 %v6858_v42, %v7963_v12  ;;  %v3735_v50 = vld [vmem:[%s7915_s2] sm:$0xff]  ;;  %v836_v19 = vpop.f32.mrf.mxu1  ;;  %v8142_v2 = vand.u32 4294901760, %v6869_v35  ;;  %v6907_v26 = vand.u32 4294901760, %v3736_v14  ;;  %v3782_v42 = vld [vmem:[%s7915_s2 + $0x178] sm:$0xff] }
  0xeb   :  { %v4203_v48 = vand.u32 4294901760, %v4202_v11  ;;  %8140 = vst [vmem:[#allocation25_spill] sm:$0xff] %v6893_v4  ;;  %8141 = vst [vmem:[#allocation26_spill] sm:$0xff] %v6895_v55  ;;  %v5666_v11 = vpop.f32.mrf.mxu0  ;;  %v6905_v12 = vsub.f32 %v3738_v63, %v6886_v46  ;;  %3877 = vmatprep.subr.mxu0 %v6886_v46  ;;  %v7984_v15 = vand.u32 4294901760, %v6893_v4  ;;  %v6932_v39 = vand.u32 4294901760, %v3782_v42 }
  0xec   :  { %v4209_v43 = vand.u32 4294901760, %v4208_v45  ;;  %v4220_v0 = vsub.f32 %v6869_v35, %v8142_v2  ;;  %8144 = vst [vmem:[#allocation28_spill] sm:$0xff] %v6907_v26  ;;  %v4215_v38 = vand.u32 4294901760, %v4214_v60  ;;  %v3781_v45 = vld [vmem:[%s7915_s2 + $0x170] sm:$0xff]  ;;  %3879 = vmatpush1.msra.mxu0 %v6895_v55  ;;  %v5676_v2 = vpop.f32.mrf.mxu1  ;;  %v6923_v46 = vsub.f32 %v3736_v14, %v6907_v26 }
  0xed   :  { %4204 = vmatpush1.msra.mxu1 %v4203_v48  ;;  %8143 = vst [vmem:[#allocation27_spill] sm:$0xff] %v6905_v12  ;;  %v6915_v48 = vsub.f32 %v3737_v33, %v6895_v55  ;;  %v745_v63 = vpop.f32.mrf.mxu0  ;;  %v7987_v47 = vand.u32 4294901760, %v6905_v12  ;;  %v6925_v60 = vand.u32 4294901760, %v3735_v50  ;;  %3881 = vmatprep.subr.mxu0 %v6907_v26  ;;  %v843_v33 = vadd.f32 %v5673_v32, %v5663_v27 }
  0xee   :  { %4210 = vmatprep.subr.mxu1 %v4209_v43  ;;  %v4221_v35 = vand.u32 4294901760, %v4220_v0  ;;  %8146 = vst [vmem:[#allocation30_spill] sm:$0xff] %v6923_v46  ;;  %v4226_v5 = vsub.f32 %v6893_v4, %v7984_v15  ;;  %8148 = vst [vmem:[#allocation32_spill] sm:$0xff] %v6932_v39  ;;  %v848_v0 = vpop.f32.mrf.mxu1  ;;  %v837_v32 = vadd.f32 %v836_v19, %v725_v25  ;;  %v8152_v26 = vand.u32 4294901760, %v6923_v46  ;;  %v3779_v19 = vld [vmem:[%s7915_s2 + $0x160] sm:$0xff] }
  0xef   :  { %8145 = vst [vmem:[#allocation29_spill] sm:$0xff] %v6915_v48  ;;  %8147 = vst [vmem:[#allocation31_spill] sm:$0xff] %v6925_v60  ;;  %4216 = vmatpush1.msra.mxu1 %v4215_v38  ;;  %v5683_v43 = vpop.f32.mrf.mxu0  ;;  %v4232_v14 = vsub.f32 %v6905_v12, %v7987_v47  ;;  %v6939_v27 = vsub.f32 %v3735_v50, %v6925_v60  ;;  %v6941_v38 = vand.u32 4294901760, %v3781_v45  ;;  %3883 = vmatpush1.msra.mxu0 %v6925_v60  ;;  %v3780_v47 = vld [vmem:[%s7915_s2 + $0x168] sm:$0xff] }
  0xf0   :  { %4222 = vmatprep.subr.mxu1 %v4221_v35  ;;  %v855_v15 = vadd.f32 %v5676_v2, %v5666_v11  ;;  %v4227_v55 = vand.u32 4294901760, %v4226_v5  ;;  %v8151_v4 = vand.u32 4294901760, %v6915_v48  ;;  %3901 = vmatprep.subr.mxu0 %v6932_v39  ;;  %v5693_v50 = vpop.f32.mrf.mxu1  ;;  %v4244_v60 = vsub.f32 %v6923_v46, %v8152_v26  ;;  %v3778_v26 = vld [vmem:[%s7915_s2 + $0x158] sm:$0xff] }
  0xf1   :  { %8149 = vst [vmem:[#allocation33_spill] sm:$0xff] %v6939_v27  ;;  %8150 = vst [vmem:[#allocation34_spill] sm:$0xff] %v6941_v38  ;;  %v930_v49 = vpop.f32.mrf.mxu0  ;;  %v4233_v12 = vand.u32 4294901760, %v4232_v14  ;;  %v6956_v5 = vsub.f32 %v3782_v42, %v6932_v39  ;;  %3903 = vmatpush2.msra.mxu0 %v6941_v38  ;;  %v938_v11 = vadd.f32 %v5683_v43, %v843_v33  ;;  %v6972_v33 = vand.u32 4294901760, %v3780_v47 }
  0xf2   :  { %v4238_v35 = vsub.f32 %v6915_v48, %v8151_v4  ;;  %v849_v4 = vadd.f32 %v848_v0, %v745_v63  ;;  %4228 = vmatpush1.msra.mxu1 %v4227_v55  ;;  %v6963_v14 = vsub.f32 %v3781_v45, %v6941_v38  ;;  %v1026_v42 = vpop.f32.mrf.mxu1  ;;  %v4245_v46 = vand.u32 4294901760, %v4244_v60 }
  0xf3   :  { %8153 = vst [vmem:[#allocation35_spill] sm:$0xff] %v6956_v5  ;;  %v5686_v25 = vpop.f32.mrf.mxu0  ;;  %4234 = vmatprep.subr.mxu1 %v4233_v12  ;;  %v8155_v48 = vand.u32 4294901760, %v6939_v27  ;;  %v8002_v63 = vand.u32 4294901760, %v6956_v5  ;;  %8156 = vst [vmem:[#allocation37_spill] sm:$0xff] %v6972_v33  ;;  %v931_v55 = vadd.f32 %v930_v49, %v837_v32  ;;  %v6975_v43 = vand.u32 4294901760, %v3779_v19  ;;  %v3777_v12 = vld [vmem:[%s7915_s2 + $0x150] sm:$0xff]  ;;  %3905 = vmatprep.subr.mxu0 %v6972_v33 }
  0xf4   :  { %v4239_v2 = vand.u32 4294901760, %v4238_v35  ;;  %8154 = vst [vmem:[#allocation36_spill] sm:$0xff] %v6963_v14  ;;  %v952_v0 = vadd.f32 %v5686_v25, %v855_v15  ;;  %v8007_v45 = vand.u32 4294901760, %v6963_v14  ;;  %v5696_v35 = vpop.f32.mrf.mxu1  ;;  %v6984_v49 = vsub.f32 %v3780_v47, %v6972_v33 }
  0xf5   :  { %v4250_v39 = vsub.f32 %v6939_v27, %v8155_v48  ;;  %8157 = vst [vmem:[#allocation38_spill] sm:$0xff] %v6975_v43  ;;  %v944_v60 = vpop.f32.mrf.mxu0  ;;  %v4272_v48 = vsub.f32 %v6956_v5, %v8002_v63  ;;  %v6986_v15 = vand.u32 4294901760, %v3778_v26  ;;  %v1035_v32 = vadd.f32 %v5693_v50, %v938_v11  ;;  %3907 = vmatpush2.msra.mxu0 %v6975_v43 }
  0xf6   :  { %4240 = vmatpush1.msra.mxu1 %v4239_v2  ;;  %8158 = vst [vmem:[#allocation39_spill] sm:$0xff] %v6984_v49  ;;  %v945_v25 = vadd.f32 %v944_v60, %v849_v4  ;;  %v4278_v2 = vsub.f32 %v6963_v14, %v8007_v45  ;;  %v7000_v50 = vand.u32 4294901760, %v3777_v12  ;;  %v3776_v4 = vld [vmem:[%s7915_s2 + $0x148] sm:$0xff]  ;;  %v8163_v14 = vand.u32 4294901760, %v6984_v49 }
  0xf7   :  { %4246 = vmatprep.subr.mxu1 %v4245_v46  ;;  %v4251_v38 = vand.u32 4294901760, %v4250_v39  ;;  %8159 = vst [vmem:[#allocation40_spill] sm:$0xff] %v6986_v15  ;;  %v6993_v46 = vsub.f32 %v3779_v19, %v6975_v43  ;;  %v1042_v39 = vpop.f32.mrf.mxu1  ;;  %v5703_v63 = vpop.f32.mrf.mxu0  ;;  %v4273_v47 = vand.u32 4294901760, %v4272_v48  ;;  %v6998_v27 = vsub.f32 %v3778_v26, %v6986_v15  ;;  %3909 = vmatprep.subr.mxu0 %v6986_v15 }
  0xf8   :  { %8162 = vst [vmem:[#allocation43_spill] sm:$0xff] %v7000_v50  ;;  %v1027_v19 = vadd.f32 %v1026_v42, %v931_v55  ;;  %v1134_v11 = vadd.f32 %v5703_v63, %v1035_v32  ;;  %v4279_v60 = vand.u32 4294901760, %v4278_v2  ;;  %v1051_v48 = vadd.f32 %v5696_v35, %v952_v0  ;;  %3911 = vmatpush2.msra.mxu0 %v7000_v50 }
  0xf9   :  { %8160 = vst [vmem:[#allocation41_spill] sm:$0xff] %v6993_v46  ;;  %4252 = vmatpush1.msra.mxu1 %v4251_v38  ;;  %8161 = vst [vmem:[#allocation42_spill] sm:$0xff] %v6998_v27  ;;  %v8014_v45 = vand.u32 4294901760, %v6993_v46  ;;  %v3775_v38 = vld [vmem:[%s7915_s2 + $0x140] sm:$0xff]  ;;  %v1127_v26 = vpop.f32.mrf.mxu0  ;;  %v5713_v5 = vpop.f32.mrf.mxu1  ;;  %v4284_v43 = vsub.f32 %v6984_v49, %v8163_v14  ;;  %v8017_v33 = vand.u32 4294901760, %v6998_v27  ;;  %v7015_v42 = vsub.f32 %v3777_v12, %v7000_v50  ;;  %v3774_v14 = vld [vmem:[%s7915_s2 + $0x138] sm:$0xff] }
  0xfa   :  { %4274 = vmatprep.subr.mxu1 %v4273_v47  ;;  %v1043_v63 = vadd.f32 %v1042_v39, %v945_v25  ;;  %v1128_v55 = vadd.f32 %v1127_v26, %v1027_v19  ;;  %v7021_v35 = vand.u32 4294901760, %v3776_v4  ;;  %v7030_v39 = vand.u32 4294901760, %v3775_v38  ;;  %v3773_v19 = vld [vmem:[%s7915_s2 + $0x130] sm:$0xff] }
  0xfb   :  { %8164 = vst [vmem:[#allocation44_spill] sm:$0xff] %v7015_v42  ;;  %4280 = vmatpush2.msra.mxu1 %v4279_v60  ;;  %v4290_v0 = vsub.f32 %v6993_v46, %v8014_v45  ;;  %v5706_v32 = vpop.f32.mrf.mxu0  ;;  %v1218_v2 = vpop.f32.mrf.mxu1  ;;  %v4285_v47 = vand.u32 4294901760, %v4284_v43  ;;  %v4296_v12 = vsub.f32 %v6998_v27, %v8017_v33  ;;  %v1225_v60 = vadd.f32 %v5713_v5, %v1134_v11  ;;  %v3772_v43 = vld [vmem:[%s7915_s2 + $0x128] sm:$0xff] }
  0xfc   :  { %8165 = vst [vmem:[#allocation45_spill] sm:$0xff] %v7021_v35  ;;  %8166 = vst [vmem:[#allocation46_spill] sm:$0xff] %v7030_v39  ;;  %v1219_v26 = vadd.f32 %v1218_v2, %v1128_v55  ;;  %v7036_v46 = vsub.f32 %v3776_v4, %v7021_v35  ;;  %3913 = vmatprep.subr.mxu0 %v7021_v35  ;;  %v8168_v49 = vand.u32 4294901760, %v7015_v42  ;;  %v7048_v11 = vand.u32 4294901760, %v3774_v14  ;;  %v3771_v4 = vld [vmem:[%s7915_s2 + $0x120] sm:$0xff] }
  0xfd   :  { %v4291_v45 = vand.u32 4294901760, %v4290_v0  ;;  %v1139_v33 = vpop.f32.mrf.mxu0  ;;  %v5716_v25 = vpop.f32.mrf.mxu1  ;;  %4286 = vmatprep.subr.mxu1 %v4285_v47  ;;  %v4297_v27 = vand.u32 4294901760, %v4296_v12  ;;  %v7046_v5 = vsub.f32 %v3775_v38, %v7030_v39  ;;  %3915 = vmatpush2.msra.mxu0 %v7030_v39  ;;  %v1146_v55 = vadd.f32 %v5706_v32, %v1051_v48  ;;  %v3770_v38 = vld [vmem:[%s7915_s2 + $0x118] sm:$0xff] }
  0xfe   :  { %8167 = vst [vmem:[#allocation47_spill] sm:$0xff] %v7036_v46  ;;  %v4302_v50 = vsub.f32 %v7015_v42, %v8168_v49  ;;  %8170 = vst [vmem:[#allocation49_spill] sm:$0xff] %v7048_v11  ;;  %v1140_v0 = vadd.f32 %v1139_v33, %v1043_v63  ;;  %1244 = vrot.lane.b32.xlu0 %v1219_v26, %s5958_s23  ;;  %v8028_v2 = vand.u32 4294901760, %v7036_v46  ;;  %v7056_v49 = vand.u32 4294901760, %v3773_v19 }
  0xff   :  { %8169 = vst [vmem:[#allocation48_spill] sm:$0xff] %v7046_v5  ;;  %4292 = vmatpush2.msra.mxu1 %v4291_v45  ;;  %v1230_v47 = vpop.f32.mrf.mxu1  ;;  %v5723_v12 = vpop.f32.mrf.mxu0  ;;  %v8029_v39 = vand.u32 4294901760, %v7046_v5  ;;  %v7063_v33 = vsub.f32 %v3774_v14, %v7048_v11  ;;  %v7065_v48 = vand.u32 4294901760, %v3772_v43  ;;  %3917 = vmatprep.subr.mxu0 %v7048_v11  ;;  %v7074_v26 = vand.u32 4294901760, %v3771_v4 }
 0x100   :  { %8171 = vst [vmem:[#allocation50_spill] sm:$0xff] %v7056_v49  ;;  %4298 = vmatprep.subr.mxu1 %v4297_v27  ;;  %v4303_v42 = vand.u32 4294901760, %v4302_v50  ;;  %v1231_v45 = vadd.f32 %v1230_v47, %v1140_v0  ;;  %v4308_v63 = vsub.f32 %v7036_v46, %v8028_v2  ;;  %v7072_v32 = vsub.f32 %v3773_v19, %v7056_v49  ;;  %v3769_v19 = vld [vmem:[%s7915_s2 + $0x110] sm:$0xff] }
 0x101   :  { %8172 = vst [vmem:[#allocation51_spill] sm:$0xff] %v7063_v33  ;;  %8173 = vst [vmem:[#allocation52_spill] sm:$0xff] %v7065_v48  ;;  %3919 = vmatpush2.msra.mxu0 %v7056_v49  ;;  %v1353_v27 = vpop.f32.mrf.mxu0  ;;  %v5733_v50 = vpop.f32.mrf.mxu1  ;;  %v4314_v14 = vsub.f32 %v7046_v5, %v8029_v39  ;;  %v7082_v47 = vsub.f32 %v3772_v43, %v7065_v48  ;;  %v7084_v2 = vand.u32 4294901760, %v3770_v38  ;;  %v3768_v43 = vld [vmem:[%s7915_s2 + $0x108] sm:$0xff]  ;;  %v8179_v11 = vand.u32 4294901760, %v7063_v33 }
 0x102   :  { %8174 = vst [vmem:[#allocation53_spill] sm:$0xff] %v7072_v32  ;;  %8175 = vst [vmem:[#allocation54_spill] sm:$0xff] %v7074_v26  ;;  %4304 = vmatpush2.msra.mxu1 %v4303_v42  ;;  %3921 = vmatprep.subr.mxu0 %v7065_v48  ;;  %v4309_v42 = vand.u32 4294901760, %v4308_v63  ;;  %v8044_v39 = vand.u32 4294901760, %v7072_v32  ;;  %v7094_v0 = vsub.f32 %v3771_v4, %v7074_v26 }
 0x103   :  { %8176 = vst [vmem:[#allocation55_spill] sm:$0xff] %v7082_v47  ;;  %8177 = vst [vmem:[#allocation56_spill] sm:$0xff] %v7084_v2  ;;  %1246 = vrot.lane.b32.xlu0 %v1225_v60, %s5958_s23  ;;  %1248 = vrot.lane.b32.xlu1 %v1231_v45, %s5958_s23  ;;  %v5726_v5 = vpop.f32.mrf.mxu0  ;;  %v1464_v46 = vpop.f32.mrf.mxu1  ;;  %v4315_v49 = vand.u32 4294901760, %v4314_v14  ;;  %v4320_v48 = vsub.f32 %v7063_v33, %v8179_v11  ;;  %v7104_v45 = vsub.f32 %v3770_v38, %v7084_v2  ;;  %v3767_v11 = vld [vmem:[%s7915_s2 + $0x100] sm:$0xff] }
 0x104   :  { %8178 = vst [vmem:[#allocation57_spill] sm:$0xff] %v7094_v0  ;;  %3923 = vmatpush2.msra.mxu0 %v7074_v26  ;;  %v1237_v4 = vadd.f32 %v5716_v25, %v1146_v55  ;;  %4310 = vmatprep.subr.mxu1 %v4309_v42  ;;  %v4326_v63 = vsub.f32 %v7072_v32, %v8044_v39  ;;  %v7111_v14 = vand.u32 4294901760, %v3769_v19  ;;  %v8182_v25 = vand.u32 4294901760, %v7082_v47 }
 0x105   :  { %8180 = vst [vmem:[#allocation58_spill] sm:$0xff] %v7104_v45  ;;  %3925 = vmatprep.subr.mxu0 %v7084_v2  ;;  %v1373_v38 = vpop.f32.mrf.mxu0  ;;  %v5736_v60 = vpop.f32.mrf.mxu1  ;;  %4316 = vmatpush2.msra.mxu1 %v4315_v49  ;;  %v4321_v33 = vand.u32 4294901760, %v4320_v48  ;;  %v8059_v42 = vand.u32 4294901760, %v7104_v45  ;;  %v7121_v39 = vand.u32 4294901760, %v3768_v43  ;;  %v8184_v32 = vand.u32 4294901760, %v7094_v0 }
 0x106   :  { %8181 = vst [vmem:[#allocation59_spill] sm:$0xff] %v7111_v14  ;;  %v4332_v55 = vsub.f32 %v7082_v47, %v8182_v25  ;;  %v4327_v35 = vand.u32 4294901760, %v4326_v63  ;;  %v7128_v2 = vsub.f32 %v3769_v19, %v7111_v14  ;;  %3927 = vmatpush2.msra.mxu0 %v7111_v14  ;;  %v7137_v63 = vand.u32 4294901760, %v3767_v11 }
 0x107   :  { %8183 = vst [vmem:[#allocation60_spill] sm:$0xff] %v7121_v39  ;;  %1250 = vrot.lane.b32.xlu1 %v1237_v4, %s5958_s23  ;;  %v4338_v26 = vsub.f32 %v7094_v0, %v8184_v32  ;;  %v1476_v49 = vpop.f32.mrf.mxu1  ;;  %v5743_v48 = vpop.f32.mrf.mxu0  ;;  %4322 = vmatprep.subr.mxu1 %v4321_v33  ;;  %v4344_v47 = vsub.f32 %v7104_v45, %v8059_v42 }
 0x108   :  { %8185 = vst [vmem:[#allocation61_spill] sm:$0xff] %v7128_v2  ;;  %v4333_v25 = vand.u32 4294901760, %v4332_v55  ;;  %v7135_v4 = vsub.f32 %v3768_v43, %v7121_v39  ;;  %8187 = vst [vmem:[#allocation63_spill] sm:$0xff] %v7137_v63  ;;  %3929 = vmatprep.subr.mxu0 %v7121_v39  ;;  %v1471_v32 = vadd.f32 %v5733_v50, %v5723_v12  ;;  %4328 = vmatpush2.msra.mxu1 %v4327_v35 }
 0x109   :  { %v4339_v19 = vand.u32 4294901760, %v4338_v26  ;;  %v8062_v0 = vand.u32 4294901760, %v7128_v2  ;;  %v1558_v14 = vpop.f32.mrf.mxu0  ;;  %v5753_v15 = vpop.f32.mrf.mxu1  ;;  %v4345_v33 = vand.u32 4294901760, %v4344_v47  ;;  %v7143_v42 = vsub.f32 %v3767_v11, %v7137_v63  ;;  %3931 = vmatpush2.msra.mxu0 %v7137_v63 }
 0x10a   :  { %8186 = vst [vmem:[#allocation62_spill] sm:$0xff] %v7135_v4  ;;  %4334 = vmatprep.subr.mxu1 %v4333_v25  ;;  %v8068_v55 = vand.u32 4294901760, %v7135_v4  ;;  %v1465_v43 = vadd.f32 %v1464_v46, %v1353_v27  ;;  %v1566_v45 = vadd.f32 %v5743_v48, %v1471_v32  ;;  %4432 = vmatprep.subr.mxu0 %v6538_v18 }
 0x10b   :  { %8188 = vst [vmem:[#allocation64_spill] sm:$0xff] %v7143_v42  ;;  %4340 = vmatpush2.msra.mxu1 %v4339_v19  ;;  %v4350_v35 = vsub.f32 %v7128_v2, %v8062_v0  ;;  %v5746_v12 = vpop.f32.mrf.mxu0  ;;  %v1654_v26 = vpop.f32.mrf.mxu1  ;;  %v8073_v47 = vand.u32 4294901760, %v7143_v42  ;;  %v1483_v11 = vadd.f32 %v5736_v60, %v5726_v5  ;;  %v1477_v0 = vadd.f32 %v1476_v49, %v1373_v38 }
 0x10c   :  { %4346 = vmatprep.subr.mxu1 %v4345_v33  ;;  %v4356_v50 = vsub.f32 %v7135_v4, %v8068_v55  ;;  %v1559_v25 = vadd.f32 %v1558_v14, %v1465_v43  ;;  %v1663_v18 = vadd.f32 %v5753_v15, %v1566_v45 }
 0x10d   :  { %v4351_v46 = vand.u32 4294901760, %v4350_v35  ;;  %v1572_v27 = vpop.f32.mrf.mxu0  ;;  %v5756_v48 = vpop.f32.mrf.mxu1  ;;  %v4362_v19 = vsub.f32 %v7143_v42, %v8073_v47  ;;  %v1580_v2 = vadd.f32 %v5746_v12, %v1483_v11 }
 0x10e   :  { %v4357_v32 = vand.u32 4294901760, %v4356_v50  ;;  %v1655_v4 = vadd.f32 %v1654_v26, %v1559_v25  ;;  %v1573_v39 = vadd.f32 %v1572_v27, %v1477_v0 }
 0x10f   :  { %4352 = vmatpush2.msra.mxu1 %v4351_v46  ;;  %v1670_v33 = vpop.f32.mrf.mxu1  ;;  %v5763_v63 = vpop.f32.mrf.mxu0  ;;  %v4363_v55 = vand.u32 4294901760, %v4362_v19  ;;  %v1679_v43 = vadd.f32 %v5756_v48, %v1580_v2 }
 0x110   :  { %4358 = vmatprep.subr.mxu1 %v4357_v32  ;;  %v1762_v5 = vadd.f32 %v5763_v63, %v1663_v18  ;;  %v1671_v15 = vadd.f32 %v1670_v33, %v1573_v39 }
 0x111   :  { %v1755_v60 = vpop.f32.mrf.mxu0  ;;  %v5773_v14 = vpop.f32.mrf.mxu1  ;;  %4364 = vmatpush2.msra.mxu1 %v4363_v55 }
 0x112   :  { %v1756_v35 = vadd.f32 %v1755_v60, %v1655_v4  ;;  %v1853_v50 = vadd.f32 %v5773_v14, %v1762_v5  ;;  %4672 = vmatprep.subr.mxu1 %v6527_v9 }
 0x113   :  { %v5766_v47 = vpop.f32.mrf.mxu0  ;;  %v1846_v38 = vpop.f32.mrf.mxu1 }
 0x114   :  { %1869 = vst.msk [vmem:[#allocation2 + $0x18] sm:$0xff] %vm628_vm1, %v1853_v50  ;;  %v1774_v45 = vadd.f32 %v5766_v47, %v1679_v43  ;;  %v1847_v49 = vadd.f32 %v1846_v38, %v1756_v35 }
 0x115   :  { %v1767_v12 = vpop.f32.mrf.mxu0  ;;  %v5776_v11 = vpop.f32.mrf.mxu1 }
 0x116   :  { %1868 = vst.msk [vmem:[#allocation2 + $0x8] sm:$0xff] %vm628_vm1, %v1847_v49  ;;  %v1768_v18 = vadd.f32 %v1767_v12, %v1671_v15  ;;  %v1865_v0 = vadd.f32 %v5776_v11, %v1774_v45 }
 0x117   :  { %v1858_v63 = vpop.f32.mrf.mxu1  ;;  %v5783_v55 = vpop.f32.mrf.mxu0 }
 0x118   :  { %1871 = vst.msk [vmem:[#allocation2 + $0x38] sm:$0xff] %vm628_vm1, %v1865_v0  ;;  %v1859_v2 = vadd.f32 %v1858_v63, %v1768_v18 }
 0x119   :  { %v1964_v4 = vpop.f32.mrf.mxu0  ;;  %v5793_v26 = vpop.f32.mrf.mxu1 }
 0x11a   :  { %1870 = vst.msk [vmem:[#allocation2 + $0x28] sm:$0xff] %vm628_vm1, %v1859_v2  ;;  %v2082_v5 = vadd.f32 %v5793_v26, %v5783_v55 }
 0x11b   :  { %v5786_v39 = vpop.f32.mrf.mxu0  ;;  %v2075_v25 = vpop.f32.mrf.mxu1 }
 0x11c   :  { %v2076_v35 = vadd.f32 %v2075_v25, %v1964_v4 }
 0x11d   :  { %v1984_v46 = vpop.f32.mrf.mxu0  ;;  %v5796_v47 = vpop.f32.mrf.mxu1  ;;  %v3720_v27 = vld [vmem:[#allocation2 + $0x8] sm:$0xff] }
 0x11e   :  { %v3797_v48 = vsel %vm628_vm1, %v3720_v27, 0  ;;  %v2094_v49 = vadd.f32 %v5796_v47, %v5786_v39 }
 0x11f   :  { %v2087_v32 = vpop.f32.mrf.mxu1  ;;  %v5803_v19 = vpop.f32.mrf.mxu0  ;;  %v7163_v33 = vand.u32 4294901760, %v3797_v48 }
 0x120   :  { %v2177_v50 = vadd.f32 %v5803_v19, %v2082_v5  ;;  %v2088_v63 = vadd.f32 %v2087_v32, %v1984_v46 }
 0x121   :  { %8189 = vst [vmem:[#allocation65_spill] sm:$0xff] %v7163_v33  ;;  %v2169_v60 = vpop.f32.mrf.mxu0  ;;  %v5813_v14 = vpop.f32.mrf.mxu1  ;;  %4366 = vmatprep.mubr.f32.mxu1 %v7163_v33  ;;  %v7167_v43 = vsub.f32 %v3797_v48, %v7163_v33 }
 0x122   :  { %v2170_v12 = vadd.f32 %v2169_v60, %v2076_v35  ;;  %v2274_v55 = vadd.f32 %v5813_v14, %v2177_v50 }
 0x123   :  { %8190 = vst [vmem:[#allocation66_spill] sm:$0xff] %v7167_v43  ;;  %v5806_v38 = vpop.f32.mrf.mxu0  ;;  %v2265_v15 = vpop.f32.mrf.mxu1  ;;  %v8079_v45 = vand.u32 4294901760, %v7167_v43 }
 0x124   :  { %v2191_v2 = vadd.f32 %v5806_v38, %v2094_v49  ;;  %v2266_v4 = vadd.f32 %v2265_v15, %v2170_v12 }
 0x125   :  { %v2183_v11 = vpop.f32.mrf.mxu0  ;;  %v5816_v18 = vpop.f32.mrf.mxu1  ;;  %v3935_v0 = vsub.f32 %v7167_v43, %v8079_v45 }
 0x126   :  { %v2184_v25 = vadd.f32 %v2183_v11, %v2088_v63  ;;  %v2290_v39 = vadd.f32 %v5816_v18, %v2191_v2 }
 0x127   :  { %v2281_v26 = vpop.f32.mrf.mxu1  ;;  %v5823_v27 = vpop.f32.mrf.mxu0  ;;  %v3936_v48 = vand.u32 4294901760, %v3935_v0 }
 0x128   :  { %v2373_v19 = vadd.f32 %v5823_v27, %v2274_v55  ;;  %v2282_v9 = vadd.f32 %v2281_v26, %v2184_v25 }
 0x129   :  { %v2366_v5 = vpop.f32.mrf.mxu0  ;;  %v5833_v33 = vpop.f32.mrf.mxu1  ;;  %3937 = vmatprep.mubr.f32.mxu0 %v3936_v48 }
 0x12a   :  { %v2367_v47 = vadd.f32 %v2366_v5, %v2266_v4  ;;  %v2464_v60 = vadd.f32 %v5833_v33, %v2373_v19 }
 0x12b   :  { %v5826_v35 = vpop.f32.mrf.mxu0  ;;  %v2457_v42 = vpop.f32.mrf.mxu1 }
 0x12c   :  { %2480 = vst.msk [vmem:[#allocation2 + $0x50] sm:$0xff] %vm628_vm1, %v2464_v60  ;;  %v2385_v46 = vadd.f32 %v5826_v35, %v2290_v39  ;;  %v2458_v32 = vadd.f32 %v2457_v42, %v2367_v47 }
 0x12d   :  { %v2378_v14 = vpop.f32.mrf.mxu0  ;;  %v5836_v50 = vpop.f32.mrf.mxu1 }
 0x12e   :  { %2479 = vst.msk [vmem:[#allocation2 + $0x40] sm:$0xff] %vm628_vm1, %v2458_v32  ;;  %v2379_v38 = vadd.f32 %v2378_v14, %v2282_v9  ;;  %v2476_v15 = vadd.f32 %v5836_v50, %v2385_v46 }
 0x12f   :  { %v2469_v49 = vpop.f32.mrf.mxu1  ;;  %v5843_v12 = vpop.f32.mrf.mxu0 }
 0x130   :  { %2482 = vst.msk [vmem:[#allocation2 + $0x70] sm:$0xff] %vm628_vm1, %v2476_v15  ;;  %v2470_v11 = vadd.f32 %v2469_v49, %v2379_v38 }
 0x131   :  { %v2574_v18 = vpop.f32.mrf.mxu0  ;;  %v5853_v33 = vpop.f32.mrf.mxu1 }
 0x132   :  { %2481 = vst.msk [vmem:[#allocation2 + $0x60] sm:$0xff] %vm628_vm1, %v2470_v11  ;;  %v2692_v27 = vadd.f32 %v5853_v33, %v5843_v12 }
 0x133   :  { %v5846_v0 = vpop.f32.mrf.mxu0  ;;  %v2685_v63 = vpop.f32.mrf.mxu1 }
 0x134   :  { %v2686_v9 = vadd.f32 %v2685_v63, %v2574_v18 }
 0x135   :  { %v2594_v55 = vpop.f32.mrf.mxu0  ;;  %v5856_v2 = vpop.f32.mrf.mxu1 }
 0x136   :  { %v2704_v39 = vadd.f32 %v5856_v2, %v5846_v0 }
 0x137   :  { %v2697_v42 = vpop.f32.mrf.mxu1  ;;  %v5863_v26 = vpop.f32.mrf.mxu0 }
 0x138   :  { %v2787_v25 = vadd.f32 %v5863_v26, %v2692_v27  ;;  %v2698_v46 = vadd.f32 %v2697_v42, %v2594_v55 }
 0x139   :  { %v2779_v48 = vpop.f32.mrf.mxu0  ;;  %v5873_v4 = vpop.f32.mrf.mxu1 }
 0x13a   :  { %v2780_v47 = vadd.f32 %v2779_v48, %v2686_v9  ;;  %v2884_v32 = vadd.f32 %v5873_v4, %v2787_v25 }
 0x13b   :  { %v5866_v19 = vpop.f32.mrf.mxu0  ;;  %v2875_v5 = vpop.f32.mrf.mxu1 }
 0x13c   :  { %v2801_v14 = vadd.f32 %v5866_v19, %v2704_v39  ;;  %v2876_v15 = vadd.f32 %v2875_v5, %v2780_v47 }
 0x13d   :  { %v2793_v60 = vpop.f32.mrf.mxu0  ;;  %v5876_v35 = vpop.f32.mrf.mxu1 }
 0x13e   :  { %v2794_v49 = vadd.f32 %v2793_v60, %v2698_v46  ;;  %v2900_v33 = vadd.f32 %v5876_v35, %v2801_v14 }
 0x13f   :  { %v2891_v50 = vpop.f32.mrf.mxu1  ;;  %v5883_v38 = vpop.f32.mrf.mxu0 }
 0x140   :  { %v2983_v11 = vadd.f32 %v5883_v38, %v2884_v32  ;;  %v2892_v27 = vadd.f32 %v2891_v50, %v2794_v49 }
 0x141   :  { %v2976_v45 = vpop.f32.mrf.mxu0  ;;  %v5893_v12 = vpop.f32.mrf.mxu1 }
 0x142   :  { %v2977_v43 = vadd.f32 %v2976_v45, %v2876_v15  ;;  %v3074_v18 = vadd.f32 %v5893_v12, %v2983_v11 }
 0x143   :  { %v5886_v63 = vpop.f32.mrf.mxu0  ;;  %v3067_v26 = vpop.f32.mrf.mxu1 }
 0x144   :  { %v2995_v0 = vadd.f32 %v5886_v63, %v2900_v33  ;;  %v3068_v2 = vadd.f32 %v3067_v26, %v2977_v43  ;;  %3095 = vrot.lane.b32.xlu1 %v3074_v18, %s5958_s23 }
 0x145   :  { %v2988_v55 = vpop.f32.mrf.mxu0  ;;  %v5896_v42 = vpop.f32.mrf.mxu1 }
 0x146   :  { %v2989_v48 = vadd.f32 %v2988_v55, %v2892_v27  ;;  %v3086_v4 = vadd.f32 %v5896_v42, %v2995_v0  ;;  %3093 = vrot.lane.b32.xlu0 %v3068_v2, %s5958_s23 }
 0x147   :  { %v3079_v9 = vpop.f32.mrf.mxu1  ;;  %v5903_v25 = vpop.f32.mrf.mxu0 }
 0x148   :  { %v3080_v19 = vadd.f32 %v3079_v9, %v2989_v48  ;;  %3099 = vrot.lane.b32.xlu1 %v3086_v4, %s5958_s23 }
 0x149   :  { %v3200_v45 = vpop.f32.mrf.mxu0  ;;  %v5913_v5 = vpop.f32.mrf.mxu1 }
 0x14a   :  { %3097 = vrot.lane.b32.xlu0 %v3080_v19, %s5958_s23  ;;  %v3318_v43 = vadd.f32 %v5913_v5, %v5903_v25 }
 0x14b   :  { %v5906_v39 = vpop.f32.mrf.mxu0  ;;  %v3311_v47 = vpop.f32.mrf.mxu1 }
 0x14c   :  { %v3312_v46 = vadd.f32 %v3311_v47, %v3200_v45 }
 0x14d   :  { %v3220_v60 = vpop.f32.mrf.mxu0  ;;  %v5916_v35 = vpop.f32.mrf.mxu1 }
 0x14e   :  { %v3330_v50 = vadd.f32 %v5916_v35, %v5906_v39 }
 0x14f   :  { %v3323_v32 = vpop.f32.mrf.mxu1  ;;  %v5923_v14 = vpop.f32.mrf.mxu0 }
 0x150   :  { %v3413_v38 = vadd.f32 %v5923_v14, %v3318_v43  ;;  %v3324_v11 = vadd.f32 %v3323_v32, %v3220_v60 }
 0x151   :  { %v3405_v15 = vpop.f32.mrf.mxu0  ;;  %v5933_v49 = vpop.f32.mrf.mxu1 }
 0x152   :  { %v3406_v12 = vadd.f32 %v3405_v15, %v3312_v46  ;;  %v3510_v63 = vadd.f32 %v5933_v49, %v3413_v38  ;;  %v3722_v49 = vld [vmem:[#allocation2 + $0x18] sm:$0xff] }
 0x153   :  { %v5926_v33 = vpop.f32.mrf.mxu0  ;;  %v3501_v18 = vpop.f32.mrf.mxu1 }
 0x154   :  { %v3427_v26 = vadd.f32 %v5926_v33, %v3330_v50  ;;  %v3502_v2 = vadd.f32 %v3501_v18, %v3406_v12  ;;  %v3724_v33 = vld [vmem:[#allocation2 + $0x28] sm:$0xff] }
 0x155   :  { %v3419_v27 = vpop.f32.mrf.mxu0  ;;  %v5936_v0 = vpop.f32.mrf.mxu1 }
 0x156   :  { %v3420_v55 = vadd.f32 %v3419_v27, %v3324_v11  ;;  %v3526_v4 = vadd.f32 %v5936_v0, %v3427_v26  ;;  %v3800_v11 = vsel %vm628_vm1, %v3722_v49, 0  ;;  %v3726_v0 = vld [vmem:[#allocation2 + $0x38] sm:$0xff] }
 0x157   :  { %v3517_v42 = vpop.f32.mrf.mxu1  ;;  %v5943_v48 = vpop.f32.mrf.mxu0  ;;  %v7187_v18 = vand.u32 4294901760, %v3800_v11 }
 0x158   :  { %v3609_v9 = vadd.f32 %v5943_v48, %v3510_v63  ;;  %v3518_v45 = vadd.f32 %v3517_v42, %v3420_v55  ;;  %v3803_v63 = vsel %vm628_vm1, %v3724_v33, 0  ;;  %v3806_v42 = vsel %vm628_vm1, %v3726_v0, 0 }
 0x159   :  { %v3602_v25 = vpop.f32.mrf.mxu0  ;;  %v5953_v19 = vpop.f32.mrf.mxu1  ;;  %8191 = vst [vmem:[#allocation67_spill] sm:$0xff] %v7187_v18  ;;  %v7195_v55 = vsub.f32 %v3800_v11, %v7187_v18 }
 0x15a   :  { %v3603_v5 = vadd.f32 %v3602_v25, %v3502_v2  ;;  %v3700_v39 = vadd.f32 %v5953_v19, %v3609_v9  ;;  %v7192_v2 = vand.u32 4294901760, %v3803_v63  ;;  %v7202_v19 = vand.u32 4294901760, %v3806_v42 }
 0x15b   :  { %v5946_v47 = vpop.f32.mrf.mxu0  ;;  %v3693_v43 = vpop.f32.mrf.mxu1  ;;  %v8088_v25 = vand.u32 4294901760, %v7195_v55 }
 0x15c   :  { %3716 = vst.msk [vmem:[#allocation2 + $0x58] sm:$0xff] %vm628_vm1, %v3700_v39  ;;  %v3621_v60 = vadd.f32 %v5946_v47, %v3526_v4  ;;  %v3694_v35 = vadd.f32 %v3693_v43, %v3603_v5  ;;  %8192 = vst [vmem:[#allocation68_spill] sm:$0xff] %v7192_v2 }
 0x15d   :  { %v3614_v46 = vpop.f32.mrf.mxu0  ;;  %v5956_v32 = vpop.f32.mrf.mxu1  ;;  %8194 = vst [vmem:[#allocation70_spill] sm:$0xff] %v7202_v19 }
 0x15e   :  { %3715 = vst.msk [vmem:[#allocation2 + $0x48] sm:$0xff] %vm628_vm1, %v3694_v35  ;;  %v3615_v14 = vadd.f32 %v3614_v46, %v3518_v45  ;;  %v3712_v50 = vadd.f32 %v5956_v32, %v3621_v60  ;;  %v7205_v45 = vsub.f32 %v3803_v63, %v7192_v2  ;;  %v3951_v46 = vsub.f32 %v7195_v55, %v8088_v25  ;;  %v8210_v25 = vld [vmem:[#allocation23_spill] sm:$0xff] }
 0x15f   :  { %v3705_v38 = vpop.f32.mrf.mxu1 }
 0x160   :  { %3718 = vst.msk [vmem:[#allocation2 + $0x78] sm:$0xff] %vm628_vm1, %v3712_v50  ;;  %v3706_v15 = vadd.f32 %v3705_v38, %v3615_v14  ;;  %v8086_v32 = vand.u32 4294901760, %v7205_v45  ;;  %v7224_v14 = vsub.f32 %v3806_v42, %v7202_v19 }
 0x162   :  { %3717 = vst.msk [vmem:[#allocation2 + $0x68] sm:$0xff] %vm628_vm1, %v3706_v15  ;;  %v3967_v0 = vsub.f32 %v7205_v45, %v8086_v32  ;;  %v8082_v42 = vand.u32 4294901760, %v7224_v14  ;;  %v8207_v32 = vld [vmem:[#allocation9_spill] sm:$0xff] }
 0x165   :  { %v3728_v49 = vld [vmem:[#allocation2 + $0x48] sm:$0xff] }
 0x170   :  { %v1245_v12 = vpop.permute.xlu0 %1244 }
 0x171   :  { %1257 = vst.msk [vmem:[#allocation2] sm:$0xff] %vm1256_vm2, %v1245_v12 }
 0x175   :  { %v1247_v26 = vpop.permute.xlu0 %1246  ;;  %v1249_v27 = vpop.permute.xlu1 %1248 }
 0x176   :  { %1258 = vst.msk [vmem:[#allocation2 + $0x10] sm:$0xff] %vm1256_vm2, %v1247_v26  ;;  %1259 = vst.msk [vmem:[#allocation2 + $0x20] sm:$0xff] %vm1256_vm2, %v1249_v27  ;;  %v3952_v27 = vand.u32 4294901760, %v3951_v46 }
 0x178   :  { %v3719_v4 = vld [vmem:[#allocation2] sm:$0xff] }
 0x179   :  { %v1251_v48 = vpop.permute.xlu1 %1250  ;;  %v7199_v9 = vand.u32 4294901760, %v3719_v4 }
 0x17a   :  { %1260 = vst.msk [vmem:[#allocation2 + $0x30] sm:$0xff] %vm1256_vm2, %v1251_v48  ;;  %v3809_v48 = vsel %vm628_vm1, %v3728_v49, 0 }
 0x17b   :  { %8193 = vst [vmem:[#allocation69_spill] sm:$0xff] %v7199_v9  ;;  %v7208_v5 = vsub.f32 %v3719_v4, %v7199_v9  ;;  %4368 = vmatmul.mubr.f32.vlgmr.msra.gmra.mxu1 %v7199_v9  ;;  %v7265_v49 = vand.u32 4294901760, %v3809_v48  ;;  %v8220_v9 = vld [vmem:[#allocation32_spill] sm:$0xff] }
 0x17c   :  { %4374 = vmatprep.mubr.f32.mxu1 %v7187_v18  ;;  %4674 = vmatpush1.msra.mxu1 %v6532_v16  ;;  %v8219_v18 = vld [vmem:[#allocation19_spill] sm:$0xff] }
 0x17d   :  { %v3721_v39 = vld [vmem:[#allocation2 + $0x10] sm:$0xff]  ;;  %v3723_v47 = vld [vmem:[#allocation2 + $0x20] sm:$0xff]  ;;  %v8089_v60 = vand.u32 4294901760, %v7208_v5  ;;  %4676 = vmatprep.subr.mxu1 %v6540_v20  ;;  %8198 = vst [vmem:[#allocation74_spill] sm:$0xff] %v7265_v49 }
 0x17e   :  { %v7213_v43 = vand.u32 4294901760, %v3721_v39  ;;  %v7216_v35 = vand.u32 4294901760, %v3723_v47  ;;  %4678 = vmatpush1.msra.mxu1 %v6549_v23 }
 0x17f   :  { %v3941_v50 = vsub.f32 %v7208_v5, %v8089_v60  ;;  %4680 = vmatprep.subr.mxu1 %v6559_v30  ;;  %v8211_v60 = vld [vmem:[#allocation11_spill] sm:$0xff] }
 0x180   :  { %8195 = vst [vmem:[#allocation71_spill] sm:$0xff] %v7213_v43  ;;  %8196 = vst [vmem:[#allocation72_spill] sm:$0xff] %v7216_v35  ;;  %4376 = vmatmul.mubr.f32.gmra.mxu1 %v7213_v43  ;;  %v7232_v38 = vsub.f32 %v3721_v39, %v7213_v43  ;;  %v7235_v15 = vsub.f32 %v3723_v47, %v7216_v35  ;;  %v8218_v43 = vld [vmem:[#allocation31_spill] sm:$0xff] }
 0x181   :  { %4382 = vmatprep.mubr.f32.mxu1 %v7192_v2  ;;  %v3725_v11 = vld [vmem:[#allocation2 + $0x30] sm:$0xff]  ;;  %4682 = vmatpush1.msra.mxu1 %v6569_v41  ;;  %v3942_v12 = vand.u32 4294901760, %v3941_v50  ;;  %v8217_v2 = vld [vmem:[#allocation16_spill] sm:$0xff] }
 0x182   :  { %v8087_v33 = vand.u32 4294901760, %v7232_v38  ;;  %v7241_v63 = vand.u32 4294901760, %v3725_v11  ;;  %v8085_v26 = vand.u32 4294901760, %v7235_v15  ;;  %4684 = vmatprep.subr.mxu1 %v6582_v52 }
 0x183   :  { %4686 = vmatpush1.msra.mxu1 %v6595_v57  ;;  %3943 = vmatmul.mubr.f32.vlgmr.msra.gmra.mxu0 %v3942_v12  ;;  %v3968_v12 = vand.u32 4294901760, %v3967_v0  ;;  %v7280_v0 = vsub.f32 %v3809_v48, %v7265_v49 }
 0x184   :  { %8197 = vst [vmem:[#allocation73_spill] sm:$0xff] %v7241_v63  ;;  %4384 = vmatmul.mubr.f32.gmra.mxu1 %v7216_v35  ;;  %v3957_v4 = vsub.f32 %v7232_v38, %v8087_v33  ;;  %v7256_v39 = vsub.f32 %v3725_v11, %v7241_v63  ;;  %3953 = vmatprep.mubr.f32.mxu0 %v3952_v27  ;;  %v8209_v33 = vld [vmem:[#allocation10_spill] sm:$0xff]  ;;  %v8216_v35 = vld [vmem:[#allocation28_spill] sm:$0xff] }
 0x185   :  { %4390 = vmatprep.mubr.f32.mxu1 %v7202_v19  ;;  %v3973_v46 = vsub.f32 %v7235_v15, %v8085_v26  ;;  %4688 = vmatprep.subr.mxu1 %v6627_v44  ;;  %v3983_v11 = vsub.f32 %v7224_v14, %v8082_v42  ;;  %v8206_v26 = vld [vmem:[#allocation18_spill] sm:$0xff] }
 0x186   :  { %v3958_v47 = vand.u32 4294901760, %v3957_v4  ;;  %v8084_v50 = vand.u32 4294901760, %v7256_v39  ;;  %4435 = vmatpush1.msra.mxu0 %v6547_v22  ;;  %4690 = vmatpush1.msra.mxu1 %v6636_v1  ;;  %v8214_v19 = vld [vmem:[#allocation26_spill] sm:$0xff] }
 0x187   :  { %4438 = vmatprep.subr.mxu0 %v6557_v28  ;;  %4692 = vmatprep.subr.mxu1 %v6647_v10  ;;  %v3974_v27 = vand.u32 4294901760, %v3973_v46  ;;  %v3984_v42 = vand.u32 4294901760, %v3983_v11  ;;  %v8083_v46 = vand.u32 4294901760, %v7280_v0  ;;  %v8200_v11 = vld [vmem:[#allocation12_spill] sm:$0xff] }
 0x188   :  { %3959 = vmatmul.mubr.f32.gmra.mxu0 %v3958_v47  ;;  %4392 = vmatmul.mubr.f32.gmra.mxu1 %v7241_v63  ;;  %v3989_v4 = vsub.f32 %v7256_v39, %v8084_v50  ;;  %v8205_v50 = vld [vmem:[#allocation8_spill] sm:$0xff]  ;;  %v8213_v63 = vld [vmem:[#allocation13_spill] sm:$0xff] }
 0x189   :  { %3969 = vmatprep.mubr.f32.mxu0 %v3968_v12  ;;  %4441 = vmatpush1.msra.mxu0 %v6567_v40  ;;  %v8199_v12 = vld [vmem:[#allocation5_spill] sm:$0xff] }
 0x18a   :  { %4694 = vmatpush1.msra.mxu1 %v6659_v13  ;;  %4444 = vmatprep.subr.mxu0 %v6580_v51  ;;  %v3990_v47 = vand.u32 4294901760, %v3989_v4  ;;  %v8202_v4 = vld [vmem:[#allocation14_spill] sm:$0xff] }
 0x18b   :  { %4696 = vmatprep.subr.mxu1 %v6669_v3  ;;  %4447 = vmatpush1.msra.mxu0 %v6593_v56 }
 0x18c   :  { %3975 = vmatmul.mubr.f32.gmra.mxu0 %v3974_v27  ;;  %4698 = vmatpush1.msra.mxu1 %v6676_v21  ;;  %v8201_v27 = vld [vmem:[#allocation6_spill] sm:$0xff] }
 0x18d   :  { %3985 = vmatprep.mubr.f32.mxu0 %v3984_v42  ;;  %4450 = vmatprep.subr.mxu0 %v6606_v6  ;;  %v3999_v42 = vsub.f32 %v7280_v0, %v8083_v46  ;;  %v8204_v46 = vld [vmem:[#allocation17_spill] sm:$0xff] }
 0x18e   :  { %4700 = vmatprep.subr.mxu1 %v6686_v54  ;;  %4453 = vmatpush1.msra.mxu0 %v6617_v36 }
 0x18f   :  { %4702 = vmatpush1.msra.mxu1 %v6722_v24  ;;  %4456 = vmatprep.subr.mxu0 %v6645_v31  ;;  %v4000_v48 = vand.u32 4294901760, %v3999_v42  ;;  %v8208_v42 = vld [vmem:[#allocation20_spill] sm:$0xff] }
 0x190   :  { %3991 = vmatmul.mubr.f32.gmra.mxu0 %v3990_v47  ;;  %4704 = vmatprep.subr.mxu1 %v6727_v37  ;;  %v8203_v47 = vld [vmem:[#allocation7_spill] sm:$0xff] }
 0x191   :  { %4459 = vmatpush1.msra.mxu0 %v6657_v29  ;;  %4706 = vmatpush1.msra.mxu1 %v6738_v8 }
 0x192   :  { %4462 = vmatprep.subr.mxu0 %v6667_v58  ;;  %4708 = vmatprep.subr.mxu1 %v6755_v62 }
 0x193   :  { %4465 = vmatpush1.msra.mxu0 %v6674_v17  ;;  %4710 = vmatpush1.msra.mxu1 %v6759_v61 }
 0x194   :  { %4468 = vmatprep.subr.mxu0 %v6684_v53  ;;  %4712 = vmatprep.subr.mxu1 %v6768_v34 }
 0x195   :  { %4398 = vmatprep.mubr.f32.mxu1 %v7265_v49  ;;  %4471 = vmatpush1.msra.mxu0 %v6694_v7  ;;  %v8212_v49 = vld [vmem:[#allocation24_spill] sm:$0xff] }
 0x196   :  { %4714 = vmatpush1.msra.mxu1 %v6800_v59  ;;  %4474 = vmatprep.subr.mxu0 %v8199_v12 }
 0x197   :  { %4716 = vmatprep.subr.mxu1 %v8200_v11  ;;  %4477 = vmatpush1.msra.mxu0 %v8201_v27 }
 0x198   :  { %4718 = vmatpush1.msra.mxu1 %v8202_v4  ;;  %4480 = vmatprep.subr.mxu0 %v8203_v47 }
 0x199   :  { %4720 = vmatprep.subr.mxu1 %v8204_v46  ;;  %4001 = vmatprep.mubr.f32.mxu0 %v4000_v48  ;;  %v8215_v48 = vld [vmem:[#allocation15_spill] sm:$0xff] }
 0x19a   :  { %4483 = vmatpush1.msra.mxu0 %v8205_v50  ;;  %4722 = vmatpush1.msra.mxu1 %v8206_v26 }
 0x19b   :  { %4486 = vmatprep.subr.mxu0 %v8207_v32  ;;  %4724 = vmatprep.subr.mxu1 %v8208_v42 }
 0x19c   :  { %4489 = vmatpush1.msra.mxu0 %v8209_v33  ;;  %4726 = vmatpush1.msra.mxu1 %v8210_v25  ;;  %v8221_v25 = vld [vmem:[#allocation21_spill] sm:$0xff]  ;;  %v8258_v33 = vld [vmem:[#allocation62_spill] sm:$0xff] }
 0x19d   :  { %4492 = vmatprep.subr.mxu0 %v8211_v60  ;;  %4728 = vmatprep.subr.mxu1 %v8212_v49  ;;  %v8222_v60 = vld [vmem:[#allocation34_spill] sm:$0xff] }
 0x19e   :  { %4495 = vmatpush1.msra.mxu0 %v8213_v63  ;;  %4730 = vmatpush1.msra.mxu1 %v8214_v19  ;;  %v8223_v49 = vld [vmem:[#allocation22_spill] sm:$0xff]  ;;  %v8224_v63 = vld [vmem:[#allocation37_spill] sm:$0xff] }
 0x19f   :  { %4498 = vmatprep.subr.mxu0 %v8215_v48  ;;  %4732 = vmatprep.subr.mxu1 %v8216_v35  ;;  %v8225_v19 = vld [vmem:[#allocation25_spill] sm:$0xff]  ;;  %v8226_v48 = vld [vmem:[#allocation38_spill] sm:$0xff]  ;;  %v8227_v35 = vld [vmem:[#allocation27_spill] sm:$0xff] }
 0x1a0   :  { %4501 = vmatpush1.msra.mxu0 %v8217_v2  ;;  %4734 = vmatpush1.msra.mxu1 %v8218_v43  ;;  %v8228_v2 = vld [vmem:[#allocation40_spill] sm:$0xff]  ;;  %v8229_v43 = vld [vmem:[#allocation29_spill] sm:$0xff] }
 0x1a1   :  { %4504 = vmatprep.subr.mxu0 %v8219_v18  ;;  %4752 = vmatprep.subr.mxu1 %v8220_v9  ;;  %v8230_v18 = vld [vmem:[#allocation43_spill] sm:$0xff]  ;;  %v8231_v9 = vld [vmem:[#allocation30_spill] sm:$0xff] }
 0x1a2   :  { %4507 = vmatpush1.msra.mxu0 %v8221_v25  ;;  %4754 = vmatpush2.msra.mxu1 %v8222_v60  ;;  %v8232_v25 = vld [vmem:[#allocation45_spill] sm:$0xff] }
 0x1a3   :  { %4510 = vmatprep.subr.mxu0 %v8223_v49  ;;  %4756 = vmatprep.subr.mxu1 %v8224_v63  ;;  %v8233_v60 = vld [vmem:[#allocation33_spill] sm:$0xff]  ;;  %v8234_v49 = vld [vmem:[#allocation46_spill] sm:$0xff]  ;;  %v8235_v63 = vld [vmem:[#allocation35_spill] sm:$0xff] }
 0x1a4   :  { %4513 = vmatpush1.msra.mxu0 %v8225_v19  ;;  %4758 = vmatpush2.msra.mxu1 %v8226_v48  ;;  %v8236_v19 = vld [vmem:[#allocation49_spill] sm:$0xff]  ;;  %v8237_v48 = vld [vmem:[#allocation36_spill] sm:$0xff] }
 0x1a5   :  { %4516 = vmatprep.subr.mxu0 %v8227_v35  ;;  %4760 = vmatprep.subr.mxu1 %v8228_v2  ;;  %v8238_v35 = vld [vmem:[#allocation50_spill] sm:$0xff]  ;;  %v8239_v2 = vld [vmem:[#allocation39_spill] sm:$0xff] }
 0x1a6   :  { %4519 = vmatpush1.msra.mxu0 %v8229_v43  ;;  %4762 = vmatpush2.msra.mxu1 %v8230_v18  ;;  %v8240_v43 = vld [vmem:[#allocation52_spill] sm:$0xff]  ;;  %v8241_v18 = vld [vmem:[#allocation41_spill] sm:$0xff] }
 0x1a7   :  { %4522 = vmatprep.subr.mxu0 %v8231_v9  ;;  %4764 = vmatprep.subr.mxu1 %v8232_v25  ;;  %v8242_v9 = vld [vmem:[#allocation54_spill] sm:$0xff] }
 0x1a8   :  { %4525 = vmatpush1.msra.mxu0 %v8233_v60  ;;  %4766 = vmatpush2.msra.mxu1 %v8234_v49  ;;  %v8243_v25 = vld [vmem:[#allocation42_spill] sm:$0xff]  ;;  %v8244_v60 = vld [vmem:[#allocation56_spill] sm:$0xff] }
 0x1a9   :  { %4544 = vmatprep.subr.mxu0 %v8235_v63  ;;  %4768 = vmatprep.subr.mxu1 %v8236_v19  ;;  %v8245_v49 = vld [vmem:[#allocation44_spill] sm:$0xff]  ;;  %v8246_v63 = vld [vmem:[#allocation59_spill] sm:$0xff] }
 0x1aa   :  { %4547 = vmatpush2.msra.mxu0 %v8237_v48  ;;  %4770 = vmatpush2.msra.mxu1 %v8238_v35  ;;  %v8247_v19 = vld [vmem:[#allocation47_spill] sm:$0xff]  ;;  %v8248_v48 = vld [vmem:[#allocation60_spill] sm:$0xff] }
 0x1ab   :  { %4550 = vmatprep.subr.mxu0 %v8239_v2  ;;  %4772 = vmatprep.subr.mxu1 %v8240_v43  ;;  %v8249_v35 = vld [vmem:[#allocation48_spill] sm:$0xff]  ;;  %v8250_v2 = vld [vmem:[#allocation63_spill] sm:$0xff] }
 0x1ac   :  { %4553 = vmatpush2.msra.mxu0 %v8241_v18  ;;  %4774 = vmatpush2.msra.mxu1 %v8242_v9  ;;  %v8251_v43 = vld [vmem:[#allocation51_spill] sm:$0xff]  ;;  %v8253_v9 = vld [vmem:[#allocation53_spill] sm:$0xff] }
 0x1ad   :  { %4556 = vmatprep.subr.mxu0 %v8243_v25  ;;  %4776 = vmatprep.subr.mxu1 %v8244_v60  ;;  %v8252_v18 = vld [vmem:[#allocation3_spill] sm:$0xff]  ;;  %v8255_v60 = vld [vmem:[#allocation57_spill] sm:$0xff] }
 0x1ae   :  { %4559 = vmatpush2.msra.mxu0 %v8245_v49  ;;  %4778 = vmatpush2.msra.mxu1 %v8246_v63  ;;  %v8254_v25 = vld [vmem:[#allocation55_spill] sm:$0xff]  ;;  %v3730_v49 = vld [vmem:[#allocation2 + $0x58] sm:$0xff] }
 0x1af   :  { %4562 = vmatprep.subr.mxu0 %v8247_v19  ;;  %4780 = vmatprep.subr.mxu1 %v8248_v48  ;;  %v8256_v63 = vld [vmem:[#allocation58_spill] sm:$0xff]  ;;  %v8257_v19 = vld [vmem:[#allocation61_spill] sm:$0xff] }
 0x1b0   :  { %4565 = vmatpush2.msra.mxu0 %v8249_v35  ;;  %4782 = vmatpush2.msra.mxu1 %v8250_v2  ;;  %v8259_v2 = vld [vmem:[#allocation64_spill] sm:$0xff] }
 0x1b1   :  { %4568 = vmatprep.subr.mxu0 %v8251_v43  ;;  %5154 = vmatprep.subr.mxu1 %v8252_v18  ;;  %v3812_v43 = vsel %vm628_vm1, %v3730_v49, 0  ;;  %v8260_v35 = vld [vmem:[#allocation4_spill] sm:$0xff] }
 0x1b2   :  { %4571 = vmatpush2.msra.mxu0 %v8253_v9  ;;  %v3732_v9 = vld [vmem:[#allocation2 + $0x68] sm:$0xff] }
 0x1b3   :  { %4574 = vmatprep.subr.mxu0 %v8254_v25  ;;  %v8261_v25 = vand.u32 4294901760, %v8260_v35 }
 0x1b4   :  { %4577 = vmatpush2.msra.mxu0 %v8255_v60 }
 0x1b5   :  { %4580 = vmatprep.subr.mxu0 %v8256_v63  ;;  %v7373_v63 = vand.u32 4294901760, %v3812_v43 }
 0x1b6   :  { %4583 = vmatpush2.msra.mxu0 %v8257_v19  ;;  %v3096_v48 = vpop.permute.xlu1 %3095 }
 0x1b7   :  { %4586 = vmatprep.subr.mxu0 %v8258_v33  ;;  %3106 = vst.msk [vmem:[#allocation2 + $0x50] sm:$0xff] %vm1256_vm2, %v3096_v48  ;;  %8262 = vst [vmem:[#allocation3_spill] sm:$0xff] %v7373_v63  ;;  %v3815_v33 = vsel %vm628_vm1, %v3732_v9, 0  ;;  %v3734_v48 = vld [vmem:[#allocation2 + $0x78] sm:$0xff]  ;;  %v7381_v42 = vsub.f32 %v3812_v43, %v7373_v63 }
 0x1b8   :  { %4589 = vmatpush2.msra.mxu0 %v8259_v2  ;;  %v3094_v18 = vpop.permute.xlu0 %3093  ;;  %v7378_v2 = vand.u32 4294901760, %v3815_v33  ;;  %v3818_v35 = vsel %vm628_vm1, %v3734_v48, 0 }
 0x1b9   :  { %4883 = vmatprep.subr.mxu0 %v8261_v25  ;;  %3105 = vst.msk [vmem:[#allocation2 + $0x40] sm:$0xff] %vm1256_vm2, %v3094_v18  ;;  %v7392_v26 = vand.u32 4294901760, %v3818_v35  ;;  %v8266_v4 = vand.u32 4294901760, %v7381_v42 }
 0x1ba   :  { %v3100_v60 = vpop.permute.xlu1 %3099  ;;  %v7395_v50 = vsub.f32 %v3815_v33, %v7378_v2 }
 0x1bb   :  { %3108 = vst.msk [vmem:[#allocation2 + $0x70] sm:$0xff] %vm1256_vm2, %v3100_v60  ;;  %8265 = vst [vmem:[#allocation76_spill] sm:$0xff] %v7392_v26  ;;  %v4015_v33 = vsub.f32 %v7381_v42, %v8266_v4 }
 0x1bc   :  { %v3098_v19 = vpop.permute.xlu0 %3097  ;;  %v8268_v12 = vand.u32 4294901760, %v7395_v50 }
 0x1bd   :  { %3107 = vst.msk [vmem:[#allocation2 + $0x60] sm:$0xff] %vm1256_vm2, %v3098_v19 }
 0x1be   :  { %v3729_v49 = vld [vmem:[#allocation2 + $0x50] sm:$0xff] }
 0x1bf   :  { %v7383_v25 = vand.u32 4294901760, %v3729_v49 }
 0x1c0   :  { %v3727_v18 = vld [vmem:[#allocation2 + $0x40] sm:$0xff] }
 0x1c1   :  { %8263 = vst [vmem:[#allocation4_spill] sm:$0xff] %v7383_v25  ;;  %v7386_v32 = vand.u32 4294901760, %v3727_v18  ;;  %v7389_v60 = vsub.f32 %v3729_v49, %v7383_v25 }
 0x1c2   :  { %v3733_v19 = vld [vmem:[#allocation2 + $0x70] sm:$0xff] }
 0x1c3   :  { %8264 = vst [vmem:[#allocation75_spill] sm:$0xff] %v7386_v32  ;;  %4400 = vmatmul.mubr.f32.gmra.mxu1 %v7386_v32  ;;  %v7399_v43 = vsub.f32 %v3727_v18, %v7386_v32  ;;  %v7406_v47 = vand.u32 4294901760, %v3733_v19  ;;  %v7413_v18 = vsub.f32 %v3818_v35, %v7392_v26  ;;  %v8267_v11 = vand.u32 4294901760, %v7389_v60 }
 0x1c4   :  { %4406 = vmatprep.mubr.f32.mxu1 %v7373_v63  ;;  %v3731_v48 = vld [vmem:[#allocation2 + $0x60] sm:$0xff] }
 0x1c5   :  { %v8112_v46 = vand.u32 4294901760, %v7399_v43  ;;  %v7403_v49 = vand.u32 4294901760, %v3731_v48  ;;  %v4021_v4 = vsub.f32 %v7389_v60, %v8267_v11  ;;  %v7428_v35 = vsub.f32 %v3733_v19, %v7406_v47 }
 0x1c7   :  { %4408 = vmatmul.mubr.f32.gmra.mxu1 %v7383_v25  ;;  %v4005_v63 = vsub.f32 %v7399_v43, %v8112_v46  ;;  %v7420_v32 = vsub.f32 %v3731_v48, %v7403_v49  ;;  %v4016_v25 = vand.u32 4294901760, %v4015_v33  ;;  %v4031_v46 = vsub.f32 %v7395_v50, %v8268_v12 }
 0x1c8   :  { %4414 = vmatprep.mubr.f32.mxu1 %v7378_v2  ;;  %v4046_v48 = vand.u32 4294901760, %v7413_v18  ;;  %v4052_v19 = vand.u32 4294901760, %v7428_v35 }
 0x1c9   :  { %v4006_v9 = vand.u32 4294901760, %v4005_v63  ;;  %v8115_v27 = vand.u32 4294901760, %v7420_v32  ;;  %v4022_v63 = vand.u32 4294901760, %v4021_v4  ;;  %v4032_v33 = vand.u32 4294901760, %v4031_v46 }
 0x1ca   :  { %v4047_v12 = vsub.f32 %v7413_v18, %v4046_v48  ;;  %v4053_v4 = vsub.f32 %v7428_v35, %v4052_v19  ;;  %v8271_v46 = vand.u32 4294901760, %v7208_v5 }
 0x1cb   :  { %4007 = vmatmul.mubr.f32.gmra.mxu0 %v4006_v9  ;;  %4416 = vmatmul.mubr.f32.gmra.mxu1 %v7403_v49  ;;  %v4037_v11 = vsub.f32 %v7420_v32, %v8115_v27  ;;  %v8269_v9 = vld [vmem:[#allocation66_spill] sm:$0xff] }
 0x1cc   :  { %4017 = vmatprep.mubr.f32.mxu0 %v4016_v25  ;;  %4422 = vmatprep.mubr.f32.mxu1 %v7392_v26  ;;  %v8270_v25 = vand.u32 4294901760, %v8269_v9  ;;  %v4048_v27 = vand.u32 4294901760, %v4047_v12  ;;  %v8321_v12 = vld [vmem:[#allocation15_spill] sm:$0xff] }
 0x1cd   :  { %v4038_v26 = vand.u32 4294901760, %v4037_v11  ;;  %v8273_v11 = vand.u32 4294901760, %v7232_v38 }
 0x1cf   :  { %4023 = vmatmul.mubr.f32.gmra.mxu0 %v4022_v63  ;;  %4424 = vmatmul.mubr.f32.gmra.mxu1 %v7406_v47  ;;  %v8272_v63 = vand.u32 4294901760, %v7195_v55 }
 0x1d0   :  { %4033 = vmatprep.mubr.f32.mxu0 %v4032_v33  ;;  %4786 = vmatprep.mubr.f32.mxu1 %v8270_v25  ;;  %v4054_v33 = vand.u32 4294901760, %v4053_v4  ;;  %v8323_v25 = vld [vmem:[#allocation28_spill] sm:$0xff]  ;;  %v8324_v4 = vld [vmem:[#allocation65_spill] sm:$0xff] }
 0x1d3   :  { %4039 = vmatmul.mubr.f32.gmra.mxu0 %v4038_v26  ;;  %4790 = vmatmul.mubr.f32.vlgmr.msra.gmra.mxu1 %v8271_v46  ;;  %v8314_v26 = vld [vmem:[#allocation23_spill] sm:$0xff]  ;;  %v8325_v46 = vld [vmem:[#allocation16_spill] sm:$0xff] }
 0x1d4   :  { %5156 = vmatpush1.msra.mxu1 %v6532_v16  ;;  %4049 = vmatprep.mubr.f32.mxu0 %v4048_v27  ;;  %v8274_v16 = vand.u32 4294901760, %v7205_v45  ;;  %v8317_v27 = vld [vmem:[#allocation24_spill] sm:$0xff] }
 0x1d5   :  { %4798 = vmatprep.mubr.f32.mxu1 %v8272_v63  ;;  %5158 = vmatprep.subr.mxu1 %v6540_v20  ;;  %v8275_v20 = vand.u32 4294901760, %v7235_v15  ;;  %v8326_v63 = vand.u32 4294901760, %v8325_v46  ;;  %v8386_v46 = vld [vmem:[#allocation58_spill] sm:$0xff] }
 0x1d6   :  { %5160 = vmatpush1.msra.mxu1 %v6549_v23  ;;  %v8276_v23 = vand.u32 4294901760, %v6547_v22  ;;  %v8280_v22 = vand.u32 4294901760, %v6580_v51  ;;  %v8284_v51 = vand.u32 4294901760, %v6606_v6  ;;  %v8288_v6 = vand.u32 4294901760, %v6657_v29 }
 0x1d7   :  { %5162 = vmatprep.subr.mxu1 %v6559_v30  ;;  %4055 = vmatmul.mubr.f32.gmra.mxu0 %v4054_v33  ;;  %v8277_v30 = vand.u32 4294901760, %v7224_v14  ;;  %v8292_v29 = vand.u32 4294901760, %v6684_v53  ;;  %v8298_v53 = vld [vmem:[#allocation12_spill] sm:$0xff] }
 0x1d8   :  { %4802 = vmatmul.mubr.f32.gmra.mxu1 %v8273_v11  ;;  %4592 = vmatprep.mubr.f32.mxu0 %v8269_v9  ;;  %v8322_v9 = vand.u32 4294901760, %v8321_v12  ;;  %v8330_v11 = vld [vmem:[#allocation32_spill] sm:$0xff]  ;;  %v8382_v12 = vld [vmem:[#allocation55_spill] sm:$0xff] }
 0x1d9   :  { %5164 = vmatpush1.msra.mxu1 %v6569_v41  ;;  %4810 = vmatprep.mubr.f32.mxu1 %v8274_v16  ;;  %v8278_v41 = vand.u32 4294901760, %v6557_v28  ;;  %v8282_v28 = vand.u32 4294901760, %v6593_v56  ;;  %v8286_v56 = vand.u32 4294901760, %v6645_v31  ;;  %v8290_v31 = vand.u32 4294901760, %v6667_v58  ;;  %v8332_v16 = vld [vmem:[#allocation21_spill] sm:$0xff] }
 0x1da   :  { %5166 = vmatprep.subr.mxu1 %v6582_v52  ;;  %v8279_v52 = vand.u32 4294901760, %v6567_v40  ;;  %v8283_v40 = vand.u32 4294901760, %v7280_v0  ;;  %v8294_v58 = vand.u32 4294901760, %v6694_v7 }
 0x1db   :  { %5168 = vmatpush1.msra.mxu1 %v6595_v57  ;;  %4595 = vmatmul.mubr.f32.vlgmr.msra.gmra.mxu0 %v7208_v5  ;;  %v8281_v57 = vand.u32 4294901760, %v7256_v39 }
 0x1dc   :  { %5170 = vmatprep.subr.mxu1 %v6627_v44  ;;  %4814 = vmatmul.mubr.f32.gmra.mxu1 %v8275_v20  ;;  %v8285_v44 = vand.u32 4294901760, %v6617_v36  ;;  %v8289_v36 = vand.u32 4294901760, %v7381_v42  ;;  %v8333_v20 = vand.u32 4294901760, %v8332_v16 }
 0x1dd   :  { %4887 = vmatpush1.msra.mxu0 %v8276_v23  ;;  %5172 = vmatpush1.msra.mxu1 %v6636_v1  ;;  %v8287_v1 = vand.u32 4294901760, %v7399_v43  ;;  %v8334_v23 = vld [vmem:[#allocation22_spill] sm:$0xff] }
 0x1de   :  { %4602 = vmatprep.mubr.f32.mxu0 %v7195_v55  ;;  %4822 = vmatprep.mubr.f32.mxu1 %v8277_v30  ;;  %v8308_v55 = vld [vmem:[#allocation18_spill] sm:$0xff]  ;;  %v8335_v30 = vand.u32 4294901760, %v8334_v23 }
 0x1df   :  { %4891 = vmatprep.subr.mxu0 %v8278_v41  ;;  %5174 = vmatprep.subr.mxu1 %v6647_v10  ;;  %v8291_v10 = vand.u32 4294901760, %v6674_v17  ;;  %v8296_v17 = vld [vmem:[#allocation5_spill] sm:$0xff] }
 0x1e0   :  { %4895 = vmatpush1.msra.mxu0 %v8279_v52  ;;  %5176 = vmatpush1.msra.mxu1 %v6659_v13  ;;  %v8293_v13 = vand.u32 4294901760, %v7389_v60  ;;  %v8336_v41 = vld [vmem:[#allocation37_spill] sm:$0xff] }
 0x1e1   :  { %4899 = vmatprep.subr.mxu0 %v8280_v22  ;;  %5178 = vmatprep.subr.mxu1 %v6669_v3  ;;  %v8295_v3 = vand.u32 4294901760, %v7395_v50  ;;  %v8337_v52 = vld [vmem:[#allocation25_spill] sm:$0xff] }
 0x1e2   :  { %4605 = vmatmul.mubr.f32.gmra.mxu0 %v7232_v38  ;;  %4826 = vmatmul.mubr.f32.gmra.mxu1 %v8281_v57  ;;  %v8312_v38 = vld [vmem:[#allocation10_spill] sm:$0xff]  ;;  %v8338_v22 = vand.u32 4294901760, %v8337_v52  ;;  %v8398_v52 = vld [vmem:[#allocation73_spill] sm:$0xff] }
 0x1e3   :  { %4903 = vmatpush1.msra.mxu0 %v8282_v28  ;;  %5180 = vmatpush1.msra.mxu1 %v6676_v21  ;;  %v8297_v21 = vand.u32 4294901760, %v8296_v17  ;;  %v8339_v57 = vld [vmem:[#allocation38_spill] sm:$0xff]  ;;  %v8340_v28 = vld [vmem:[#allocation27_spill] sm:$0xff] }
 0x1e4   :  { %4612 = vmatprep.mubr.f32.mxu0 %v7205_v45  ;;  %4834 = vmatprep.mubr.f32.mxu1 %v8283_v40  ;;  %v8309_v45 = vld [vmem:[#allocation9_spill] sm:$0xff]  ;;  %v8341_v40 = vand.u32 4294901760, %v8340_v28  ;;  %v8357_v17 = vld [vmem:[#allocation50_spill] sm:$0xff]  ;;  %v8401_v28 = vld [vmem:[#allocation3_spill] sm:$0xff] }
 0x1e5   :  { %4907 = vmatprep.subr.mxu0 %v8284_v51  ;;  %5182 = vmatprep.subr.mxu1 %v6686_v54  ;;  %v8310_v5 = vand.u32 4294901760, %v8309_v45  ;;  %v8343_v51 = vld [vmem:[#allocation43_spill] sm:$0xff] }
 0x1e6   :  { %4911 = vmatpush1.msra.mxu0 %v8285_v44  ;;  %5184 = vmatpush1.msra.mxu1 %v6722_v24  ;;  %v8301_v24 = vld [vmem:[#allocation14_spill] sm:$0xff]  ;;  %v8370_v45 = vld [vmem:[#allocation47_spill] sm:$0xff] }
 0x1e7   :  { %4915 = vmatprep.subr.mxu0 %v8286_v56  ;;  %5186 = vmatprep.subr.mxu1 %v6727_v37  ;;  %v8302_v37 = vld [vmem:[#allocation7_spill] sm:$0xff]  ;;  %v8346_v56 = vld [vmem:[#allocation30_spill] sm:$0xff] }
 0x1e8   :  { %4615 = vmatmul.mubr.f32.gmra.mxu0 %v7235_v15  ;;  %4838 = vmatmul.mubr.f32.gmra.mxu1 %v8287_v1  ;;  %v8303_v7 = vand.u32 4294901760, %v8302_v37  ;;  %v8313_v15 = vand.u32 4294901760, %v8312_v38  ;;  %v8347_v1 = vand.u32 4294901760, %v8346_v56  ;;  %v8363_v37 = vld [vmem:[#allocation54_spill] sm:$0xff]  ;;  %v8373_v38 = vld [vmem:[#allocation48_spill] sm:$0xff] }
 0x1e9   :  { %4919 = vmatpush1.msra.mxu0 %v8288_v6  ;;  %5188 = vmatpush1.msra.mxu1 %v6738_v8  ;;  %v8304_v8 = vld [vmem:[#allocation17_spill] sm:$0xff] }
 0x1ea   :  { %4622 = vmatprep.mubr.f32.mxu0 %v7224_v14  ;;  %4846 = vmatprep.mubr.f32.mxu1 %v8289_v36  ;;  %v8311_v14 = vld [vmem:[#allocation20_spill] sm:$0xff]  ;;  %v8348_v6 = vld [vmem:[#allocation45_spill] sm:$0xff] }
 0x1eb   :  { %4923 = vmatprep.subr.mxu0 %v8290_v31  ;;  %5190 = vmatprep.subr.mxu1 %v6755_v62  ;;  %v8306_v62 = vld [vmem:[#allocation8_spill] sm:$0xff]  ;;  %v8349_v36 = vld [vmem:[#allocation33_spill] sm:$0xff] }
 0x1ec   :  { %4927 = vmatpush1.msra.mxu0 %v8291_v10  ;;  %5192 = vmatpush1.msra.mxu1 %v6759_v61  ;;  %v8307_v61 = vand.u32 4294901760, %v8306_v62  ;;  %v8350_v31 = vand.u32 4294901760, %v8349_v36  ;;  %v8351_v10 = vld [vmem:[#allocation46_spill] sm:$0xff]  ;;  %v8367_v62 = vld [vmem:[#allocation44_spill] sm:$0xff] }
 0x1ed   :  { %4931 = vmatprep.subr.mxu0 %v8292_v29  ;;  %5194 = vmatprep.subr.mxu1 %v6768_v34  ;;  %v8299_v34 = vld [vmem:[#allocation6_spill] sm:$0xff]  ;;  %v8352_v29 = vld [vmem:[#allocation35_spill] sm:$0xff] }
 0x1ee   :  { %4625 = vmatmul.mubr.f32.gmra.mxu0 %v7256_v39  ;;  %4850 = vmatmul.mubr.f32.gmra.mxu1 %v8293_v13  ;;  %v8300_v54 = vand.u32 4294901760, %v8299_v34  ;;  %v8315_v39 = vld [vmem:[#allocation11_spill] sm:$0xff]  ;;  %v8353_v13 = vand.u32 4294901760, %v8352_v29  ;;  %v8360_v34 = vld [vmem:[#allocation52_spill] sm:$0xff] }
 0x1ef   :  { %4935 = vmatpush1.msra.mxu0 %v8294_v58  ;;  %5196 = vmatpush1.msra.mxu1 %v6800_v59  ;;  %v8305_v59 = vand.u32 4294901760, %v7420_v32  ;;  %v8355_v58 = vld [vmem:[#allocation36_spill] sm:$0xff] }
 0x1f0   :  { %4632 = vmatprep.mubr.f32.mxu0 %v7280_v0  ;;  %4858 = vmatprep.mubr.f32.mxu1 %v8295_v3  ;;  %v8316_v0 = vand.u32 4294901760, %v8315_v39  ;;  %v8356_v3 = vand.u32 4294901760, %v8355_v58  ;;  %v8376_v39 = vld [vmem:[#allocation51_spill] sm:$0xff] }
 0x1f1   :  { %4939 = vmatprep.subr.mxu0 %v8297_v21  ;;  %5198 = vmatprep.subr.mxu1 %v8298_v53  ;;  %v8358_v21 = vld [vmem:[#allocation39_spill] sm:$0xff] }
 0x1f2   :  { %4943 = vmatpush1.msra.mxu0 %v8300_v54  ;;  %5200 = vmatpush1.msra.mxu1 %v8301_v24  ;;  %v8359_v53 = vand.u32 4294901760, %v8358_v21  ;;  %v8361_v54 = vld [vmem:[#allocation41_spill] sm:$0xff] }
 0x1f3   :  { %4947 = vmatprep.subr.mxu0 %v8303_v7  ;;  %5202 = vmatprep.subr.mxu1 %v8304_v8  ;;  %v8362_v24 = vand.u32 4294901760, %v8361_v54  ;;  %v8364_v7 = vld [vmem:[#allocation42_spill] sm:$0xff] }
 0x1f4   :  { %4635 = vmatmul.mubr.f32.gmra.mxu0 %v7399_v43  ;;  %4862 = vmatmul.mubr.f32.gmra.mxu1 %v8305_v59  ;;  %v8365_v8 = vand.u32 4294901760, %v8364_v7  ;;  %v8366_v59 = vld [vmem:[#allocation56_spill] sm:$0xff] }
 0x1f5   :  { %4951 = vmatpush1.msra.mxu0 %v8307_v61  ;;  %5204 = vmatpush1.msra.mxu1 %v8308_v55  ;;  %v8368_v61 = vand.u32 4294901760, %v8367_v62  ;;  %v8369_v55 = vld [vmem:[#allocation59_spill] sm:$0xff] }
 0x1f6   :  { %4642 = vmatprep.mubr.f32.mxu0 %v7381_v42  ;;  %4870 = vmatprep.mubr.f32.mxu1 %v4046_v48  ;;  %v8318_v42 = vld [vmem:[#allocation13_spill] sm:$0xff]  ;;  %v8320_v48 = vld [vmem:[#allocation26_spill] sm:$0xff] }
 0x1f7   :  { %4955 = vmatprep.subr.mxu0 %v8310_v5  ;;  %5206 = vmatprep.subr.mxu1 %v8311_v14  ;;  %v8319_v43 = vand.u32 4294901760, %v8318_v42  ;;  %v8371_v5 = vand.u32 4294901760, %v8370_v45  ;;  %v8372_v14 = vld [vmem:[#allocation60_spill] sm:$0xff]  ;;  %v8379_v42 = vld [vmem:[#allocation53_spill] sm:$0xff] }
 0x1f8   :  { %4959 = vmatpush1.msra.mxu0 %v8313_v15  ;;  %5208 = vmatpush1.msra.mxu1 %v8314_v26  ;;  %v8374_v15 = vand.u32 4294901760, %v8373_v38  ;;  %v8375_v26 = vld [vmem:[#allocation63_spill] sm:$0xff] }
 0x1f9   :  { %4963 = vmatprep.subr.mxu0 %v8316_v0  ;;  %5210 = vmatprep.subr.mxu1 %v8317_v27  ;;  %v8377_v0 = vand.u32 4294901760, %v8376_v39  ;;  %v8378_v27 = vld [vmem:[#allocation69_spill] sm:$0xff] }
 0x1fa   :  { %4645 = vmatmul.mubr.f32.gmra.mxu0 %v7389_v60  ;;  %4874 = vmatmul.mubr.f32.gmra.mxu1 %v4052_v19  ;;  %v8327_v60 = vld [vmem:[#allocation31_spill] sm:$0xff] }
 0x1fb   :  { %4967 = vmatpush1.msra.mxu0 %v8319_v43  ;;  %5212 = vmatpush1.msra.mxu1 %v8320_v48  ;;  %v8328_v19 = vld [vmem:[#allocation19_spill] sm:$0xff]  ;;  %v8380_v43 = vand.u32 4294901760, %v8379_v42 }
 0x1fc   :  { %4652 = vmatprep.mubr.f32.mxu0 %v7395_v50  ;;  %4971 = vmatprep.subr.mxu0 %v8322_v9  ;;  %v8329_v33 = vand.u32 4294901760, %v8328_v19  ;;  %v8331_v50 = vld [vmem:[#allocation34_spill] sm:$0xff]  ;;  %v8381_v48 = vld [vmem:[#allocation67_spill] sm:$0xff]  ;;  %v8383_v9 = vand.u32 4294901760, %v8382_v12  ;;  %v8389_v19 = vld [vmem:[#allocation61_spill] sm:$0xff] }
 0x1fd   :  { %5214 = vmatprep.subr.mxu1 %v8323_v25  ;;  %5266 = vmatprep.mubr.f32.mxu1 %v8324_v4  ;;  %v8384_v25 = vld [vmem:[#allocation57_spill] sm:$0xff] }
 0x1fe   :  { %4975 = vmatpush1.msra.mxu0 %v8326_v63  ;;  %5216 = vmatpush1.msra.mxu1 %v8327_v60  ;;  %v8387_v63 = vand.u32 4294901760, %v8386_v46  ;;  %v8388_v60 = vld [vmem:[#allocation71_spill] sm:$0xff] }
 0x1ff   :  { %4979 = vmatprep.subr.mxu0 %v8329_v33  ;;  %5234 = vmatprep.subr.mxu1 %v8330_v11  ;;  %v8390_v33 = vand.u32 4294901760, %v8389_v19  ;;  %v8391_v11 = vld [vmem:[#allocation68_spill] sm:$0xff] }
 0x200   :  { %4655 = vmatmul.mubr.f32.gmra.mxu0 %v7420_v32  ;;  %5236 = vmatpush2.msra.mxu1 %v8331_v50  ;;  %v8342_v32 = vld [vmem:[#allocation40_spill] sm:$0xff]  ;;  %v8392_v50 = vld [vmem:[#allocation62_spill] sm:$0xff] }
 0x201   :  { %4983 = vmatpush1.msra.mxu0 %v8333_v20  ;;  %4662 = vmatprep.mubr.f32.mxu0 %v7413_v18  ;;  %v8344_v18 = vld [vmem:[#allocation29_spill] sm:$0xff]  ;;  %v8393_v16 = vand.u32 4294901760, %v8392_v50  ;;  %v8394_v20 = vld [vmem:[#allocation64_spill] sm:$0xff]  ;;  %v3785_v50 = vlaneseq }
 0x202   :  { %4987 = vmatprep.subr.mxu0 %v8335_v30  ;;  %5238 = vmatprep.subr.mxu1 %v8336_v41  ;;  %v8345_v44 = vand.u32 4294901760, %v8344_v18  ;;  %v8395_v23 = vand.u32 4294901760, %v8394_v20  ;;  %v8396_v30 = vld [vmem:[#allocation72_spill] sm:$0xff]  ;;  %v8397_v41 = vld [vmem:[#allocation70_spill] sm:$0xff] }
 0x203   :  { %4991 = vmatpush1.msra.mxu0 %v8338_v22  ;;  %5240 = vmatpush2.msra.mxu1 %v8339_v57  ;;  %v8399_v22 = vld [vmem:[#allocation74_spill] sm:$0xff]  ;;  %v8400_v57 = vld [vmem:[#allocation75_spill] sm:$0xff] }
 0x204   :  { %4995 = vmatprep.subr.mxu0 %v8341_v40  ;;  %5242 = vmatprep.subr.mxu1 %v8342_v32  ;;  %v8402_v40 = vld [vmem:[#allocation4_spill] sm:$0xff] }
 0x205   :  { %4665 = vmatmul.mubr.f32.gmra.mxu0 %v7428_v35  ;;  %5244 = vmatpush2.msra.mxu1 %v8343_v51  ;;  %v8354_v35 = vld [vmem:[#allocation49_spill] sm:$0xff]  ;;  %v8403_v32 = vld [vmem:[#allocation76_spill] sm:$0xff] }
 0x206   :  { %4999 = vmatpush1.msra.mxu0 %v8345_v44  ;;  %5089 = vmatprep.mubr.f32.mxu0 %v8324_v4  ;;  %v8385_v4 = vand.u32 4294901760, %v8384_v25 }
 0x207   :  { %5003 = vmatprep.subr.mxu0 %v8347_v1  ;;  %5246 = vmatprep.subr.mxu1 %v8348_v6 }
 0x208   :  { %5007 = vmatpush1.msra.mxu0 %v8350_v31  ;;  %5248 = vmatpush2.msra.mxu1 %v8351_v10 }
 0x209   :  { %5027 = vmatprep.subr.mxu0 %v8353_v13  ;;  %5250 = vmatprep.subr.mxu1 %v8354_v35 }
 0x20a   :  { %5031 = vmatpush2.msra.mxu0 %v8356_v3  ;;  %5252 = vmatpush2.msra.mxu1 %v8357_v17 }
 0x20b   :  { %5035 = vmatprep.subr.mxu0 %v8359_v53  ;;  %5254 = vmatprep.subr.mxu1 %v8360_v34 }
 0x20c   :  { %5039 = vmatpush2.msra.mxu0 %v8362_v24  ;;  %5256 = vmatpush2.msra.mxu1 %v8363_v37 }
 0x20d   :  { %5043 = vmatprep.subr.mxu0 %v8365_v8  ;;  %5258 = vmatprep.subr.mxu1 %v8366_v59 }
 0x20e   :  { %5047 = vmatpush2.msra.mxu0 %v8368_v61  ;;  %5260 = vmatpush2.msra.mxu1 %v8369_v55 }
 0x20f   :  { %5051 = vmatprep.subr.mxu0 %v8371_v5  ;;  %5262 = vmatprep.subr.mxu1 %v8372_v14 }
 0x210   :  { %5055 = vmatpush2.msra.mxu0 %v8374_v15  ;;  %5264 = vmatpush2.msra.mxu1 %v8375_v26 }
 0x211   :  { %5059 = vmatprep.subr.mxu0 %v8377_v0  ;;  %5268 = vmatmul.mubr.f32.vlgmr.msra.gmra.mxu1 %v8378_v27 }
 0x212   :  { %5063 = vmatpush2.msra.mxu0 %v8380_v43  ;;  %5274 = vmatprep.mubr.f32.mxu1 %v8381_v48 }
 0x213   :  { %5067 = vmatprep.subr.mxu0 %v8383_v9 }
 0x214   :  { %5071 = vmatpush2.msra.mxu0 %v8385_v4 }
 0x215   :  { %5075 = vmatprep.subr.mxu0 %v8387_v63  ;;  %5276 = vmatmul.mubr.f32.gmra.mxu1 %v8388_v60 }
 0x216   :  { %5079 = vmatpush2.msra.mxu0 %v8390_v33  ;;  %5282 = vmatprep.mubr.f32.mxu1 %v8391_v11 }
 0x217   :  { %5083 = vmatprep.subr.mxu0 %v8393_v16 }
 0x218   :  { %5087 = vmatpush2.msra.mxu0 %v8395_v23  ;;  %v3786_v23 = vshrl.u32 %v3785_v50, 7 }
 0x219   :  { %5091 = vmatmul.mubr.f32.vlgmr.msra.gmra.mxu0 %v8378_v27  ;;  %5284 = vmatmul.mubr.f32.gmra.mxu1 %v8396_v30 }
 0x21a   :  { %5097 = vmatprep.mubr.f32.mxu0 %v8381_v48  ;;  %5290 = vmatprep.mubr.f32.mxu1 %v8397_v41 }
 0x21d   :  { %5099 = vmatmul.mubr.f32.gmra.mxu0 %v8388_v60  ;;  %5292 = vmatmul.mubr.f32.gmra.mxu1 %v8398_v52 }
 0x21e   :  { %5105 = vmatprep.mubr.f32.mxu0 %v8391_v11  ;;  %5298 = vmatprep.mubr.f32.mxu1 %v8399_v22 }
 0x221   :  { %5107 = vmatmul.mubr.f32.gmra.mxu0 %v8396_v30  ;;  %5300 = vmatmul.mubr.f32.gmra.mxu1 %v8400_v57 }
 0x222   :  { %5113 = vmatprep.mubr.f32.mxu0 %v8397_v41  ;;  %5306 = vmatprep.mubr.f32.mxu1 %v8401_v28 }
 0x225   :  { %5115 = vmatmul.mubr.f32.gmra.mxu0 %v8398_v52  ;;  %5308 = vmatmul.mubr.f32.gmra.mxu1 %v8402_v40  ;;  %v3787_v52 = vsub.s32 0, %v3786_v23 }
 0x226   :  { %5121 = vmatprep.mubr.f32.mxu0 %v8399_v22  ;;  %5314 = vmatprep.mubr.f32.mxu1 %v7378_v2  ;;  %v3783_v22 = vld [vmem:[%s7916_s3] sm:$0x3] }
 0x229   :  { %5123 = vmatmul.mubr.f32.gmra.mxu0 %v8400_v57  ;;  %5316 = vmatmul.mubr.f32.gmra.mxu1 %v7403_v49 }
 0x22a   :  { %5129 = vmatprep.mubr.f32.mxu0 %v8401_v28  ;;  %5322 = vmatprep.mubr.f32.mxu1 %v8403_v32 }
 0x22d   :  { %5131 = vmatmul.mubr.f32.gmra.mxu0 %v8402_v40  ;;  %5324 = vmatmul.mubr.f32.gmra.mxu1 %v7406_v47  ;;  %v3791_v40 = vsub.s32 1, %v3786_v23 }
 0x22e   :  { %5137 = vmatprep.mubr.f32.mxu0 %v7378_v2 }
 0x22f   :  { %v7781_v50 = vrot.slane %v3783_v22, %v3791_v40 }
 0x231   :  { %5139 = vmatmul.mubr.f32.gmra.mxu0 %v7403_v49 }
 0x232   :  { %5145 = vmatprep.mubr.f32.mxu0 %v8403_v32  ;;  %v7775_v32 = vrot.slane %v3783_v22, %v3787_v52 }
 0x235   :  { %5147 = vmatmul.mubr.f32.gmra.mxu0 %v7406_v47 }
 0x23b   :  { %v7668_v51 = vpop.f32.mrf.mxu1 }
 0x23d   :  { %v7670_v18 = vpop.f32.mrf.mxu1 }
 0x240   :  { %v7672_v44 = vpop.f32.mrf.mxu1 }
 0x242   :  { %v7676_v1 = vpop.f32.mrf.mxu1 }
 0x243   :  { %v7674_v56 = vpop.f32.mrf.mxu0 }
 0x244   :  { %v7680_v36 = vpop.f32.mrf.mxu1 }
 0x245   :  { %v7678_v6 = vpop.f32.mrf.mxu0 }
 0x246   :  { %v7684_v49 = vpop.f32.mrf.mxu1 }
 0x248   :  { %v7682_v2 = vpop.f32.mrf.mxu0  ;;  %v7688_v47 = vpop.f32.mrf.mxu1 }
 0x249   :  { %v3961_v23 = vadd.f32 %v7682_v2, %v7775_v32 }
 0x24a   :  { %v7686_v31 = vpop.f32.mrf.mxu0  ;;  %v7692_v29 = vpop.f32.mrf.mxu1 }
 0x24b   :  { %v3963_v40 = vadd.f32 %v7686_v31, %v7781_v50 }
 0x24c   :  { %v7690_v10 = vpop.f32.mrf.mxu0 }
 0x24e   :  { %v7694_v13 = vpop.f32.mrf.mxu0 }
 0x24f   :  { %v3979_v2 = vadd.f32 %v7694_v13, %v7781_v50 }
 0x250   :  { %v7698_v58 = vpop.f32.mrf.mxu0 }
 0x252   :  { %v7704_v21 = vpop.f32.mrf.mxu0 }
 0x253   :  { %v3995_v13 = vadd.f32 %v7704_v21, %v7781_v50 }
 0x283   :  { %v7696_v35 = vpop.f32.mrf.mxu1 }
 0x285   :  { %v7700_v3 = vpop.f32.mrf.mxu1 }
 0x287   :  { %v7702_v17 = vpop.f32.mrf.mxu1 }
 0x289   :  { %v7706_v53 = vpop.f32.mrf.mxu1 }
 0x28b   :  { %v7708_v34 = vpop.f32.mrf.mxu0  ;;  %v7710_v54 = vpop.f32.mrf.mxu1 }
 0x28d   :  { %v7712_v24 = vpop.f32.mrf.mxu0  ;;  %v7714_v37 = vpop.f32.mrf.mxu1 }
 0x28e   :  { %8404 = vst [vmem:[#allocation66_spill] sm:$0xff] %v7714_v37 }
 0x28f   :  { %v7716_v7 = vpop.f32.mrf.mxu0  ;;  %v7718_v8 = vpop.f32.mrf.mxu1 }
 0x290   :  { %8405 = vst [vmem:[#allocation5_spill] sm:$0xff] %v7718_v8 }
 0x291   :  { %v7720_v59 = vpop.f32.mrf.mxu0  ;;  %v7722_v62 = vpop.f32.mrf.mxu1 }
 0x292   :  { %8406 = vst [vmem:[#allocation12_spill] sm:$0xff] %v7722_v62 }
 0x293   :  { %v7724_v61 = vpop.f32.mrf.mxu0  ;;  %v4791_v55 = vpop.f32.mrf.mxu1 }
 0x295   :  { %v7726_v45 = vpop.f32.mrf.mxu0  ;;  %v7728_v5 = vpop.f32.mrf.mxu1 }
 0x297   :  { %v7730_v14 = vpop.f32.mrf.mxu0 }
 0x298   :  { %v7734_v15 = vpop.f32.mrf.mxu1 }
 0x299   :  { %v7732_v38 = vpop.f32.mrf.mxu0 }
 0x29a   :  { %8407 = vst [vmem:[#allocation6_spill] sm:$0xff] %v7732_v38  ;;  %v7736_v39 = vpop.f32.mrf.mxu1  ;;  %v4378_v38 = vadd.f32 %v7672_v44, %v3961_v23 }
 0x29b   :  { %v4596_v26 = vpop.f32.mrf.mxu0 }
 0x29c   :  { %v7738_v27 = vpop.f32.mrf.mxu1 }
 0x29d   :  { %v4598_v0 = vpop.f32.mrf.mxu0 }
 0x29e   :  { %v7740_v43 = vpop.f32.mrf.mxu1 }
 0x2a2   :  { %v4606_v42 = vpop.f32.mrf.mxu0  ;;  %v7742_v12 = vpop.f32.mrf.mxu1 }
 0x2a4   :  { %v4608_v48 = vpop.f32.mrf.mxu0  ;;  %v7744_v25 = vpop.f32.mrf.mxu1 }
 0x2a8   :  { %v4616_v9 = vpop.f32.mrf.mxu0  ;;  %v7748_v46 = vpop.f32.mrf.mxu1 }
 0x2aa   :  { %v7746_v4 = vpop.f32.mrf.mxu0  ;;  %v7752_v60 = vpop.f32.mrf.mxu1 }
 0x2ab   :  { %8408 = vst [vmem:[#allocation14_spill] sm:$0xff] %v7752_v60  ;;  %v4380_v60 = vadd.f32 %v7676_v1, %v3963_v40 }
 0x2ae   :  { %v7750_v63 = vpop.f32.mrf.mxu0  ;;  %v7756_v33 = vpop.f32.mrf.mxu1 }
 0x2af   :  { %8409 = vst [vmem:[#allocation7_spill] sm:$0xff] %v7756_v33 }
 0x2b0   :  { %v7754_v19 = vpop.f32.mrf.mxu0  ;;  %v7760_v16 = vpop.f32.mrf.mxu1 }
 0x2b1   :  { %8410 = vst [vmem:[#allocation17_spill] sm:$0xff] %v7760_v16 }
 0x2b4   :  { %v7758_v11 = vpop.f32.mrf.mxu0  ;;  %v7764_v30 = vpop.f32.mrf.mxu1 }
 0x2b5   :  { %8411 = vst [vmem:[#allocation8_spill] sm:$0xff] %v7764_v30  ;;  %v3945_v30 = vadd.f32 %v7674_v56, %v7775_v32 }
 0x2b6   :  { %v7762_v20 = vpop.f32.mrf.mxu0  ;;  %v7771_v57 = vpop.f32.mrf.mxu1 }
 0x2b7   :  { %8412 = vst [vmem:[#allocation18_spill] sm:$0xff] %v7771_v57  ;;  %v3947_v57 = vadd.f32 %v7678_v6, %v7781_v50  ;;  %v4370_v52 = vadd.f32 %v7668_v51, %v3945_v30 }
 0x2b9   :  { %v4597_v56 = vadd.f32 %v4596_v26, %v4370_v52  ;;  %v4609_v52 = vadd.f32 %v4608_v48, %v4380_v60  ;;  %v4009_v48 = vadd.f32 %v7708_v34, %v7775_v32 }
 0x2ba   :  { %v7766_v41 = vpop.f32.mrf.mxu0  ;;  %v7777_v62 = vpop.f32.mrf.mxu1 }
 0x2bb   :  { %8413 = vst [vmem:[#allocation9_spill] sm:$0xff] %v7777_v62  ;;  %v4792_v31 = vadd.f32 %v4791_v55, %v4597_v56  ;;  %v4402_v56 = vadd.f32 %v7696_v35, %v4009_v48  ;;  %v8420_v48 = vld [vmem:[#allocation66_spill] sm:$0xff] }
 0x2bc   :  { %v7773_v28 = vpop.f32.mrf.mxu0  ;;  %v7785_v8 = vpop.f32.mrf.mxu1 }
 0x2bd   :  { %8415 = vst [vmem:[#allocation10_spill] sm:$0xff] %v7785_v8  ;;  %v4372_v8 = vadd.f32 %v7670_v18, %v3947_v57  ;;  %v3993_v18 = vadd.f32 %v7698_v58, %v7775_v32  ;;  %v4637_v35 = vadd.f32 %v7758_v11, %v4402_v56 }
 0x2bf   :  { %v4599_v6 = vadd.f32 %v4598_v0, %v4372_v8  ;;  %v4388_v0 = vadd.f32 %v7684_v49, %v3979_v2 }
 0x2c0   :  { %v7779_v16 = vpop.f32.mrf.mxu0 }
 0x2c1   :  { %8414 = vst [vmem:[#allocation20_spill] sm:$0xff] %v7779_v16  ;;  %v4794_v44 = vadd.f32 %v7728_v5, %v4599_v6  ;;  %v4619_v5 = vadd.f32 %v7746_v4, %v4388_v0  ;;  %v4840_v0 = vadd.f32 %v7748_v46, %v4637_v35  ;;  %v8429_v35 = vld [vmem:[#allocation18_spill] sm:$0xff] }
 0x2c2   :  { %v7787_v33 = vpop.f32.mrf.mxu0 }
 0x2c3   :  { %8416 = vst [vmem:[#allocation23_spill] sm:$0xff] %v7787_v33  ;;  %v3977_v33 = vadd.f32 %v7690_v10, %v7775_v32 }
 0x2c5   :  { %v7794_v62 = vpop.f32.mrf.mxu0  ;;  %v4386_v10 = vadd.f32 %v7680_v36, %v3977_v33  ;;  %v4394_v36 = vadd.f32 %v7688_v47, %v3993_v18 }
 0x2c6   :  { %8417 = vst [vmem:[#allocation11_spill] sm:$0xff] %v7794_v62  ;;  %v4607_v62 = vadd.f32 %v4606_v42, %v4378_v38 }
 0x2c7   :  { %v7804_v51 = vpop.f32.mrf.mxu0  ;;  %v4617_v1 = vadd.f32 %v4616_v9, %v4386_v10  ;;  %v4627_v47 = vadd.f32 %v7750_v63, %v4394_v36 }
 0x2c8   :  { %v4804_v58 = vadd.f32 %v7734_v15, %v4607_v62  ;;  %v4011_v62 = vadd.f32 %v7712_v24, %v7781_v50  ;;  %v4396_v15 = vadd.f32 %v7692_v29, %v3995_v13 }
 0x2ca   :  { %v4629_v29 = vadd.f32 %v7754_v19, %v4396_v15  ;;  %v8424_v15 = vld [vmem:[#allocation23_spill] sm:$0xff] }
 0x2cd   :  { %v8427_v56 = vld [vmem:[#allocation11_spill] sm:$0xff] }
 0x2d1   :  { %v5269_v37 = vpop.f32.mrf.mxu1 }
 0x2d3   :  { %v5271_v22 = vpop.f32.mrf.mxu1 }
 0x2d5   :  { %v5277_v16 = vpop.f32.mrf.mxu1 }
 0x2d7   :  { %v5279_v30 = vpop.f32.mrf.mxu1 }
 0x2d9   :  { %v5092_v26 = vpop.f32.mrf.mxu0  ;;  %v5285_v57 = vpop.f32.mrf.mxu1 }
 0x2da   :  { %v5093_v8 = vadd.f32 %v5092_v26, %v4792_v31  ;;  %v4404_v31 = vadd.f32 %v7700_v3, %v4011_v62 }
 0x2db   :  { %v5094_v38 = vpop.f32.mrf.mxu0  ;;  %v5287_v42 = vpop.f32.mrf.mxu1 }
 0x2dc   :  { %v5270_v55 = vadd.f32 %v5269_v37, %v5093_v8  ;;  %v5095_v23 = vadd.f32 %v5094_v38, %v4794_v44  ;;  %v4806_v37 = vadd.f32 %v7736_v39, %v4609_v52  ;;  %v4025_v39 = vadd.f32 %v7716_v7, %v7775_v32 }
 0x2dd   :  { %v5100_v60 = vpop.f32.mrf.mxu0  ;;  %v5293_v33 = vpop.f32.mrf.mxu1  ;;  %v4639_v3 = vadd.f32 %v7762_v20, %v4404_v31  ;;  %v4057_v38 = vadd.f32 %v7730_v14, %v7775_v32 }
 0x2de   :  { %5330 = vst [vmem:[%s7917_s4] sm:$0xff] %v5270_v55  ;;  %v5272_v49 = vadd.f32 %v5271_v22, %v5095_v23  ;;  %v5101_v21 = vadd.f32 %v5100_v60, %v4804_v58  ;;  %v4816_v22 = vadd.f32 %v7738_v27, %v4617_v1  ;;  %v4027_v27 = vadd.f32 %v7720_v59, %v7781_v50  ;;  %v8418_v55 = vld [vmem:[#allocation14_spill] sm:$0xff] }
 0x2df   :  { %v5102_v34 = vpop.f32.mrf.mxu0  ;;  %v5295_v9 = vpop.f32.mrf.mxu1  ;;  %v4410_v52 = vadd.f32 %v7702_v17, %v4025_v39  ;;  %v4842_v23 = vadd.f32 %v8418_v55, %v4639_v3  ;;  %v8419_v58 = vld [vmem:[#allocation6_spill] sm:$0xff] }
 0x2e0   :  { %5331 = vst [vmem:[%s7917_s4 + $0x8] sm:$0xff] %v5272_v49  ;;  %v5278_v4 = vadd.f32 %v5277_v16, %v5101_v21  ;;  %v5103_v40 = vadd.f32 %v5102_v34, %v4806_v37  ;;  %v4818_v16 = vadd.f32 %v7740_v43, %v4619_v5  ;;  %v4041_v43 = vadd.f32 %v7724_v61, %v7775_v32  ;;  %v8421_v32 = vld [vmem:[#allocation20_spill] sm:$0xff]  ;;  %v8423_v49 = vld [vmem:[#allocation5_spill] sm:$0xff] }
 0x2e1   :  { %v5108_v24 = vpop.f32.mrf.mxu0  ;;  %v5301_v6 = vpop.f32.mrf.mxu1  ;;  %v4412_v44 = vadd.f32 %v7706_v53, %v4027_v27  ;;  %v4647_v17 = vadd.f32 %v7766_v41, %v4410_v52  ;;  %v4059_v46 = vadd.f32 %v8419_v58, %v7781_v50  ;;  %v4426_v21 = vadd.f32 %v8423_v49, %v4057_v38  ;;  %v8430_v52 = vld [vmem:[#allocation9_spill] sm:$0xff] }
 0x2e2   :  { %5332 = vst [vmem:[%s7917_s4 + $0x10] sm:$0xff] %v5278_v4  ;;  %v5280_v63 = vadd.f32 %v5279_v30, %v5103_v40  ;;  %v5109_v2 = vadd.f32 %v5108_v24, %v4816_v22  ;;  %v4828_v30 = vadd.f32 %v7742_v12, %v4627_v47  ;;  %v4043_v12 = vadd.f32 %v7726_v45, %v7781_v50  ;;  %v8425_v47 = vld [vmem:[#allocation17_spill] sm:$0xff]  ;;  %v8426_v40 = vld [vmem:[#allocation12_spill] sm:$0xff] }
 0x2e3   :  { %v5110_v7 = vpop.f32.mrf.mxu0  ;;  %v5303_v18 = vpop.f32.mrf.mxu1  ;;  %v4649_v53 = vadd.f32 %v7773_v28, %v4412_v44  ;;  %v4428_v22 = vadd.f32 %v8426_v40, %v4059_v46  ;;  %v4667_v24 = vadd.f32 %v8427_v56, %v4426_v21 }
 0x2e4   :  { %5333 = vst [vmem:[%s7917_s4 + $0x18] sm:$0xff] %v5280_v63  ;;  %v5286_v19 = vadd.f32 %v5285_v57, %v5109_v2  ;;  %v5111_v26 = vadd.f32 %v5110_v7, %v4818_v16  ;;  %v4830_v57 = vadd.f32 %v7744_v25, %v4629_v29  ;;  %v4418_v25 = vadd.f32 %v7710_v54, %v4041_v43  ;;  %v8428_v63 = vld [vmem:[#allocation8_spill] sm:$0xff] }
 0x2e5   :  { %v5116_v59 = vpop.f32.mrf.mxu0  ;;  %v5309_v10 = vpop.f32.mrf.mxu1  ;;  %v4420_v36 = vadd.f32 %v8420_v48, %v4043_v12  ;;  %v4854_v4 = vadd.f32 %v8425_v47, %v4649_v53  ;;  %v4669_v31 = vadd.f32 %v7804_v51, %v4428_v22 }
 0x2e6   :  { %5334 = vst [vmem:[%s7917_s4 + $0x20] sm:$0xff] %v5286_v19  ;;  %v5288_v11 = vadd.f32 %v5287_v42, %v5111_v26  ;;  %v5117_v8 = vadd.f32 %v5116_v59, %v4828_v30  ;;  %v4657_v54 = vadd.f32 %v8421_v32, %v4418_v25  ;;  %v4876_v59 = vadd.f32 %v8430_v52, %v4667_v24 }
 0x2e7   :  { %v5118_v61 = vpop.f32.mrf.mxu0  ;;  %v5311_v42 = vpop.f32.mrf.mxu1  ;;  %v4659_v34 = vadd.f32 %v8424_v15, %v4420_v36 }
 0x2e8   :  { %5335 = vst [vmem:[%s7917_s4 + $0x28] sm:$0xff] %v5288_v11  ;;  %v5294_v20 = vadd.f32 %v5293_v33, %v5117_v8  ;;  %v5119_v13 = vadd.f32 %v5118_v61, %v4830_v57  ;;  %v8422_v33 = vld [vmem:[#allocation7_spill] sm:$0xff]  ;;  %v4864_v2 = vadd.f32 %v8428_v63, %v4657_v54  ;;  %v8431_v8 = vld [vmem:[#allocation10_spill] sm:$0xff] }
 0x2e9   :  { %v5124_v45 = vpop.f32.mrf.mxu0  ;;  %v4852_v5 = vadd.f32 %v8422_v33, %v4647_v17  ;;  %v5317_v37 = vpop.f32.mrf.mxu1  ;;  %v4866_v19 = vadd.f32 %v8429_v35, %v4659_v34  ;;  %v4878_v57 = vadd.f32 %v8431_v8, %v4669_v31 }
 0x2ea   :  { %5336 = vst [vmem:[%s7917_s4 + $0x30] sm:$0xff] %v5294_v20  ;;  %v5296_v41 = vadd.f32 %v5295_v9, %v5119_v13  ;;  %v5125_v1 = vadd.f32 %v5124_v45, %v4840_v0 }
 0x2eb   :  { %v5126_v14 = vpop.f32.mrf.mxu0  ;;  %v5319_v16 = vpop.f32.mrf.mxu1 }
 0x2ec   :  { %5337 = vst [vmem:[%s7917_s4 + $0x38] sm:$0xff] %v5296_v41  ;;  %v5302_v28 = vadd.f32 %v5301_v6, %v5125_v1  ;;  %v5127_v60 = vadd.f32 %v5126_v14, %v4842_v23 }
 0x2ed   :  { %v5132_v62 = vpop.f32.mrf.mxu0 }
 0x2ee   :  { %5373 = vst [vmem:[%s7917_s4 + $0x40] sm:$0xff] %v5302_v28  ;;  %v5304_v50 = vadd.f32 %v5303_v18, %v5127_v60  ;;  %v5133_v9 = vadd.f32 %v5132_v62, %v4852_v5 }
 0x2ef   :  { %v5134_v39 = vpop.f32.mrf.mxu0 }
 0x2f0   :  { %5374 = vst [vmem:[%s7917_s4 + $0x48] sm:$0xff] %v5304_v50  ;;  %v5310_v6 = vadd.f32 %v5309_v10, %v5133_v9  ;;  %v5135_v29 = vadd.f32 %v5134_v39, %v4854_v4  ;;  %v5325_v10 = vpop.f32.mrf.mxu1 }
 0x2f1   :  { %v5140_v27 = vpop.f32.mrf.mxu0 }
 0x2f2   :  { %5375 = vst [vmem:[%s7917_s4 + $0x50] sm:$0xff] %v5310_v6  ;;  %v5312_v7 = vadd.f32 %v5311_v42, %v5135_v29  ;;  %v5141_v18 = vadd.f32 %v5140_v27, %v4864_v2  ;;  %v5327_v17 = vpop.f32.mrf.mxu1 }
 0x2f3   :  { %v5142_v26 = vpop.f32.mrf.mxu0 }
 0x2f4   :  { %5376 = vst [vmem:[%s7917_s4 + $0x58] sm:$0xff] %v5312_v7  ;;  %v5318_v30 = vadd.f32 %v5317_v37, %v5141_v18  ;;  %v5143_v43 = vadd.f32 %v5142_v26, %v4866_v19 }
 0x2f5   :  { %v5148_v3 = vpop.f32.mrf.mxu0 }
 0x2f6   :  { %5377 = vst [vmem:[%s7917_s4 + $0x60] sm:$0xff] %v5318_v30  ;;  %v5320_v51 = vadd.f32 %v5319_v16, %v5143_v43  ;;  %v5149_v11 = vadd.f32 %v5148_v3, %v4876_v59 }
 0x2f7   :  { %v5150_v12 = vpop.f32.mrf.mxu0 }
 0x2f8   :  { %5378 = vst [vmem:[%s7917_s4 + $0x68] sm:$0xff] %v5320_v51  ;;  %v5326_v44 = vadd.f32 %v5325_v10, %v5149_v11  ;;  %v5151_v61 = vadd.f32 %v5150_v12, %v4878_v57 }
 0x2fa   :  { %5379 = vst [vmem:[%s7917_s4 + $0x70] sm:$0xff] %v5326_v44  ;;  %v5328_v20 = vadd.f32 %v5327_v17, %v5151_v61 }
 0x2fc   :  { %5380 = vst [vmem:[%s7917_s4 + $0x78] sm:$0xff] %v5328_v20 }

</bundles_post_ra>
